<compile_context>
chip_gen: v5e
topology: v5e:2x2
jax: 0.10.0
libtpu: 0.0.40
codegen_flags: <defaults>
</compile_context>

<pallas_src>
import functools

import jax
import jax.numpy as jnp
from jax.experimental import pallas as pl
from jax.experimental.pallas import tpu as pltpu

IN_FEATURES = 2048
HIDDEN = 512
NUM_CLASSES = 3
PADDED_CLASSES = 128       # lane-dense output width (multiple of 128)
BN_EPS = 1e-5


def _round_up(n, m):
    return ((n + m - 1) // m) * m


def _head_kernel(feat_ref, w1_ref, shift_ref, w2_ref, b2_ref, out_ref):
    # Cast the f32 feature tile to bf16 in-kernel (VPU) right before the MXU dot:
    # avoids an extra un-hidden XLA pass over the (B, 2048) tensor in HBM.
    feat_bf = feat_ref[...].astype(jnp.bfloat16)
    # h = relu(feat @ W1' + shift)      BN(eval) scale already folded into W1' columns,
    #                                   shift = (b1 - mean)*gamma*rsqrt(var+eps) + beta
    h = jnp.dot(feat_bf, w1_ref[...], preferred_element_type=jnp.float32)
    h = jnp.maximum(h + shift_ref[...], 0.0)
    # Dropout(0.4) is identity at inference time (eval mode).
    # Second matmul also in bf16 (f32xf32 is multi-pass on the MXU); accumulate in f32.
    out_ref[...] = (
        jnp.dot(h.astype(jnp.bfloat16), w2_ref[...],
                preferred_element_type=jnp.float32)
        + b2_ref[...]
    )


def prepare_head_params(w1, b1, gamma, beta, running_mean, running_var, w2, b2):
    """One-time (offline) weight preparation:
       - fold BatchNorm1d(eval) scale into W1, fold Linear bias + BN shift into one vector
       - cast both weights to bf16 (native bf16 MXU, halves weight HBM/VMEM)
       - pad the classifier weights to a lane-dense 128-wide output."""
    inv_std = jax.lax.rsqrt(running_var.astype(jnp.float32) + BN_EPS)
    scale = gamma.astype(jnp.float32) * inv_std                                   # (512,)
    w1_folded = (w1.astype(jnp.float32) * scale[None, :]).astype(jnp.bfloat16)    # (2048, 512)
    shift = ((b1 - running_mean) * scale + beta).astype(jnp.float32).reshape(1, HIDDEN)
    w2_p = (
        jnp.zeros((HIDDEN, PADDED_CLASSES), jnp.float32)
        .at[:, :NUM_CLASSES].set(w2.astype(jnp.float32))
    ).astype(jnp.bfloat16)                                                        # (512, 128) bf16
    b2_p = (
        jnp.zeros((1, PADDED_CLASSES), jnp.float32)
        .at[0, :NUM_CLASSES].set(b2.astype(jnp.float32))
    )
    return w1_folded, shift, w2_p, b2_p


def _choose_tiling(batch, block_b):
    """Pick (tm, b_pad): tile <= block_b rows, multiple of 8 sublanes (f32 feat block),
    padding limited to <= ~15 rows, and >= 2 grid steps for B > 64 (v7x megacore)."""
    b8 = _round_up(batch, 8)
    n_tiles = pl.cdiv(b8, block_b)
    if b8 > 64:
        n_tiles = max(n_tiles, 2)   # keep both v7x TensorCores busy for mid-size batches
    tm = _round_up(pl.cdiv(b8, n_tiles), 8)
    return tm, n_tiles * tm


@functools.partial(jax.jit, static_argnames=("block_b",))
def finetune_head(feat, w1_folded, shift, w2_p, b2_p, *, block_b=512):
    """Fused head: Flatten -> Linear -> BatchNorm1d(eval) -> ReLU -> Dropout(eval) -> Linear."""
    B = feat.shape[0]
    tm, b_pad = _choose_tiling(B, block_b)

    feat = feat.astype(jnp.float32)
    if b_pad != B:                       # pad only to the sublane/tiling multiple (<= 15 rows)
        feat = jnp.pad(feat, ((0, b_pad - B), (0, 0)))

    out = pl.pallas_call(
        _head_kernel,
        out_shape=jax.ShapeDtypeStruct((b_pad, PADDED_CLASSES), jnp.float32),
        grid=(b_pad // tm,),
        in_specs=[
            pl.BlockSpec((tm, IN_FEATURES), lambda i: (i, 0)),         # f32 feat tile (pipelined)
            pl.BlockSpec((IN_FEATURES, HIDDEN), lambda i: (0, 0)),     # W1' bf16, VMEM-resident
            pl.BlockSpec((1, HIDDEN), lambda i: (0, 0)),               # folded shift (f32)
            pl.BlockSpec((HIDDEN, PADDED_CLASSES), lambda i: (0, 0)),  # W2 bf16 (lane-padded)
            pl.BlockSpec((1, PADDED_CLASSES), lambda i: (0, 0)),       # b2 f32 (lane-padded)
        ],
        out_specs=pl.BlockSpec((tm, PADDED_CLASSES), lambda i: (i, 0)),
        compiler_params=pltpu.CompilerParams(
            dimension_semantics=("parallel",),   # batch tiles independent (megacore sharding)
        ),
    )(feat, w1_folded, shift, w2_p, b2_p)

    return out[:B, :NUM_CLASSES]


if __name__ == "__main__":
    key = jax.random.PRNGKey(0)
    keys = jax.random.split(key, 10)

    # Small image input consistent with the module's forward (NCHW).
    B, C, H, W = 8, 4, 16, 16
    x = jax.random.normal(keys[0], (B, C, H, W), jnp.float32)

    # --- Deterministic parameter init (shapes from the module's __init__) ---
    wb = jax.random.normal(keys[1], (C, IN_FEATURES), jnp.float32) * 0.1   # stand-in backbone proj
    w1 = jax.random.normal(keys[2], (IN_FEATURES, HIDDEN), jnp.float32) * 0.02
    b1 = jax.random.normal(keys[3], (HIDDEN,), jnp.float32) * 0.01
    gamma = jax.random.uniform(keys[4], (HIDDEN,), jnp.float32, 0.5, 1.5)
    beta = jax.random.normal(keys[5], (HIDDEN,), jnp.float32) * 0.01
    running_mean = jax.random.normal(keys[6], (HIDDEN,), jnp.float32) * 0.01
    running_var = jax.random.uniform(keys[7], (HIDDEN,), jnp.float32, 0.5, 1.5)
    w2 = jax.random.normal(keys[8], (HIDDEN, NUM_CLASSES), jnp.float32) * 0.05
    b2 = jax.random.normal(keys[9], (NUM_CLASSES,), jnp.float32) * 0.01

    # TODO(synk): the real backbone is an external frozen `loaded_model` (e.g. a ResNet
    # producing 2048-d features); here a deterministic stand-in (GAP + frozen projection)
    # produces the (B, 2048) feature tensor the head consumes.
    feat = jnp.mean(x, axis=(2, 3)) @ wb   # (B, 2048); "Flatten" is a no-op on (B, 2048)

    # Offline weight preparation (BN fold + bf16 cast + lane padding), done once.
    w1_folded, shift, w2_p, b2_p = prepare_head_params(
        w1, b1, gamma, beta, running_mean, running_var, w2, b2
    )

    out = finetune_head(feat, w1_folded, shift, w2_p, b2_p)
    jax.block_until_ready(out)
    assert out.shape == (B, NUM_CLASSES)

    # Reference with the same bf16 operand quantization the kernel uses (bf16 x bf16 -> f32 MXU
    # on both dots).
    featq = feat.astype(jnp.bfloat16).astype(jnp.float32)
    w1q = w1_folded.astype(jnp.float32)
    h_ref = jnp.maximum(featq @ w1q + shift, 0.0)
    hq = h_ref.astype(jnp.bfloat16).astype(jnp.float32)
    w2q = w2_p.astype(jnp.float32)[:, :NUM_CLASSES]
    ref = hq @ w2q + b2
    assert jnp.allclose(out, ref, atol=2e-3, rtol=2e-2), "mismatch vs bf16-quantized reference"

    # Loose sanity check vs the pure-f32 eval-mode module semantics.
    inv_std = jax.lax.rsqrt(running_var + BN_EPS)
    h_f32 = jnp.maximum((feat @ w1 + b1 - running_mean) * inv_std * gamma + beta, 0.0)
    ref_f32 = h_f32 @ w2 + b2
    assert jnp.allclose(out, ref_f32, atol=5e-2, rtol=5e-2), "mismatch vs f32 reference"

    print("KERNEL_OK")
</pallas_src>

<mosaic_0001>
module attributes {stable_mosaic.version = 11 : i64} {
  func.func @_head_kernel(%arg0: i32, %arg1: memref<8x2048xf32, #tpu.memory_space<vmem>>, %arg2: memref<2048x512xbf16, #tpu.memory_space<vmem>>, %arg3: memref<1x512xf32, #tpu.memory_space<vmem>>, %arg4: memref<512x128xbf16, #tpu.memory_space<vmem>>, %arg5: memref<1x128xf32, #tpu.memory_space<vmem>>, %arg6: memref<8x128xf32, #tpu.memory_space<vmem>>) attributes {dimension_semantics = [#tpu.dimension_semantics<parallel>], iteration_bounds = array<i64: 1>, scalar_prefetch = 0 : i64, scratch_operands = 0 : i64, tpu.core_type = #tpu.core_type<tc>, window_params = [{transform_indices = @transform_0, window_bounds = array<i64: 8, 2048>}, {pipeline_mode = #tpu.pipeline_mode<synchronous>, transform_indices = @transform_1, window_bounds = array<i64: 2048, 512>}, {pipeline_mode = #tpu.pipeline_mode<synchronous>, transform_indices = @transform_2, window_bounds = array<i64: 1, 512>}, {pipeline_mode = #tpu.pipeline_mode<synchronous>, transform_indices = @transform_3, window_bounds = array<i64: 512, 128>}, {pipeline_mode = #tpu.pipeline_mode<synchronous>, transform_indices = @transform_4, window_bounds = array<i64: 1, 128>}, {transform_indices = @transform_5, window_bounds = array<i64: 8, 128>}]} {
    %c0 = arith.constant 0 : index
    %c0_0 = arith.constant 0 : index
    %0 = vector.load %arg1[%c0, %c0_0] : memref<8x2048xf32, #tpu.memory_space<vmem>>, vector<8x2048xf32>
    %1 = arith.truncf %0 : vector<8x2048xf32> to vector<8x2048xbf16>
    %c0_1 = arith.constant 0 : index
    %c0_2 = arith.constant 0 : index
    %2 = vector.load %arg2[%c0_1, %c0_2] : memref<2048x512xbf16, #tpu.memory_space<vmem>>, vector<2048x512xbf16>
    %cst = arith.constant dense<0.000000e+00> : vector<8x512xf32>
    %3 = tpu.matmul %1, %2, %cst {dimension_numbers = #tpu.dot_dimension_numbers<[1], [0], [0], [1], [0, 0, 1, 1], [], []>} : vector<8x2048xbf16>, vector<2048x512xbf16>, vector<8x512xf32> -> vector<8x512xf32>
    %c0_3 = arith.constant 0 : index
    %c0_4 = arith.constant 0 : index
    %4 = vector.load %arg3[%c0_3, %c0_4] : memref<1x512xf32, #tpu.memory_space<vmem>>, vector<1x512xf32>
    %5 = vector.broadcast %4 : vector<1x512xf32> to vector<8x512xf32>
    %6 = arith.addf %3, %5 : vector<8x512xf32>
    %cst_5 = arith.constant 0.000000e+00 : f32
    %7 = vector.broadcast %cst_5 : f32 to vector<8x512xf32>
    %8 = arith.maximumf %6, %7 : vector<8x512xf32>
    %9 = arith.truncf %8 : vector<8x512xf32> to vector<8x512xbf16>
    %c0_6 = arith.constant 0 : index
    %c0_7 = arith.constant 0 : index
    %10 = vector.load %arg4[%c0_6, %c0_7] : memref<512x128xbf16, #tpu.memory_space<vmem>>, vector<512x128xbf16>
    %cst_8 = arith.constant dense<0.000000e+00> : vector<8x128xf32>
    %11 = tpu.matmul %9, %10, %cst_8 {dimension_numbers = #tpu.dot_dimension_numbers<[1], [0], [0], [1], [0, 0, 1, 1], [], []>} : vector<8x512xbf16>, vector<512x128xbf16>, vector<8x128xf32> -> vector<8x128xf32>
    %c0_9 = arith.constant 0 : index
    %c0_10 = arith.constant 0 : index
    %12 = vector.load %arg5[%c0_9, %c0_10] : memref<1x128xf32, #tpu.memory_space<vmem>>, vector<1x128xf32>
    %13 = vector.broadcast %12 : vector<1x128xf32> to vector<8x128xf32>
    %14 = arith.addf %11, %13 : vector<8x128xf32>
    %c0_11 = arith.constant 0 : index
    %c0_12 = arith.constant 0 : index
    %15 = vector.load %arg6[%c0_11, %c0_12] : memref<8x128xf32, #tpu.memory_space<vmem>>, vector<8x128xf32>
    tpu.vector_store %arg6[%c0_11, %c0_12], %14 {strides = array<i32>} : memref<8x128xf32, #tpu.memory_space<vmem>>, vector<8x128xf32>,
    return
  }
  func.func @transform_0(%arg0: i32) -> (i32, i32) {
    %c0_i32 = arith.constant 0 : i32
    %c0_i32_0 = arith.constant 0 : i32
    return %arg0, %c0_i32 : i32, i32
  }
  func.func @transform_1(%arg0: i32) -> (i32, i32) {
    %c0_i32 = arith.constant 0 : i32
    %c0_i32_0 = arith.constant 0 : i32
    %c0_i32_1 = arith.constant 0 : i32
    return %c0_i32, %c0_i32_0 : i32, i32
  }
  func.func @transform_2(%arg0: i32) -> (i32, i32) {
    %c0_i32 = arith.constant 0 : i32
    %c0_i32_0 = arith.constant 0 : i32
    %c0_i32_1 = arith.constant 0 : i32
    return %c0_i32, %c0_i32_0 : i32, i32
  }
  func.func @transform_3(%arg0: i32) -> (i32, i32) {
    %c0_i32 = arith.constant 0 : i32
    %c0_i32_0 = arith.constant 0 : i32
    %c0_i32_1 = arith.constant 0 : i32
    return %c0_i32, %c0_i32_0 : i32, i32
  }
  func.func @transform_4(%arg0: i32) -> (i32, i32) {
    %c0_i32 = arith.constant 0 : i32
    %c0_i32_0 = arith.constant 0 : i32
    %c0_i32_1 = arith.constant 0 : i32
    return %c0_i32, %c0_i32_0 : i32, i32
  }
  func.func @transform_5(%arg0: i32) -> (i32, i32) {
    %c0_i32 = arith.constant 0 : i32
    %c0_i32_0 = arith.constant 0 : i32
    return %arg0, %c0_i32 : i32, i32
  }
}

</mosaic_0001>

<bundles_post_ra>
// kernel: finetune_head.1
= control target key start
LH: loop header
LB: loop body
LE: loop exit
PB: predicated region body
PF: predicated region fallthrough
CT: control target
= control target key end

     0   :  { %10 = vsyncpa [#allocation3], 0  ;;  %s7432_s0 = inlined_call_operand.hbm [shape: f32[8,2048], index: 0, kind: input, shape index: {}]   ;;  %s7433_s1 = inlined_call_operand.hbm [shape: bf16[2048,512], index: 1, kind: input, shape index: {}]   ;;  %s7434_s2 = inlined_call_operand.hbm [shape: f32[1,512], index: 2, kind: input, shape index: {}]   ;;  %s7435_s3 = inlined_call_operand.hbm [shape: bf16[512,128], index: 3, kind: input, shape index: {}]   ;;  %s7436_s4 = inlined_call_operand.hbm [shape: f32[1,128], index: 4, kind: input, shape index: {}]   ;;  %s7437_s5 = inlined_call_operand.vmem [shape: f32[8,128], index: 5, kind: output, shape index: {}]  }
   0x1   :  { %11 = vsyncpa [#allocation5], 0  ;;  %s28_s20 = sshll.u32 %s7433_s1, 4  ;;  %s29_s20 = int_to_ptr.hbm [resolvable:$true] %s28_s20 }
   0x2   :  { %12 = vsyncpa [#allocation8], 0  ;;  %s7224_s21 = smov [#allocation4]   ;;  %s52_s25 = sshll.u32 %s7435_s3, 4  ;;  %s53_s25 = int_to_ptr.hbm [resolvable:$true] %s52_s25 }
   0x3   :  { %s30_s22 = sshll.u32 %s7224_s21, 4  ;;  %s7225_s26 = smov 256   ;;  %s31_s22 = int_to_ptr.vmem [resolvable:$true] %s30_s22 }
   0x4   :  { %s7226_s27 = smov 16   ;;  %s7227_s28 = smov [#allocation7]  }
   0x5   :  { %36 = dma.hbm_to_vmem [thread:$0]  %s29_s20, 65536, %s31_s22, [#allocation5], %s7225_s26, %s7225_s26, %s7226_s27  }
   0x6   :  { %s54_s29 = sshll.u32 %s7227_s28, 4  ;;  %s7228_s30 = smov 64   ;;  %s55_s29 = int_to_ptr.vmem [resolvable:$true] %s54_s29 }
   0x7   :  { %s7229_s6 = smov 4   ;;  %s18_s8 = sshll.u32 %s7432_s0, 4  ;;  %s19_s8 = int_to_ptr.hbm [resolvable:$true] %s18_s8 }
   0x8   :  { %60 = dma.hbm_to_vmem [thread:$0]  %s53_s25, 4096, %s55_s29, [#allocation8], %s7228_s30, %s7228_s30, %s7229_s6  }
   0x9   :  { %s7230_s9 = smov [#allocation2]   ;;  %s42_s12 = sshll.u32 %s7434_s2, 4  ;;  %s43_s12 = int_to_ptr.hbm [resolvable:$true] %s42_s12 }
   0xa   :  { %s20_s10 = sshll.u32 %s7230_s9, 4  ;;  %s7231_s13 = smov [#allocation6]   ;;  %s21_s10 = int_to_ptr.vmem [resolvable:$true] %s20_s10 }
   0xb   :  { %23 = dma.hbm_to_vmem [thread:$0]  %s19_s8, 2048, %s21_s10, [#allocation3]  }
   0xc   :  { %s44_s14 = sshll.u32 %s7231_s13, 4  ;;  %s66_s17 = sshll.u32 %s7436_s4, 4  ;;  %s45_s14 = int_to_ptr.vmem [resolvable:$true] %s44_s14  ;;  %s67_s17 = int_to_ptr.hbm [resolvable:$true] %s66_s17 }
   0xd   :  { %47 = dma.hbm_to_vmem [thread:$0]  %s43_s12, 64, %s45_s14, [#allocation5]  }
   0xe   :  { %s7232_s0 = smov [#allocation9]  }
   0xf   :  { %s68_s18 = sshll.u32 %s7232_s0, 4  ;;  %s69_s18 = int_to_ptr.vmem [resolvable:$true] %s68_s18 }
  0x10   :  { %71 = dma.hbm_to_vmem [thread:$0]  %s67_s17, 16, %s69_s18, [#allocation8]  }
  0x11   :  { %7218 = dma.done.wait [#allocation3], 2048  }
  0x12   :  { %7219 = vsyncadd [#allocation3], 4294965248 }
  0x13   :  { %7220 = dma.done.wait [#allocation5], 65600  }
  0x14   :  { %7221 = vsyncadd [#allocation5], 4294901696 }
  0x15   :  { %7222 = dma.done.wait [#allocation8], 4112  }
  0x16   :  { %7223 = vsyncadd [#allocation8], 4294963184  ;;  %v4480_v0 = vld [vmem:[#allocation4 + $0xe0] sm:$0xf]  ;;  %v6572_v1 = vld [vmem:[#allocation4 + $0xec] sm:$0xf0] }
  0x17   :  { %v4608_v2 = vld [vmem:[#allocation4 + $0x1e0] sm:$0xf]  ;;  %v4481_v3 = vor.u32 %v6572_v1, %v4480_v0  ;;  %v6604_v4 = vld [vmem:[#allocation4 + $0x1ec] sm:$0xf0] }
  0x18   :  { %v4736_v5 = vld [vmem:[#allocation4 + $0x2e0] sm:$0xf]  ;;  %v6636_v6 = vld [vmem:[#allocation4 + $0x2ec] sm:$0xf0]  ;;  %v4609_v7 = vor.u32 %v6604_v4, %v4608_v2 }
  0x19   :  { %v4737_v8 = vor.u32 %v6636_v6, %v4736_v5  ;;  %v4864_v9 = vld [vmem:[#allocation4 + $0x3e0] sm:$0xf]  ;;  %v6668_v10 = vld [vmem:[#allocation4 + $0x3ec] sm:$0xf0]  ;;  %3206 = vmatpush.bf16.msra.mxu0 %v4481_v3 }
  0x1a   :  { %v4464_v11 = vld [vmem:[#allocation4 + $0xc0] sm:$0xf]  ;;  %v4865_v12 = vor.u32 %v6668_v10, %v4864_v9  ;;  %v6568_v13 = vld [vmem:[#allocation4 + $0xcc] sm:$0xf0]  ;;  %3219 = vmatpush.bf16.msra.mxu1 %v4609_v7 }
  0x1b   :  { %v4592_v14 = vld [vmem:[#allocation4 + $0x1c0] sm:$0xf]  ;;  %v6600_v15 = vld [vmem:[#allocation4 + $0x1cc] sm:$0xf0]  ;;  %3232 = vmatpush.bf16.msra.mxu2 %v4737_v8  ;;  %v4465_v16 = vor.u32 %v6568_v13, %v4464_v11 }
  0x1c   :  { %v4593_v17 = vor.u32 %v6600_v15, %v4592_v14  ;;  %v4720_v18 = vld [vmem:[#allocation4 + $0x2c0] sm:$0xf]  ;;  %v6632_v19 = vld [vmem:[#allocation4 + $0x2cc] sm:$0xf0]  ;;  %3245 = vmatpush.bf16.msra.mxu3 %v4865_v12 }
  0x1d   :  { %v4848_v20 = vld [vmem:[#allocation4 + $0x3c0] sm:$0xf]  ;;  %v4721_v21 = vor.u32 %v6632_v19, %v4720_v18  ;;  %v6664_v22 = vld [vmem:[#allocation4 + $0x3cc] sm:$0xf0]  ;;  %3207 = vmatpush.bf16.msra.mxu0 %v4465_v16 }
  0x1e   :  { %v4448_v23 = vld [vmem:[#allocation4 + $0xa0] sm:$0xf]  ;;  %v6564_v24 = vld [vmem:[#allocation4 + $0xac] sm:$0xf0]  ;;  %v4849_v25 = vor.u32 %v6664_v22, %v4848_v20  ;;  %3220 = vmatpush.bf16.msra.mxu1 %v4593_v17 }
  0x1f   :  { %v4576_v26 = vld [vmem:[#allocation4 + $0x1a0] sm:$0xf]  ;;  %v6596_v27 = vld [vmem:[#allocation4 + $0x1ac] sm:$0xf0]  ;;  %v4449_v29 = vor.u32 %v6564_v24, %v4448_v23  ;;  %3233 = vmatpush.bf16.msra.mxu2 %v4721_v21 }
  0x20   :  { %v4704_v28 = vld [vmem:[#allocation4 + $0x2a0] sm:$0xf]  ;;  %v6628_v30 = vld [vmem:[#allocation4 + $0x2ac] sm:$0xf0]  ;;  %v4577_v33 = vor.u32 %v6596_v27, %v4576_v26  ;;  %3246 = vmatpush.bf16.msra.mxu3 %v4849_v25 }
  0x21   :  { %v4832_v31 = vld [vmem:[#allocation4 + $0x3a0] sm:$0xf]  ;;  %v6660_v32 = vld [vmem:[#allocation4 + $0x3ac] sm:$0xf0]  ;;  %v4705_v34 = vor.u32 %v6628_v30, %v4704_v28  ;;  %3208 = vmatpush.bf16.msra.mxu0 %v4449_v29 }
  0x22   :  { %v4432_v35 = vld [vmem:[#allocation4 + $0x80] sm:$0xf]  ;;  %v6560_v36 = vld [vmem:[#allocation4 + $0x8c] sm:$0xf0]  ;;  %v4833_v38 = vor.u32 %v6660_v32, %v4832_v31  ;;  %3221 = vmatpush.bf16.msra.mxu1 %v4577_v33 }
  0x23   :  { %v4560_v37 = vld [vmem:[#allocation4 + $0x180] sm:$0xf]  ;;  %v6592_v39 = vld [vmem:[#allocation4 + $0x18c] sm:$0xf0]  ;;  %v4433_v44 = vor.u32 %v6560_v36, %v4432_v35  ;;  %3234 = vmatpush.bf16.msra.mxu2 %v4705_v34 }
  0x24   :  { %v4688_v40 = vld [vmem:[#allocation4 + $0x280] sm:$0xf]  ;;  %v6624_v41 = vld [vmem:[#allocation4 + $0x28c] sm:$0xf0]  ;;  %v4561_v45 = vor.u32 %v6592_v39, %v4560_v37  ;;  %3247 = vmatpush.bf16.msra.mxu3 %v4833_v38 }
  0x25   :  { %v4816_v42 = vld [vmem:[#allocation4 + $0x380] sm:$0xf]  ;;  %v6656_v43 = vld [vmem:[#allocation4 + $0x38c] sm:$0xf0]  ;;  %v4689_v46 = vor.u32 %v6624_v41, %v4688_v40  ;;  %3209 = vmatpush.bf16.msra.mxu0 %v4433_v44 }
  0x26   :  { %v4416_v47 = vld [vmem:[#allocation4 + $0x60] sm:$0xf]  ;;  %v6556_v48 = vld [vmem:[#allocation4 + $0x6c] sm:$0xf0]  ;;  %v4817_v50 = vor.u32 %v6656_v43, %v4816_v42  ;;  %3222 = vmatpush.bf16.msra.mxu1 %v4561_v45 }
  0x27   :  { %v4544_v49 = vld [vmem:[#allocation4 + $0x160] sm:$0xf]  ;;  %v6588_v51 = vld [vmem:[#allocation4 + $0x16c] sm:$0xf0]  ;;  %v4417_v56 = vor.u32 %v6556_v48, %v4416_v47  ;;  %3235 = vmatpush.bf16.msra.mxu2 %v4689_v46 }
  0x28   :  { %v4672_v52 = vld [vmem:[#allocation4 + $0x260] sm:$0xf]  ;;  %v6620_v53 = vld [vmem:[#allocation4 + $0x26c] sm:$0xf0]  ;;  %v4545_v57 = vor.u32 %v6588_v51, %v4544_v49  ;;  %3248 = vmatpush.bf16.msra.mxu3 %v4817_v50 }
  0x29   :  { %v4800_v54 = vld [vmem:[#allocation4 + $0x360] sm:$0xf]  ;;  %v6652_v55 = vld [vmem:[#allocation4 + $0x36c] sm:$0xf0]  ;;  %v4673_v58 = vor.u32 %v6620_v53, %v4672_v52  ;;  %3210 = vmatpush.bf16.msra.mxu0 %v4417_v56 }
  0x2a   :  { %v4400_v59 = vld [vmem:[#allocation4 + $0x40] sm:$0xf]  ;;  %v6552_v60 = vld [vmem:[#allocation4 + $0x4c] sm:$0xf0]  ;;  %v4801_v62 = vor.u32 %v6652_v55, %v4800_v54  ;;  %3223 = vmatpush.bf16.msra.mxu1 %v4545_v57 }
  0x2b   :  { %v4528_v61 = vld [vmem:[#allocation4 + $0x140] sm:$0xf]  ;;  %v6584_v63 = vld [vmem:[#allocation4 + $0x14c] sm:$0xf0]  ;;  %v4401_v4 = vor.u32 %v6552_v60, %v4400_v59  ;;  %3236 = vmatpush.bf16.msra.mxu2 %v4673_v58 }
  0x2c   :  { %v4656_v0 = vld [vmem:[#allocation4 + $0x240] sm:$0xf]  ;;  %v6616_v1 = vld [vmem:[#allocation4 + $0x24c] sm:$0xf0]  ;;  %v4529_v5 = vor.u32 %v6584_v63, %v4528_v61  ;;  %3249 = vmatpush.bf16.msra.mxu3 %v4801_v62 }
  0x2d   :  { %v4784_v2 = vld [vmem:[#allocation4 + $0x340] sm:$0xf]  ;;  %v6648_v3 = vld [vmem:[#allocation4 + $0x34c] sm:$0xf0]  ;;  %v4657_v6 = vor.u32 %v6616_v1, %v4656_v0  ;;  %3211 = vmatpush.bf16.msra.mxu0 %v4401_v4 }
  0x2e   :  { %v4384_v7 = vld [vmem:[#allocation4 + $0x20] sm:$0xf]  ;;  %v6548_v8 = vld [vmem:[#allocation4 + $0x2c] sm:$0xf0]  ;;  %v4785_v10 = vor.u32 %v6648_v3, %v4784_v2  ;;  %3224 = vmatpush.bf16.msra.mxu1 %v4529_v5 }
  0x2f   :  { %v4512_v9 = vld [vmem:[#allocation4 + $0x120] sm:$0xf]  ;;  %v6580_v11 = vld [vmem:[#allocation4 + $0x12c] sm:$0xf0]  ;;  %v4385_v16 = vor.u32 %v6548_v8, %v4384_v7  ;;  %3237 = vmatpush.bf16.msra.mxu2 %v4657_v6 }
  0x30   :  { %v4640_v12 = vld [vmem:[#allocation4 + $0x220] sm:$0xf]  ;;  %v6612_v13 = vld [vmem:[#allocation4 + $0x22c] sm:$0xf0]  ;;  %v4513_v19 = vor.u32 %v6580_v11, %v4512_v9  ;;  %3250 = vmatpush.bf16.msra.mxu3 %v4785_v10  ;;  %v95_v10 = vld [vmem:[#allocation2 + $0x18] sm:$0xff] }
  0x31   :  { %v4768_v14 = vld [vmem:[#allocation4 + $0x320] sm:$0xf]  ;;  %v6644_v15 = vld [vmem:[#allocation4 + $0x32c] sm:$0xf0]  ;;  %v4641_v20 = vor.u32 %v6612_v13, %v4640_v12  ;;  %3212 = vmatpush.bf16.msra.mxu0 %v4385_v16 }
  0x32   :  { %v4368_v17 = vld [vmem:[#allocation4] sm:$0xf]  ;;  %v6544_v18 = vld [vmem:[#allocation4 + $0xc] sm:$0xf0]  ;;  %v4769_v24 = vor.u32 %v6644_v15, %v4768_v14  ;;  %3225 = vmatpush.bf16.msra.mxu1 %v4513_v19  ;;  %v7282_v15 = vpack.c.bf16 %v95_v10, %v95_v10  ;;  %v93_v19 = vld [vmem:[#allocation2 + $0x8] sm:$0xff] }
  0x33   :  { %v4496_v21 = vld [vmem:[#allocation4 + $0x100] sm:$0xf]  ;;  %v6576_v22 = vld [vmem:[#allocation4 + $0x10c] sm:$0xf0]  ;;  %v4369_v31 = vor.u32 %v6544_v18, %v4368_v17  ;;  %3238 = vmatpush.bf16.msra.mxu2 %v4641_v20 }
  0x34   :  { %v4624_v23 = vld [vmem:[#allocation4 + $0x200] sm:$0xf]  ;;  %v6608_v25 = vld [vmem:[#allocation4 + $0x20c] sm:$0xf0]  ;;  %v4497_v35 = vor.u32 %v6576_v22, %v4496_v21  ;;  %3251 = vmatpush.bf16.msra.mxu3 %v4769_v24 }
  0x35   :  { %v4752_v26 = vld [vmem:[#allocation4 + $0x300] sm:$0xf]  ;;  %v6640_v27 = vld [vmem:[#allocation4 + $0x30c] sm:$0xf0]  ;;  %v4625_v36 = vor.u32 %v6608_v25, %v4624_v23  ;;  %3213 = vmatpush.bf16.msra.mxu0 %v4369_v31  ;;  %v7287_v25 = vpack.c.bf16 %v93_v19, %v93_v19 }
  0x36   :  { %v4992_v28 = vld [vmem:[#allocation4 + $0x4e0] sm:$0xf]  ;;  %v6700_v29 = vld [vmem:[#allocation4 + $0x4ec] sm:$0xf0]  ;;  %v4753_v39 = vor.u32 %v6640_v27, %v4752_v26  ;;  %3226 = vmatpush.bf16.msra.mxu1 %v4497_v35 }
  0x37   :  { %v5120_v30 = vld [vmem:[#allocation4 + $0x5e0] sm:$0xf]  ;;  %v6732_v32 = vld [vmem:[#allocation4 + $0x5ec] sm:$0xf0]  ;;  %v4993_v40 = vor.u32 %v6700_v29, %v4992_v28  ;;  %3239 = vmatpush.bf16.msra.mxu2 %v4625_v36 }
  0x38   :  { %v5248_v33 = vld [vmem:[#allocation4 + $0x6e0] sm:$0xf]  ;;  %v6764_v34 = vld [vmem:[#allocation4 + $0x6ec] sm:$0xf0]  ;;  %v5121_v41 = vor.u32 %v6732_v32, %v5120_v30  ;;  %3252 = vmatpush.bf16.msra.mxu3 %v4753_v39 }
  0x39   :  { %v5376_v37 = vld [vmem:[#allocation4 + $0x7e0] sm:$0xf]  ;;  %v6796_v38 = vld [vmem:[#allocation4 + $0x7ec] sm:$0xf0]  ;;  %v5249_v42 = vor.u32 %v6764_v34, %v5248_v33  ;;  %3258 = vmatpush.bf16.msrb.mxu0 %v4993_v40  ;;  %3227 = vmatmul.bf16.vlgmr.msra.gmra.mxu1 %v7287_v25 }
  0x3a   :  { %v4976_v43 = vld [vmem:[#allocation4 + $0x4c0] sm:$0xf]  ;;  %v6696_v44 = vld [vmem:[#allocation4 + $0x4cc] sm:$0xf0]  ;;  %v5377_v46 = vor.u32 %v6796_v38, %v5376_v37  ;;  %3271 = vmatpush.bf16.msrb.mxu1 %v5121_v41 }
  0x3b   :  { %v5104_v45 = vld [vmem:[#allocation4 + $0x5c0] sm:$0xf]  ;;  %v6728_v47 = vld [vmem:[#allocation4 + $0x5cc] sm:$0xf0]  ;;  %v4977_v52 = vor.u32 %v6696_v44, %v4976_v43  ;;  %3284 = vmatpush.bf16.msrb.mxu2 %v5249_v42  ;;  %3253 = vmatmul.bf16.vlgmr.msra.gmra.mxu3 %v7282_v15 }
  0x3c   :  { %v5232_v48 = vld [vmem:[#allocation4 + $0x6c0] sm:$0xf]  ;;  %v6760_v49 = vld [vmem:[#allocation4 + $0x6cc] sm:$0xf0]  ;;  %v5105_v54 = vor.u32 %v6728_v47, %v5104_v45  ;;  %3297 = vmatpush.bf16.msrb.mxu3 %v5377_v46 }
  0x3d   :  { %v5360_v50 = vld [vmem:[#allocation4 + $0x7c0] sm:$0xf]  ;;  %v6792_v51 = vld [vmem:[#allocation4 + $0x7cc] sm:$0xf0]  ;;  %v5233_v55 = vor.u32 %v6760_v49, %v5232_v48  ;;  %3259 = vmatpush.bf16.msrb.mxu0 %v4977_v52 }
  0x3e   :  { %v4960_v53 = vld [vmem:[#allocation4 + $0x4a0] sm:$0xf]  ;;  %v6692_v56 = vld [vmem:[#allocation4 + $0x4ac] sm:$0xf0]  ;;  %v5361_v59 = vor.u32 %v6792_v51, %v5360_v50  ;;  %3272 = vmatpush.bf16.msrb.mxu1 %v5105_v54 }
  0x3f   :  { %v5088_v57 = vld [vmem:[#allocation4 + $0x5a0] sm:$0xf]  ;;  %v6724_v58 = vld [vmem:[#allocation4 + $0x5ac] sm:$0xf0]  ;;  %v4961_v0 = vor.u32 %v6692_v56, %v4960_v53  ;;  %3285 = vmatpush.bf16.msrb.mxu2 %v5233_v55 }
  0x40   :  { %v5216_v60 = vld [vmem:[#allocation4 + $0x6a0] sm:$0xf]  ;;  %v6756_v61 = vld [vmem:[#allocation4 + $0x6ac] sm:$0xf0]  ;;  %v5089_v1 = vor.u32 %v6724_v58, %v5088_v57  ;;  %3298 = vmatpush.bf16.msrb.mxu3 %v5361_v59 }
  0x41   :  { %v5344_v62 = vld [vmem:[#allocation4 + $0x7a0] sm:$0xf]  ;;  %v6788_v63 = vld [vmem:[#allocation4 + $0x7ac] sm:$0xf0]  ;;  %v5217_v5 = vor.u32 %v6756_v61, %v5216_v60  ;;  %3260 = vmatpush.bf16.msrb.mxu0 %v4961_v0 }
  0x42   :  { %v4944_v2 = vld [vmem:[#allocation4 + $0x480] sm:$0xf]  ;;  %v94_v3 = vld [vmem:[#allocation2 + $0x10] sm:$0xff]  ;;  %v5345_v11 = vor.u32 %v6788_v63, %v5344_v62  ;;  %3273 = vmatpush.bf16.msrb.mxu1 %v5089_v1 }
  0x43   :  { %v92_v4 = vld [vmem:[#allocation2] sm:$0xff]  ;;  %v6688_v6 = vld [vmem:[#allocation4 + $0x48c] sm:$0xf0]  ;;  %v7278_v8 = vpack.c.bf16 %v94_v3, %v94_v3  ;;  %3286 = vmatpush.bf16.msrb.mxu2 %v5217_v5 }
  0x44   :  { %v5072_v7 = vld [vmem:[#allocation4 + $0x580] sm:$0xf]  ;;  %v7280_v9 = vpack.c.bf16 %v92_v4, %v92_v4  ;;  %v6720_v12 = vld [vmem:[#allocation4 + $0x58c] sm:$0xf0]  ;;  %v4945_v18 = vor.u32 %v6688_v6, %v4944_v2  ;;  %3299 = vmatpush.bf16.msrb.mxu3 %v5345_v11 }
  0x45   :  { %v5200_v13 = vld [vmem:[#allocation4 + $0x680] sm:$0xf]  ;;  %v6752_v14 = vld [vmem:[#allocation4 + $0x68c] sm:$0xf0]  ;;  %3240 = vmatmul.bf16.vlgmr.msra.gmra.mxu2 %v7278_v8  ;;  %v5073_v20 = vor.u32 %v6720_v12, %v5072_v7 }
  0x46   :  { %v5328_v16 = vld [vmem:[#allocation4 + $0x780] sm:$0xf]  ;;  %v6784_v17 = vld [vmem:[#allocation4 + $0x78c] sm:$0xf0]  ;;  %3214 = vmatmul.bf16.vlgmr.msra.gmra.mxu0 %v7280_v9  ;;  %v5201_v21 = vor.u32 %v6752_v14, %v5200_v13 }
  0x47   :  { %v4928_v22 = vld [vmem:[#allocation4 + $0x460] sm:$0xf]  ;;  %v6684_v23 = vld [vmem:[#allocation4 + $0x46c] sm:$0xf0]  ;;  %v5329_v26 = vor.u32 %v6784_v17, %v5328_v16  ;;  %3261 = vmatpush.bf16.msrb.mxu0 %v4945_v18  ;;  %3274 = vmatpush.bf16.msrb.mxu1 %v5073_v20 }
  0x48   :  { %v5056_v24 = vld [vmem:[#allocation4 + $0x560] sm:$0xf]  ;;  %v6716_v27 = vld [vmem:[#allocation4 + $0x56c] sm:$0xf0]  ;;  %v4929_v32 = vor.u32 %v6684_v23, %v4928_v22  ;;  %3287 = vmatpush.bf16.msrb.mxu2 %v5201_v21  ;;  %v99_v23 = vld [vmem:[#allocation2 + $0x38] sm:$0xff] }
  0x49   :  { %v5184_v28 = vld [vmem:[#allocation4 + $0x660] sm:$0xf]  ;;  %v6748_v29 = vld [vmem:[#allocation4 + $0x66c] sm:$0xf0]  ;;  %v5057_v33 = vor.u32 %v6716_v27, %v5056_v24  ;;  %3300 = vmatpush.bf16.msrb.mxu3 %v5329_v26 }
  0x4a   :  { %v5312_v30 = vld [vmem:[#allocation4 + $0x760] sm:$0xf]  ;;  %v6780_v31 = vld [vmem:[#allocation4 + $0x76c] sm:$0xf0]  ;;  %v5185_v34 = vor.u32 %v6748_v29, %v5184_v28  ;;  %v97_v29 = vld [vmem:[#allocation2 + $0x28] sm:$0xff] }
  0x4b   :  { %v4912_v35 = vld [vmem:[#allocation4 + $0x440] sm:$0xf]  ;;  %v6680_v36 = vld [vmem:[#allocation4 + $0x44c] sm:$0xf0]  ;;  %v5313_v38 = vor.u32 %v6780_v31, %v5312_v30  ;;  %3262 = vmatpush.bf16.msrb.mxu0 %v4929_v32  ;;  %3275 = vmatpush.bf16.msrb.mxu1 %v5057_v33 }
  0x4c   :  { %v5040_v37 = vld [vmem:[#allocation4 + $0x540] sm:$0xf]  ;;  %v6712_v39 = vld [vmem:[#allocation4 + $0x54c] sm:$0xf0]  ;;  %v4913_v44 = vor.u32 %v6680_v36, %v4912_v35  ;;  %3288 = vmatpush.bf16.msrb.mxu2 %v5185_v34 }
  0x4d   :  { %v5168_v40 = vld [vmem:[#allocation4 + $0x640] sm:$0xf]  ;;  %v6744_v41 = vld [vmem:[#allocation4 + $0x64c] sm:$0xf0]  ;;  %v5041_v45 = vor.u32 %v6712_v39, %v5040_v37  ;;  %3301 = vmatpush.bf16.msrb.mxu3 %v5313_v38  ;;  %v7294_v38 = vpack.c.bf16 %v99_v23, %v99_v23 }
  0x4e   :  { %v5296_v42 = vld [vmem:[#allocation4 + $0x740] sm:$0xf]  ;;  %v6776_v43 = vld [vmem:[#allocation4 + $0x74c] sm:$0xf0]  ;;  %v5169_v46 = vor.u32 %v6744_v41, %v5168_v40  ;;  %v7296_v40 = vpack.c.bf16 %v97_v29, %v97_v29 }
  0x4f   :  { %v4896_v47 = vld [vmem:[#allocation4 + $0x420] sm:$0xf]  ;;  %v6676_v48 = vld [vmem:[#allocation4 + $0x42c] sm:$0xf0]  ;;  %v5297_v50 = vor.u32 %v6776_v43, %v5296_v42  ;;  %3263 = vmatpush.bf16.msrb.mxu0 %v4913_v44  ;;  %3276 = vmatpush.bf16.msrb.mxu1 %v5041_v45 }
  0x50   :  { %v5024_v49 = vld [vmem:[#allocation4 + $0x520] sm:$0xf]  ;;  %v6708_v51 = vld [vmem:[#allocation4 + $0x52c] sm:$0xf0]  ;;  %v4897_v56 = vor.u32 %v6676_v48, %v4896_v47  ;;  %3289 = vmatpush.bf16.msrb.mxu2 %v5169_v46 }
  0x51   :  { %v5152_v52 = vld [vmem:[#allocation4 + $0x620] sm:$0xf]  ;;  %v6740_v53 = vld [vmem:[#allocation4 + $0x62c] sm:$0xf0]  ;;  %v5025_v59 = vor.u32 %v6708_v51, %v5024_v49  ;;  %3302 = vmatpush.bf16.msrb.mxu3 %v5297_v50 }
  0x52   :  { %v5280_v54 = vld [vmem:[#allocation4 + $0x720] sm:$0xf]  ;;  %v6772_v55 = vld [vmem:[#allocation4 + $0x72c] sm:$0xf0]  ;;  %v5153_v60 = vor.u32 %v6740_v53, %v5152_v52 }
  0x53   :  { %v4880_v57 = vld [vmem:[#allocation4 + $0x400] sm:$0xf]  ;;  %v6672_v58 = vld [vmem:[#allocation4 + $0x40c] sm:$0xf0]  ;;  %v5281_v0 = vor.u32 %v6772_v55, %v5280_v54  ;;  %3264 = vmatpush.bf16.msrb.mxu0 %v4897_v56  ;;  %3277 = vmatpush.bf16.msrb.mxu1 %v5025_v59 }
  0x54   :  { %v5008_v61 = vld [vmem:[#allocation4 + $0x500] sm:$0xf]  ;;  %v6704_v62 = vld [vmem:[#allocation4 + $0x50c] sm:$0xf0]  ;;  %v4881_v7 = vor.u32 %v6672_v58, %v4880_v57  ;;  %3290 = vmatpush.bf16.msrb.mxu2 %v5153_v60 }
  0x55   :  { %v5136_v63 = vld [vmem:[#allocation4 + $0x600] sm:$0xf]  ;;  %v6736_v1 = vld [vmem:[#allocation4 + $0x60c] sm:$0xf0]  ;;  %v5009_v13 = vor.u32 %v6704_v62, %v5008_v61  ;;  %3303 = vmatpush.bf16.msrb.mxu3 %v5281_v0 }
  0x56   :  { %v5264_v2 = vld [vmem:[#allocation4 + $0x700] sm:$0xf]  ;;  %v6768_v3 = vld [vmem:[#allocation4 + $0x70c] sm:$0xf0]  ;;  %v5137_v14 = vor.u32 %v6736_v1, %v5136_v63 }
  0x57   :  { %v5504_v4 = vld [vmem:[#allocation4 + $0x8e0] sm:$0xf]  ;;  %v6828_v5 = vld [vmem:[#allocation4 + $0x8ec] sm:$0xf0]  ;;  %v5265_v19 = vor.u32 %v6768_v3, %v5264_v2  ;;  %3265 = vmatpush.bf16.msrb.mxu0 %v4881_v7  ;;  %3278 = vmatpush.bf16.msrb.mxu1 %v5009_v13 }
  0x58   :  { %v5632_v6 = vld [vmem:[#allocation4 + $0x9e0] sm:$0xf]  ;;  %v6860_v10 = vld [vmem:[#allocation4 + $0x9ec] sm:$0xf0]  ;;  %v5505_v20 = vor.u32 %v6828_v5, %v5504_v4  ;;  %3291 = vmatpush.bf16.msrb.mxu2 %v5137_v14 }
  0x59   :  { %v5760_v11 = vld [vmem:[#allocation4 + $0xae0] sm:$0xf]  ;;  %v6892_v12 = vld [vmem:[#allocation4 + $0xaec] sm:$0xf0]  ;;  %v5633_v24 = vor.u32 %v6860_v10, %v5632_v6  ;;  %3304 = vmatpush.bf16.msrb.mxu3 %v5265_v19 }
  0x5a   :  { %v5888_v16 = vld [vmem:[#allocation4 + $0xbe0] sm:$0xf]  ;;  %v6924_v17 = vld [vmem:[#allocation4 + $0xbec] sm:$0xf0]  ;;  %v5761_v26 = vor.u32 %v6892_v12, %v5760_v11  ;;  %3279 = vmatmul.bf16.vlgmr.msrb.gmra.mxu1 %v7296_v40 }
  0x5b   :  { %v98_v18 = vld [vmem:[#allocation2 + $0x30] sm:$0xff]  ;;  %v5488_v21 = vld [vmem:[#allocation4 + $0x8c0] sm:$0xf]  ;;  %v5889_v30 = vor.u32 %v6924_v17, %v5888_v16  ;;  %3310 = vmatpush.bf16.msra.mxu0 %v5505_v20  ;;  %3323 = vmatpush.bf16.msra.mxu1 %v5633_v24 }
  0x5c   :  { %v96_v22 = vld [vmem:[#allocation2 + $0x20] sm:$0xff]  ;;  %v6824_v27 = vld [vmem:[#allocation4 + $0x8cc] sm:$0xf0]  ;;  %v7290_v34 = vpack.c.bf16 %v98_v18, %v98_v18  ;;  %3336 = vmatpush.bf16.msra.mxu2 %v5761_v26  ;;  %3305 = vmatmul.bf16.vlgmr.msrb.gmra.mxu3 %v7294_v38 }
  0x5d   :  { %v5616_v28 = vld [vmem:[#allocation4 + $0x9c0] sm:$0xf]  ;;  %v6856_v31 = vld [vmem:[#allocation4 + $0x9cc] sm:$0xf0]  ;;  %v7292_v37 = vpack.c.bf16 %v96_v22, %v96_v22  ;;  %v5489_v39 = vor.u32 %v6824_v27, %v5488_v21  ;;  %3349 = vmatpush.bf16.msra.mxu3 %v5889_v30 }
  0x5e   :  { %v5744_v32 = vld [vmem:[#allocation4 + $0xac0] sm:$0xf]  ;;  %v6888_v33 = vld [vmem:[#allocation4 + $0xacc] sm:$0xf0]  ;;  %v5617_v41 = vor.u32 %v6856_v31, %v5616_v28  ;;  %3292 = vmatmul.bf16.vlgmr.msrb.gmra.mxu2 %v7290_v34 }
  0x5f   :  { %v5872_v35 = vld [vmem:[#allocation4 + $0xbc0] sm:$0xf]  ;;  %v6920_v36 = vld [vmem:[#allocation4 + $0xbcc] sm:$0xf0]  ;;  %v5745_v42 = vor.u32 %v6888_v33, %v5744_v32  ;;  %3266 = vmatmul.bf16.vlgmr.msrb.gmra.mxu0 %v7292_v37 }
  0x60   :  { %v5472_v43 = vld [vmem:[#allocation4 + $0x8a0] sm:$0xf]  ;;  %v6820_v44 = vld [vmem:[#allocation4 + $0x8ac] sm:$0xf0]  ;;  %v5873_v46 = vor.u32 %v6920_v36, %v5872_v35  ;;  %3311 = vmatpush.bf16.msra.mxu0 %v5489_v39  ;;  %3324 = vmatpush.bf16.msra.mxu1 %v5617_v41 }
  0x61   :  { %v5600_v45 = vld [vmem:[#allocation4 + $0x9a0] sm:$0xf]  ;;  %v6852_v47 = vld [vmem:[#allocation4 + $0x9ac] sm:$0xf0]  ;;  %v5473_v52 = vor.u32 %v6820_v44, %v5472_v43  ;;  %3337 = vmatpush.bf16.msra.mxu2 %v5745_v42 }
  0x62   :  { %v5728_v48 = vld [vmem:[#allocation4 + $0xaa0] sm:$0xf]  ;;  %v6884_v49 = vld [vmem:[#allocation4 + $0xaac] sm:$0xf0]  ;;  %v5601_v53 = vor.u32 %v6852_v47, %v5600_v45  ;;  %3350 = vmatpush.bf16.msra.mxu3 %v5873_v46 }
  0x63   :  { %v5856_v50 = vld [vmem:[#allocation4 + $0xba0] sm:$0xf]  ;;  %v6916_v51 = vld [vmem:[#allocation4 + $0xbac] sm:$0xf0]  ;;  %v5729_v54 = vor.u32 %v6884_v49, %v5728_v48 }
  0x64   :  { %v5456_v55 = vld [vmem:[#allocation4 + $0x880] sm:$0xf]  ;;  %v6816_v56 = vld [vmem:[#allocation4 + $0x88c] sm:$0xf0]  ;;  %v5857_v58 = vor.u32 %v6916_v51, %v5856_v50  ;;  %3312 = vmatpush.bf16.msra.mxu0 %v5473_v52  ;;  %3325 = vmatpush.bf16.msra.mxu1 %v5601_v53 }
  0x65   :  { %v5584_v57 = vld [vmem:[#allocation4 + $0x980] sm:$0xf]  ;;  %v6848_v59 = vld [vmem:[#allocation4 + $0x98c] sm:$0xf0]  ;;  %v5457_v0 = vor.u32 %v6816_v56, %v5456_v55  ;;  %3338 = vmatpush.bf16.msra.mxu2 %v5729_v54 }
  0x66   :  { %v5712_v60 = vld [vmem:[#allocation4 + $0xa80] sm:$0xf]  ;;  %v6880_v61 = vld [vmem:[#allocation4 + $0xa8c] sm:$0xf0]  ;;  %v5585_v1 = vor.u32 %v6848_v59, %v5584_v57  ;;  %3351 = vmatpush.bf16.msra.mxu3 %v5857_v58 }
  0x67   :  { %v5840_v62 = vld [vmem:[#allocation4 + $0xb80] sm:$0xf]  ;;  %v6912_v63 = vld [vmem:[#allocation4 + $0xb8c] sm:$0xf0]  ;;  %v5713_v2 = vor.u32 %v6880_v61, %v5712_v60 }
  0x68   :  { %v5440_v3 = vld [vmem:[#allocation4 + $0x860] sm:$0xf]  ;;  %v6812_v4 = vld [vmem:[#allocation4 + $0x86c] sm:$0xf0]  ;;  %v5841_v6 = vor.u32 %v6912_v63, %v5840_v62  ;;  %3313 = vmatpush.bf16.msra.mxu0 %v5457_v0  ;;  %3326 = vmatpush.bf16.msra.mxu1 %v5585_v1 }
  0x69   :  { %v5568_v5 = vld [vmem:[#allocation4 + $0x960] sm:$0xf]  ;;  %v6844_v7 = vld [vmem:[#allocation4 + $0x96c] sm:$0xf0]  ;;  %v5441_v14 = vor.u32 %v6812_v4, %v5440_v3  ;;  %3339 = vmatpush.bf16.msra.mxu2 %v5713_v2 }
  0x6a   :  { %v5696_v10 = vld [vmem:[#allocation4 + $0xa60] sm:$0xf]  ;;  %v6876_v11 = vld [vmem:[#allocation4 + $0xa6c] sm:$0xf0]  ;;  %v5569_v16 = vor.u32 %v6844_v7, %v5568_v5  ;;  %3352 = vmatpush.bf16.msra.mxu3 %v5841_v6  ;;  %v101_v7 = vld [vmem:[#allocation2 + $0x48] sm:$0xff] }
  0x6b   :  { %v5824_v12 = vld [vmem:[#allocation4 + $0xb60] sm:$0xf]  ;;  %v6908_v13 = vld [vmem:[#allocation4 + $0xb6c] sm:$0xf0]  ;;  %v5697_v17 = vor.u32 %v6876_v11, %v5696_v10  ;;  %v103_v10 = vld [vmem:[#allocation2 + $0x58] sm:$0xff] }
  0x6c   :  { %v5424_v18 = vld [vmem:[#allocation4 + $0x840] sm:$0xf]  ;;  %v6808_v19 = vld [vmem:[#allocation4 + $0x84c] sm:$0xf0]  ;;  %v5825_v21 = vor.u32 %v6908_v13, %v5824_v12  ;;  %3314 = vmatpush.bf16.msra.mxu0 %v5441_v14  ;;  %3327 = vmatpush.bf16.msra.mxu1 %v5569_v16 }
  0x6d   :  { %v5552_v20 = vld [vmem:[#allocation4 + $0x940] sm:$0xf]  ;;  %v6840_v22 = vld [vmem:[#allocation4 + $0x94c] sm:$0xf0]  ;;  %v5425_v28 = vor.u32 %v6808_v19, %v5424_v18  ;;  %3340 = vmatpush.bf16.msra.mxu2 %v5697_v17 }
  0x6e   :  { %v5680_v23 = vld [vmem:[#allocation4 + $0xa40] sm:$0xf]  ;;  %v6872_v24 = vld [vmem:[#allocation4 + $0xa4c] sm:$0xf0]  ;;  %v5553_v29 = vor.u32 %v6840_v22, %v5552_v20  ;;  %3353 = vmatpush.bf16.msra.mxu3 %v5825_v21 }
  0x6f   :  { %v5808_v26 = vld [vmem:[#allocation4 + $0xb40] sm:$0xf]  ;;  %v6904_v27 = vld [vmem:[#allocation4 + $0xb4c] sm:$0xf0]  ;;  %v5681_v30 = vor.u32 %v6872_v24, %v5680_v23  ;;  %v7306_v23 = vpack.c.bf16 %v101_v7, %v101_v7 }
  0x70   :  { %v5408_v31 = vld [vmem:[#allocation4 + $0x820] sm:$0xf]  ;;  %v6804_v32 = vld [vmem:[#allocation4 + $0x82c] sm:$0xf0]  ;;  %v5809_v35 = vor.u32 %v6904_v27, %v5808_v26  ;;  %3315 = vmatpush.bf16.msra.mxu0 %v5425_v28  ;;  %3328 = vmatpush.bf16.msra.mxu1 %v5553_v29  ;;  %v7308_v27 = vpack.c.bf16 %v103_v10, %v103_v10 }
  0x71   :  { %v5536_v33 = vld [vmem:[#allocation4 + $0x920] sm:$0xf]  ;;  %v6836_v36 = vld [vmem:[#allocation4 + $0x92c] sm:$0xf0]  ;;  %v5409_v44 = vor.u32 %v6804_v32, %v5408_v31  ;;  %3341 = vmatpush.bf16.msra.mxu2 %v5681_v30 }
  0x72   :  { %v5664_v39 = vld [vmem:[#allocation4 + $0xa20] sm:$0xf]  ;;  %v6868_v41 = vld [vmem:[#allocation4 + $0xa2c] sm:$0xf0]  ;;  %v5537_v48 = vor.u32 %v6836_v36, %v5536_v33  ;;  %3354 = vmatpush.bf16.msra.mxu3 %v5809_v35 }
  0x73   :  { %v5792_v42 = vld [vmem:[#allocation4 + $0xb20] sm:$0xf]  ;;  %v6900_v43 = vld [vmem:[#allocation4 + $0xb2c] sm:$0xf0]  ;;  %v5665_v49 = vor.u32 %v6868_v41, %v5664_v39 }
  0x74   :  { %v5392_v45 = vld [vmem:[#allocation4 + $0x800] sm:$0xf]  ;;  %v6800_v46 = vld [vmem:[#allocation4 + $0x80c] sm:$0xf0]  ;;  %v5793_v53 = vor.u32 %v6900_v43, %v5792_v42  ;;  %3316 = vmatpush.bf16.msra.mxu0 %v5409_v44  ;;  %3329 = vmatpush.bf16.msra.mxu1 %v5537_v48 }
  0x75   :  { %v5520_v47 = vld [vmem:[#allocation4 + $0x900] sm:$0xf]  ;;  %v6832_v50 = vld [vmem:[#allocation4 + $0x90c] sm:$0xf0]  ;;  %v5393_v59 = vor.u32 %v6800_v46, %v5392_v45  ;;  %3342 = vmatpush.bf16.msra.mxu2 %v5665_v49 }
  0x76   :  { %v5648_v51 = vld [vmem:[#allocation4 + $0xa00] sm:$0xf]  ;;  %v6864_v52 = vld [vmem:[#allocation4 + $0xa0c] sm:$0xf0]  ;;  %v5521_v63 = vor.u32 %v6832_v50, %v5520_v47  ;;  %3355 = vmatpush.bf16.msra.mxu3 %v5793_v53 }
  0x77   :  { %v5776_v54 = vld [vmem:[#allocation4 + $0xb00] sm:$0xf]  ;;  %v6896_v55 = vld [vmem:[#allocation4 + $0xb0c] sm:$0xf0]  ;;  %v5649_v0 = vor.u32 %v6864_v52, %v5648_v51 }
  0x78   :  { %v6016_v56 = vld [vmem:[#allocation4 + $0xce0] sm:$0xf]  ;;  %v6956_v57 = vld [vmem:[#allocation4 + $0xcec] sm:$0xf0]  ;;  %v5777_v4 = vor.u32 %v6896_v55, %v5776_v54  ;;  %3317 = vmatpush.bf16.msra.mxu0 %v5393_v59  ;;  %3330 = vmatpush.bf16.msra.mxu1 %v5521_v63 }
  0x79   :  { %v6144_v58 = vld [vmem:[#allocation4 + $0xde0] sm:$0xf]  ;;  %v6988_v60 = vld [vmem:[#allocation4 + $0xdec] sm:$0xf0]  ;;  %v6017_v5 = vor.u32 %v6956_v57, %v6016_v56  ;;  %3343 = vmatpush.bf16.msra.mxu2 %v5649_v0 }
  0x7a   :  { %v6272_v61 = vld [vmem:[#allocation4 + $0xee0] sm:$0xf]  ;;  %v7020_v62 = vld [vmem:[#allocation4 + $0xeec] sm:$0xf0]  ;;  %v6145_v11 = vor.u32 %v6988_v60, %v6144_v58  ;;  %3356 = vmatpush.bf16.msra.mxu3 %v5777_v4 }
  0x7b   :  { %v6400_v1 = vld [vmem:[#allocation4 + $0xfe0] sm:$0xf]  ;;  %v7052_v2 = vld [vmem:[#allocation4 + $0xfec] sm:$0xf0]  ;;  %v6273_v12 = vor.u32 %v7020_v62, %v6272_v61  ;;  %3331 = vmatmul.bf16.vlgmr.msra.gmra.mxu1 %v7306_v23 }
  0x7c   :  { %v100_v3 = vld [vmem:[#allocation2 + $0x40] sm:$0xff]  ;;  %v102_v6 = vld [vmem:[#allocation2 + $0x50] sm:$0xff]  ;;  %v6401_v17 = vor.u32 %v7052_v2, %v6400_v1  ;;  %3362 = vmatpush.bf16.msrb.mxu0 %v6017_v5  ;;  %3375 = vmatpush.bf16.msrb.mxu1 %v6145_v11 }
  0x7d   :  { %v6000_v13 = vld [vmem:[#allocation4 + $0xcc0] sm:$0xf]  ;;  %v6952_v14 = vld [vmem:[#allocation4 + $0xccc] sm:$0xf0]  ;;  %v7302_v18 = vpack.c.bf16 %v100_v3, %v100_v3  ;;  %v7304_v22 = vpack.c.bf16 %v102_v6, %v102_v6  ;;  %3388 = vmatpush.bf16.msrb.mxu2 %v6273_v12  ;;  %3357 = vmatmul.bf16.vlgmr.msra.gmra.mxu3 %v7308_v27 }
  0x7e   :  { %v6128_v16 = vld [vmem:[#allocation4 + $0xdc0] sm:$0xf]  ;;  %v6984_v19 = vld [vmem:[#allocation4 + $0xdcc] sm:$0xf0]  ;;  %v6001_v28 = vor.u32 %v6952_v14, %v6000_v13  ;;  %3401 = vmatpush.bf16.msrb.mxu3 %v6401_v17 }
  0x7f   :  { %v6256_v20 = vld [vmem:[#allocation4 + $0xec0] sm:$0xf]  ;;  %v7016_v21 = vld [vmem:[#allocation4 + $0xecc] sm:$0xf0]  ;;  %v6129_v29 = vor.u32 %v6984_v19, %v6128_v16  ;;  %3318 = vmatmul.bf16.vlgmr.msra.gmra.mxu0 %v7302_v18  ;;  %3344 = vmatmul.bf16.vlgmr.msra.gmra.mxu2 %v7304_v22 }
  0x80   :  { %v6384_v24 = vld [vmem:[#allocation4 + $0xfc0] sm:$0xf]  ;;  %v7048_v26 = vld [vmem:[#allocation4 + $0xfcc] sm:$0xf0]  ;;  %v6257_v30 = vor.u32 %v7016_v21, %v6256_v20  ;;  %3363 = vmatpush.bf16.msrb.mxu0 %v6001_v28 }
  0x81   :  { %v5984_v31 = vld [vmem:[#allocation4 + $0xca0] sm:$0xf]  ;;  %v6948_v32 = vld [vmem:[#allocation4 + $0xcac] sm:$0xf0]  ;;  %v6385_v35 = vor.u32 %v7048_v26, %v6384_v24  ;;  %3376 = vmatpush.bf16.msrb.mxu1 %v6129_v29 }
  0x82   :  { %v6112_v33 = vld [vmem:[#allocation4 + $0xda0] sm:$0xf]  ;;  %v6980_v36 = vld [vmem:[#allocation4 + $0xdac] sm:$0xf0]  ;;  %v5985_v44 = vor.u32 %v6948_v32, %v5984_v31  ;;  %3389 = vmatpush.bf16.msrb.mxu2 %v6257_v30 }
  0x83   :  { %v6240_v39 = vld [vmem:[#allocation4 + $0xea0] sm:$0xf]  ;;  %v7012_v41 = vld [vmem:[#allocation4 + $0xeac] sm:$0xf0]  ;;  %v6113_v45 = vor.u32 %v6980_v36, %v6112_v33  ;;  %3402 = vmatpush.bf16.msrb.mxu3 %v6385_v35 }
  0x84   :  { %v6368_v42 = vld [vmem:[#allocation4 + $0xfa0] sm:$0xf]  ;;  %v7044_v43 = vld [vmem:[#allocation4 + $0xfac] sm:$0xf0]  ;;  %v6241_v46 = vor.u32 %v7012_v41, %v6240_v39  ;;  %3364 = vmatpush.bf16.msrb.mxu0 %v5985_v44 }
  0x85   :  { %v5968_v47 = vld [vmem:[#allocation4 + $0xc80] sm:$0xf]  ;;  %v6944_v48 = vld [vmem:[#allocation4 + $0xc8c] sm:$0xf0]  ;;  %v6369_v50 = vor.u32 %v7044_v43, %v6368_v42  ;;  %3377 = vmatpush.bf16.msrb.mxu1 %v6113_v45 }
  0x86   :  { %v6096_v49 = vld [vmem:[#allocation4 + $0xd80] sm:$0xf]  ;;  %v6976_v51 = vld [vmem:[#allocation4 + $0xd8c] sm:$0xf0]  ;;  %v5969_v56 = vor.u32 %v6944_v48, %v5968_v47  ;;  %3390 = vmatpush.bf16.msrb.mxu2 %v6241_v46 }
  0x87   :  { %v6224_v52 = vld [vmem:[#allocation4 + $0xe80] sm:$0xf]  ;;  %v7008_v53 = vld [vmem:[#allocation4 + $0xe8c] sm:$0xf0]  ;;  %v6097_v57 = vor.u32 %v6976_v51, %v6096_v49  ;;  %3403 = vmatpush.bf16.msrb.mxu3 %v6369_v50 }
  0x88   :  { %v6352_v54 = vld [vmem:[#allocation4 + $0xf80] sm:$0xf]  ;;  %v7040_v55 = vld [vmem:[#allocation4 + $0xf8c] sm:$0xf0]  ;;  %v6225_v58 = vor.u32 %v7008_v53, %v6224_v52  ;;  %3365 = vmatpush.bf16.msrb.mxu0 %v5969_v56  ;;  %v6570_v52 = vld [vmem:[#allocation4 + $0xe4] sm:$0xf] }
  0x89   :  { %v5952_v59 = vld [vmem:[#allocation4 + $0xc60] sm:$0xf]  ;;  %v6940_v60 = vld [vmem:[#allocation4 + $0xc6c] sm:$0xf0]  ;;  %v6353_v62 = vor.u32 %v7040_v55, %v6352_v54  ;;  %3378 = vmatpush.bf16.msrb.mxu1 %v6097_v57  ;;  %v4482_v53 = vld [vmem:[#allocation4 + $0xf0] sm:$0xf0] }
  0x8a   :  { %v6080_v61 = vld [vmem:[#allocation4 + $0xd60] sm:$0xf]  ;;  %v6972_v63 = vld [vmem:[#allocation4 + $0xd6c] sm:$0xf0]  ;;  %v5953_v4 = vor.u32 %v6940_v60, %v5952_v59  ;;  %3391 = vmatpush.bf16.msrb.mxu2 %v6225_v58  ;;  %v6602_v54 = vld [vmem:[#allocation4 + $0x1e4] sm:$0xf] }
  0x8b   :  { %v6208_v0 = vld [vmem:[#allocation4 + $0xe60] sm:$0xf]  ;;  %v7004_v1 = vld [vmem:[#allocation4 + $0xe6c] sm:$0xf0]  ;;  %v6081_v5 = vor.u32 %v6972_v63, %v6080_v61  ;;  %3404 = vmatpush.bf16.msrb.mxu3 %v6353_v62  ;;  %v4610_v56 = vld [vmem:[#allocation4 + $0x1f0] sm:$0xf0] }
  0x8c   :  { %v6336_v2 = vld [vmem:[#allocation4 + $0xf60] sm:$0xf]  ;;  %v7036_v3 = vld [vmem:[#allocation4 + $0xf6c] sm:$0xf0]  ;;  %v6209_v6 = vor.u32 %v7004_v1, %v6208_v0  ;;  %3366 = vmatpush.bf16.msrb.mxu0 %v5953_v4  ;;  %v6634_v57 = vld [vmem:[#allocation4 + $0x2e4] sm:$0xf]  ;;  %v4485_v1 = vor.u32 %v6570_v52, %v4482_v53 }
  0x8d   :  { %v5936_v7 = vld [vmem:[#allocation4 + $0xc40] sm:$0xf]  ;;  %v6936_v10 = vld [vmem:[#allocation4 + $0xc4c] sm:$0xf0]  ;;  %v6337_v12 = vor.u32 %v7036_v3, %v6336_v2  ;;  %3379 = vmatpush.bf16.msrb.mxu1 %v6081_v5  ;;  %v4738_v58 = vld [vmem:[#allocation4 + $0x2f0] sm:$0xf0]  ;;  %v4613_v5 = vor.u32 %v6602_v54, %v4610_v56 }
  0x8e   :  { %v6064_v11 = vld [vmem:[#allocation4 + $0xd40] sm:$0xf]  ;;  %v6968_v13 = vld [vmem:[#allocation4 + $0xd4c] sm:$0xf0]  ;;  %v5937_v20 = vor.u32 %v6936_v10, %v5936_v7  ;;  %3392 = vmatpush.bf16.msrb.mxu2 %v6209_v6  ;;  %v6666_v61 = vld [vmem:[#allocation4 + $0x3e4] sm:$0xf]  ;;  %v4741_v6 = vor.u32 %v6634_v57, %v4738_v58 }
  0x8f   :  { %v6192_v14 = vld [vmem:[#allocation4 + $0xe40] sm:$0xf]  ;;  %v7000_v16 = vld [vmem:[#allocation4 + $0xe4c] sm:$0xf0]  ;;  %v6065_v21 = vor.u32 %v6968_v13, %v6064_v11  ;;  %3405 = vmatpush.bf16.msrb.mxu3 %v6337_v12  ;;  %v4866_v62 = vld [vmem:[#allocation4 + $0x3f0] sm:$0xf0] }
  0x90   :  { %v6320_v17 = vld [vmem:[#allocation4 + $0xf40] sm:$0xf]  ;;  %v7032_v19 = vld [vmem:[#allocation4 + $0xf4c] sm:$0xf0]  ;;  %v6193_v24 = vor.u32 %v7000_v16, %v6192_v14  ;;  %3367 = vmatpush.bf16.msrb.mxu0 %v5937_v20  ;;  %v105_v3 = vld [vmem:[#allocation2 + $0x68] sm:$0xff]  ;;  %v4869_v12 = vor.u32 %v6666_v61, %v4866_v62 }
  0x91   :  { %v5920_v26 = vld [vmem:[#allocation4 + $0xc20] sm:$0xf]  ;;  %v6932_v28 = vld [vmem:[#allocation4 + $0xc2c] sm:$0xf0]  ;;  %v6321_v30 = vor.u32 %v7032_v19, %v6320_v17  ;;  %3380 = vmatpush.bf16.msrb.mxu1 %v6065_v21  ;;  %v107_v4 = vld [vmem:[#allocation2 + $0x78] sm:$0xff]  ;;  %v7318_v20 = vpack.c.bf16 %v105_v3, %v105_v3 }
  0x92   :  { %v6048_v29 = vld [vmem:[#allocation4 + $0xd20] sm:$0xf]  ;;  %v6964_v31 = vld [vmem:[#allocation4 + $0xd2c] sm:$0xf0]  ;;  %v5921_v39 = vor.u32 %v6932_v28, %v5920_v26  ;;  %3393 = vmatpush.bf16.msrb.mxu2 %v6193_v24  ;;  %v6566_v7 = vld [vmem:[#allocation4 + $0xc4] sm:$0xf]  ;;  %v7320_v26 = vpack.c.bf16 %v107_v4, %v107_v4 }
  0x93   :  { %v6176_v32 = vld [vmem:[#allocation4 + $0xe20] sm:$0xf]  ;;  %v6996_v33 = vld [vmem:[#allocation4 + $0xe2c] sm:$0xf0]  ;;  %v6049_v43 = vor.u32 %v6964_v31, %v6048_v29  ;;  %3406 = vmatpush.bf16.msrb.mxu3 %v6321_v30  ;;  %v4466_v10 = vld [vmem:[#allocation4 + $0xd0] sm:$0xf0] }
  0x94   :  { %v6304_v35 = vld [vmem:[#allocation4 + $0xf20] sm:$0xf]  ;;  %v7028_v36 = vld [vmem:[#allocation4 + $0xf2c] sm:$0xf0]  ;;  %v6177_v44 = vor.u32 %v6996_v33, %v6176_v32  ;;  %3368 = vmatpush.bf16.msrb.mxu0 %v5921_v39  ;;  %v6598_v11 = vld [vmem:[#allocation4 + $0x1c4] sm:$0xf]  ;;  %v4469_v28 = vor.u32 %v6566_v7, %v4466_v10 }
  0x95   :  { %v5904_v41 = vld [vmem:[#allocation4 + $0xc00] sm:$0xf]  ;;  %v6928_v42 = vld [vmem:[#allocation4 + $0xc0c] sm:$0xf0]  ;;  %v6305_v48 = vor.u32 %v7028_v36, %v6304_v35  ;;  %3381 = vmatpush.bf16.msrb.mxu1 %v6049_v43  ;;  %v4594_v14 = vld [vmem:[#allocation4 + $0x1d0] sm:$0xf0] }
  0x96   :  { %v6032_v45 = vld [vmem:[#allocation4 + $0xd00] sm:$0xf]  ;;  %v6960_v46 = vld [vmem:[#allocation4 + $0xd0c] sm:$0xf0]  ;;  %v5905_v55 = vor.u32 %v6928_v42, %v5904_v41  ;;  %3394 = vmatpush.bf16.msrb.mxu2 %v6177_v44  ;;  %v6630_v16 = vld [vmem:[#allocation4 + $0x2c4] sm:$0xf]  ;;  %v4597_v29 = vor.u32 %v6598_v11, %v4594_v14 }
  0x97   :  { %v6160_v47 = vld [vmem:[#allocation4 + $0xe00] sm:$0xf]  ;;  %v6992_v49 = vld [vmem:[#allocation4 + $0xe0c] sm:$0xf0]  ;;  %v6033_v59 = vor.u32 %v6960_v46, %v6032_v45  ;;  %3407 = vmatpush.bf16.msrb.mxu3 %v6305_v48  ;;  %v4722_v17 = vld [vmem:[#allocation4 + $0x2d0] sm:$0xf0] }
  0x98   :  { %v6288_v50 = vld [vmem:[#allocation4 + $0xf00] sm:$0xf]  ;;  %v7024_v51 = vld [vmem:[#allocation4 + $0xf0c] sm:$0xf0]  ;;  %v6161_v60 = vor.u32 %v6992_v49, %v6160_v47  ;;  %3369 = vmatpush.bf16.msrb.mxu0 %v5905_v55  ;;  %v6662_v21 = vld [vmem:[#allocation4 + $0x3c4] sm:$0xf]  ;;  %v4725_v30 = vor.u32 %v6630_v16, %v4722_v17 }
  0x99   :  { %v104_v63 = vld [vmem:[#allocation2 + $0x60] sm:$0xff]  ;;  %v6289_v0 = vor.u32 %v7024_v51, %v6288_v50  ;;  %v106_v2 = vld [vmem:[#allocation2 + $0x70] sm:$0xff]  ;;  %3382 = vmatpush.bf16.msrb.mxu1 %v6033_v59 }
  0x9a   :  { %v7314_v13 = vpack.c.bf16 %v104_v63, %v104_v63  ;;  %3395 = vmatpush.bf16.msrb.mxu2 %v6161_v60  ;;  %v7316_v19 = vpack.c.bf16 %v106_v2, %v106_v2  ;;  %v4850_v24 = vld [vmem:[#allocation4 + $0x3d0] sm:$0xf0]  ;;  %v6562_v31 = vld [vmem:[#allocation4 + $0xa4] sm:$0xf] }
  0x9b   :  { %3408 = vmatpush.bf16.msrb.mxu3 %v6289_v0  ;;  %v4450_v32 = vld [vmem:[#allocation4 + $0xb0] sm:$0xf0]  ;;  %v6594_v33 = vld [vmem:[#allocation4 + $0x1a4] sm:$0xf]  ;;  %v4853_v35 = vor.u32 %v6662_v21, %v4850_v24 }
  0x9c   :  { %3414 = vmatpush.bf16.msra.mxu0 %v4485_v1  ;;  %v4578_v36 = vld [vmem:[#allocation4 + $0x1b0] sm:$0xf0]  ;;  %v6626_v39 = vld [vmem:[#allocation4 + $0x2a4] sm:$0xf]  ;;  %3383 = vmatmul.bf16.vlgmr.msrb.gmra.mxu1 %v7318_v20  ;;  %v4453_v44 = vor.u32 %v6562_v31, %v4450_v32 }
  0x9d   :  { %3427 = vmatpush.bf16.msra.mxu1 %v4613_v5  ;;  %3370 = vmatmul.bf16.vlgmr.msrb.gmra.mxu0 %v7314_v13  ;;  %v4706_v41 = vld [vmem:[#allocation4 + $0x2b0] sm:$0xf0]  ;;  %v6658_v42 = vld [vmem:[#allocation4 + $0x3a4] sm:$0xf]  ;;  %v4581_v45 = vor.u32 %v6594_v33, %v4578_v36 }
  0x9e   :  { %3440 = vmatpush.bf16.msra.mxu2 %v4741_v6  ;;  %v4834_v43 = vld [vmem:[#allocation4 + $0x3b0] sm:$0xf0]  ;;  %3409 = vmatmul.bf16.vlgmr.msrb.gmra.mxu3 %v7320_v26  ;;  %v4709_v46 = vor.u32 %v6626_v39, %v4706_v41  ;;  %v6558_v47 = vld [vmem:[#allocation4 + $0x84] sm:$0xf] }
  0x9f   :  { %3453 = vmatpush.bf16.msra.mxu3 %v4869_v12  ;;  %3396 = vmatmul.bf16.vlgmr.msrb.gmra.mxu2 %v7316_v19  ;;  %v4434_v48 = vld [vmem:[#allocation4 + $0x90] sm:$0xf0]  ;;  %v6590_v49 = vld [vmem:[#allocation4 + $0x184] sm:$0xf]  ;;  %v4837_v50 = vor.u32 %v6658_v42, %v4834_v43 }
  0xa0   :  { %3415 = vmatpush.bf16.msra.mxu0 %v4469_v28  ;;  %v4562_v51 = vld [vmem:[#allocation4 + $0x190] sm:$0xf0]  ;;  %v6622_v52 = vld [vmem:[#allocation4 + $0x284] sm:$0xf]  ;;  %v4437_v56 = vor.u32 %v6558_v47, %v4434_v48 }
  0xa1   :  { %3428 = vmatpush.bf16.msra.mxu1 %v4597_v29  ;;  %v4690_v53 = vld [vmem:[#allocation4 + $0x290] sm:$0xf0]  ;;  %v6654_v54 = vld [vmem:[#allocation4 + $0x384] sm:$0xf]  ;;  %v4565_v57 = vor.u32 %v6590_v49, %v4562_v51 }
  0xa2   :  { %3441 = vmatpush.bf16.msra.mxu2 %v4725_v30  ;;  %v4818_v55 = vld [vmem:[#allocation4 + $0x390] sm:$0xf0]  ;;  %v4693_v58 = vor.u32 %v6622_v52, %v4690_v53  ;;  %v6554_v59 = vld [vmem:[#allocation4 + $0x64] sm:$0xf] }
  0xa3   :  { %3454 = vmatpush.bf16.msra.mxu3 %v4853_v35  ;;  %v4418_v60 = vld [vmem:[#allocation4 + $0x70] sm:$0xf0]  ;;  %v6586_v61 = vld [vmem:[#allocation4 + $0x164] sm:$0xf]  ;;  %v4821_v62 = vor.u32 %v6654_v54, %v4818_v55 }
  0xa4   :  { %3416 = vmatpush.bf16.msra.mxu0 %v4453_v44  ;;  %v4546_v63 = vld [vmem:[#allocation4 + $0x170] sm:$0xf0]  ;;  %v6618_v0 = vld [vmem:[#allocation4 + $0x264] sm:$0xf]  ;;  %v4421_v4 = vor.u32 %v6554_v59, %v4418_v60 }
  0xa5   :  { %3429 = vmatpush.bf16.msra.mxu1 %v4581_v45  ;;  %v4674_v1 = vld [vmem:[#allocation4 + $0x270] sm:$0xf0]  ;;  %v6650_v2 = vld [vmem:[#allocation4 + $0x364] sm:$0xf]  ;;  %v4549_v5 = vor.u32 %v6586_v61, %v4546_v63 }
  0xa6   :  { %3442 = vmatpush.bf16.msra.mxu2 %v4709_v46  ;;  %v4802_v3 = vld [vmem:[#allocation4 + $0x370] sm:$0xf0]  ;;  %v4677_v6 = vor.u32 %v6618_v0, %v4674_v1  ;;  %v6550_v7 = vld [vmem:[#allocation4 + $0x44] sm:$0xf] }
  0xa7   :  { %3455 = vmatpush.bf16.msra.mxu3 %v4837_v50  ;;  %v4402_v10 = vld [vmem:[#allocation4 + $0x50] sm:$0xf0]  ;;  %v6582_v11 = vld [vmem:[#allocation4 + $0x144] sm:$0xf]  ;;  %v4805_v12 = vor.u32 %v6650_v2, %v4802_v3 }
  0xa8   :  { %3417 = vmatpush.bf16.msra.mxu0 %v4437_v56  ;;  %v4530_v14 = vld [vmem:[#allocation4 + $0x150] sm:$0xf0]  ;;  %v6614_v16 = vld [vmem:[#allocation4 + $0x244] sm:$0xf]  ;;  %v4405_v28 = vor.u32 %v6550_v7, %v4402_v10 }
  0xa9   :  { %3430 = vmatpush.bf16.msra.mxu1 %v4565_v57  ;;  %v4658_v17 = vld [vmem:[#allocation4 + $0x250] sm:$0xf0]  ;;  %v6646_v21 = vld [vmem:[#allocation4 + $0x344] sm:$0xf]  ;;  %v4533_v29 = vor.u32 %v6582_v11, %v4530_v14 }
  0xaa   :  { %3443 = vmatpush.bf16.msra.mxu2 %v4693_v58  ;;  %v4786_v24 = vld [vmem:[#allocation4 + $0x350] sm:$0xf0]  ;;  %v4661_v30 = vor.u32 %v6614_v16, %v4658_v17  ;;  %v6546_v31 = vld [vmem:[#allocation4 + $0x24] sm:$0xf] }
  0xab   :  { %3456 = vmatpush.bf16.msra.mxu3 %v4821_v62  ;;  %v4386_v32 = vld [vmem:[#allocation4 + $0x30] sm:$0xf0]  ;;  %v6578_v33 = vld [vmem:[#allocation4 + $0x124] sm:$0xf]  ;;  %v4789_v35 = vor.u32 %v6646_v21, %v4786_v24 }
  0xac   :  { %3418 = vmatpush.bf16.msra.mxu0 %v4421_v4  ;;  %v4514_v36 = vld [vmem:[#allocation4 + $0x130] sm:$0xf0]  ;;  %v6610_v39 = vld [vmem:[#allocation4 + $0x224] sm:$0xf]  ;;  %v4389_v44 = vor.u32 %v6546_v31, %v4386_v32 }
  0xad   :  { %3431 = vmatpush.bf16.msra.mxu1 %v4549_v5  ;;  %v4642_v41 = vld [vmem:[#allocation4 + $0x230] sm:$0xf0]  ;;  %v6642_v42 = vld [vmem:[#allocation4 + $0x324] sm:$0xf]  ;;  %v4517_v47 = vor.u32 %v6578_v33, %v4514_v36 }
  0xae   :  { %3444 = vmatpush.bf16.msra.mxu2 %v4677_v6  ;;  %v4770_v43 = vld [vmem:[#allocation4 + $0x330] sm:$0xf0]  ;;  %v6542_v45 = vld [vmem:[#allocation4 + $0x4] sm:$0xf]  ;;  %v4645_v48 = vor.u32 %v6610_v39, %v4642_v41 }
  0xaf   :  { %3457 = vmatpush.bf16.msra.mxu3 %v4805_v12  ;;  %v4370_v46 = vld [vmem:[#allocation4 + $0x10] sm:$0xf0]  ;;  %v6574_v49 = vld [vmem:[#allocation4 + $0x104] sm:$0xf]  ;;  %v4773_v52 = vor.u32 %v6642_v42, %v4770_v43 }
  0xb0   :  { %3419 = vmatpush.bf16.msra.mxu0 %v4405_v28  ;;  %v4498_v50 = vld [vmem:[#allocation4 + $0x110] sm:$0xf0]  ;;  %v6606_v51 = vld [vmem:[#allocation4 + $0x204] sm:$0xf]  ;;  %v4373_v59 = vor.u32 %v6542_v45, %v4370_v46 }
  0xb1   :  { %3432 = vmatpush.bf16.msra.mxu1 %v4533_v29  ;;  %v4626_v53 = vld [vmem:[#allocation4 + $0x210] sm:$0xf0]  ;;  %v6638_v54 = vld [vmem:[#allocation4 + $0x304] sm:$0xf]  ;;  %v4501_v63 = vor.u32 %v6574_v49, %v4498_v50 }
  0xb2   :  { %3445 = vmatpush.bf16.msra.mxu2 %v4661_v30  ;;  %v4754_v55 = vld [vmem:[#allocation4 + $0x310] sm:$0xf0]  ;;  %v6698_v56 = vld [vmem:[#allocation4 + $0x4e4] sm:$0xf]  ;;  %v4629_v0 = vor.u32 %v6606_v51, %v4626_v53 }
  0xb3   :  { %3458 = vmatpush.bf16.msra.mxu3 %v4789_v35  ;;  %v4994_v57 = vld [vmem:[#allocation4 + $0x4f0] sm:$0xf0]  ;;  %v6730_v58 = vld [vmem:[#allocation4 + $0x5e4] sm:$0xf]  ;;  %v4757_v3 = vor.u32 %v6638_v54, %v4754_v55  ;;  %v636_v54 = vld [vmem:[#allocation6] sm:$0xf] }
  0xb4   :  { %3420 = vmatpush.bf16.msra.mxu0 %v4389_v44  ;;  %v5122_v60 = vld [vmem:[#allocation4 + $0x5f0] sm:$0xf0]  ;;  %v6762_v61 = vld [vmem:[#allocation4 + $0x6e4] sm:$0xf]  ;;  %v4997_v4 = vor.u32 %v6698_v56, %v4994_v57 }
  0xb5   :  { %v5250_v62 = vld [vmem:[#allocation4 + $0x6f0] sm:$0xf0]  ;;  %3433 = vmatpush.bf16.msra.mxu1 %v4517_v47  ;;  %v6794_v1 = vld [vmem:[#allocation4 + $0x7e4] sm:$0xf]  ;;  %v5125_v5 = vor.u32 %v6730_v58, %v5122_v60 }
  0xb6   :  { %3446 = vmatpush.bf16.msra.mxu2 %v4645_v48  ;;  %v5378_v2 = vld [vmem:[#allocation4 + $0x7f0] sm:$0xf0]  ;;  %v5253_v6 = vor.u32 %v6762_v61, %v5250_v62  ;;  %v6694_v7 = vld [vmem:[#allocation4 + $0x4c4] sm:$0xf] }
  0xb7   :  { %3459 = vmatpush.bf16.msra.mxu3 %v4773_v52  ;;  %v4978_v10 = vld [vmem:[#allocation4 + $0x4d0] sm:$0xf0]  ;;  %v6726_v11 = vld [vmem:[#allocation4 + $0x5c4] sm:$0xf]  ;;  %v5381_v12 = vor.u32 %v6794_v1, %v5378_v2 }
  0xb8   :  { %3421 = vmatpush.bf16.msra.mxu0 %v4373_v59  ;;  %v5106_v14 = vld [vmem:[#allocation4 + $0x5d0] sm:$0xf0]  ;;  %v6758_v16 = vld [vmem:[#allocation4 + $0x6c4] sm:$0xf]  ;;  %v4981_v28 = vor.u32 %v6694_v7, %v4978_v10 }
  0xb9   :  { %v5234_v17 = vld [vmem:[#allocation4 + $0x6d0] sm:$0xf0]  ;;  %3434 = vmatpush.bf16.msra.mxu1 %v4501_v63  ;;  %v6790_v21 = vld [vmem:[#allocation4 + $0x7c4] sm:$0xf]  ;;  %v5109_v29 = vor.u32 %v6726_v11, %v5106_v14  ;;  %v638_v63 = vperm.slane %v636_v54, 0 }
  0xba   :  { %3447 = vmatpush.bf16.msra.mxu2 %v4629_v0  ;;  %v5362_v24 = vld [vmem:[#allocation4 + $0x7d0] sm:$0xf0]  ;;  %v5237_v30 = vor.u32 %v6758_v16, %v5234_v17  ;;  %v6690_v31 = vld [vmem:[#allocation4 + $0x4a4] sm:$0xf] }
  0xbb   :  { %3460 = vmatpush.bf16.msra.mxu3 %v4757_v3  ;;  %v4962_v32 = vld [vmem:[#allocation4 + $0x4b0] sm:$0xf0]  ;;  %v6722_v33 = vld [vmem:[#allocation4 + $0x5a4] sm:$0xf]  ;;  %v5365_v35 = vor.u32 %v6790_v21, %v5362_v24  ;;  %3422 = vmatmul.bf16.vlgmr.msra.gmra.mxu0 %v7280_v9 }
  0xbc   :  { %3466 = vmatpush.bf16.msrb.mxu0 %v4997_v4  ;;  %v5090_v36 = vld [vmem:[#allocation4 + $0x5b0] sm:$0xf0]  ;;  %v6754_v39 = vld [vmem:[#allocation4 + $0x6a4] sm:$0xf]  ;;  %v4965_v44 = vor.u32 %v6690_v31, %v4962_v32  ;;  %3435 = vmatmul.bf16.vlgmr.msra.gmra.mxu1 %v7287_v25 }
  0xbd   :  { %3479 = vmatpush.bf16.msrb.mxu1 %v5125_v5  ;;  %v5218_v41 = vld [vmem:[#allocation4 + $0x6b0] sm:$0xf0]  ;;  %3448 = vmatmul.bf16.vlgmr.msra.gmra.mxu2 %v7278_v8  ;;  %v6786_v42 = vld [vmem:[#allocation4 + $0x7a4] sm:$0xf]  ;;  %v5093_v46 = vor.u32 %v6722_v33, %v5090_v36  ;;  %v3228_v33 = vpop.f32.mrf.mxu1 }
  0xbe   :  { %3492 = vmatpush.bf16.msrb.mxu2 %v5253_v6  ;;  %v5346_v43 = vld [vmem:[#allocation4 + $0x7b0] sm:$0xf0]  ;;  %3461 = vmatmul.bf16.vlgmr.msra.gmra.mxu3 %v7282_v15  ;;  %v6686_v45 = vld [vmem:[#allocation4 + $0x484] sm:$0xf]  ;;  %v5221_v47 = vor.u32 %v6754_v39, %v5218_v41 }
  0xbf   :  { %3505 = vmatpush.bf16.msrb.mxu3 %v5381_v12  ;;  %v4946_v48 = vld [vmem:[#allocation4 + $0x490] sm:$0xf0]  ;;  %v6718_v49 = vld [vmem:[#allocation4 + $0x584] sm:$0xf]  ;;  %v5349_v51 = vor.u32 %v6786_v42, %v5346_v43 }
  0xc0   :  { %3467 = vmatpush.bf16.msrb.mxu0 %v4981_v28  ;;  %v5074_v50 = vld [vmem:[#allocation4 + $0x590] sm:$0xf0]  ;;  %v6750_v52 = vld [vmem:[#allocation4 + $0x684] sm:$0xf]  ;;  %v4949_v57 = vor.u32 %v6686_v45, %v4946_v48 }
  0xc1   :  { %3480 = vmatpush.bf16.msrb.mxu1 %v5109_v29  ;;  %v5202_v53 = vld [vmem:[#allocation4 + $0x690] sm:$0xf0]  ;;  %v6782_v55 = vld [vmem:[#allocation4 + $0x784] sm:$0xf]  ;;  %v5077_v59 = vor.u32 %v6718_v49, %v5074_v50 }
  0xc2   :  { %3493 = vmatpush.bf16.msrb.mxu2 %v5237_v30  ;;  %v5330_v56 = vld [vmem:[#allocation4 + $0x790] sm:$0xf0]  ;;  %v6682_v58 = vld [vmem:[#allocation4 + $0x464] sm:$0xf]  ;;  %v5205_v60 = vor.u32 %v6750_v52, %v5202_v53  ;;  %v3254_v52 = vpop.f32.mrf.mxu3 }
  0xc3   :  { %3506 = vmatpush.bf16.msrb.mxu3 %v5365_v35  ;;  %v4930_v61 = vld [vmem:[#allocation4 + $0x470] sm:$0xf0]  ;;  %v6714_v62 = vld [vmem:[#allocation4 + $0x564] sm:$0xf]  ;;  %v5333_v0 = vor.u32 %v6782_v55, %v5330_v56  ;;  %v3215_v7 = vpop.f32.mrf.mxu0 }
  0xc4   :  { %3468 = vmatpush.bf16.msrb.mxu0 %v4965_v44  ;;  %v5058_v1 = vld [vmem:[#allocation4 + $0x570] sm:$0xf0]  ;;  %v6746_v2 = vld [vmem:[#allocation4 + $0x664] sm:$0xf]  ;;  %v4933_v6 = vor.u32 %v6682_v58, %v4930_v61  ;;  %v3216_v17 = vadd.f32 %v3215_v7, %v638_v63 }
  0xc5   :  { %3481 = vmatpush.bf16.msrb.mxu1 %v5093_v46  ;;  %v5186_v3 = vld [vmem:[#allocation4 + $0x670] sm:$0xf0]  ;;  %v6778_v4 = vld [vmem:[#allocation4 + $0x764] sm:$0xf]  ;;  %v5061_v10 = vor.u32 %v6714_v62, %v5058_v1 }
  0xc6   :  { %3494 = vmatpush.bf16.msrb.mxu2 %v5221_v47  ;;  %v5314_v5 = vld [vmem:[#allocation4 + $0x770] sm:$0xf0]  ;;  %v5189_v11 = vor.u32 %v6746_v2, %v5186_v3  ;;  %v6678_v12 = vld [vmem:[#allocation4 + $0x444] sm:$0xf]  ;;  %v3229_v43 = vadd.f32 %v3228_v33, %v3216_v17 }
  0xc7   :  { %3507 = vmatpush.bf16.msrb.mxu3 %v5349_v51  ;;  %v4914_v14 = vld [vmem:[#allocation4 + $0x450] sm:$0xf0]  ;;  %v6710_v16 = vld [vmem:[#allocation4 + $0x544] sm:$0xf]  ;;  %v5317_v21 = vor.u32 %v6778_v4, %v5314_v5 }
  0xc8   :  { %3469 = vmatpush.bf16.msrb.mxu0 %v4949_v57  ;;  %v5042_v24 = vld [vmem:[#allocation4 + $0x550] sm:$0xf0]  ;;  %v6742_v28 = vld [vmem:[#allocation4 + $0x644] sm:$0xf]  ;;  %v4917_v32 = vor.u32 %v6678_v12, %v4914_v14  ;;  %v3241_v48 = vpop.f32.mrf.mxu2  ;;  %v3230_v12 = vpop.f32.mrf.mxu1 }
  0xc9   :  { %3482 = vmatpush.bf16.msrb.mxu1 %v5077_v59  ;;  %v5170_v29 = vld [vmem:[#allocation4 + $0x650] sm:$0xf0]  ;;  %v6774_v30 = vld [vmem:[#allocation4 + $0x744] sm:$0xf]  ;;  %v5045_v35 = vor.u32 %v6710_v16, %v5042_v24  ;;  %v3242_v51 = vadd.f32 %v3241_v48, %v3229_v43 }
  0xca   :  { %3495 = vmatpush.bf16.msrb.mxu2 %v5205_v60  ;;  %v5298_v31 = vld [vmem:[#allocation4 + $0x750] sm:$0xf0]  ;;  %v5173_v36 = vor.u32 %v6742_v28, %v5170_v29  ;;  %v6674_v39 = vld [vmem:[#allocation4 + $0x424] sm:$0xf] }
  0xcb   :  { %3508 = vmatpush.bf16.msrb.mxu3 %v5333_v0  ;;  %v4898_v41 = vld [vmem:[#allocation4 + $0x430] sm:$0xf0]  ;;  %v6706_v42 = vld [vmem:[#allocation4 + $0x524] sm:$0xf]  ;;  %v5301_v44 = vor.u32 %v6774_v30, %v5298_v31  ;;  %v3217_v56 = vpop.f32.mrf.mxu0  ;;  %v7330_v62 = vadd.f32 %v3254_v52, %v3242_v51 }
  0xcc   :  { %3470 = vmatpush.bf16.msrb.mxu0 %v4933_v6  ;;  %v5026_v45 = vld [vmem:[#allocation4 + $0x530] sm:$0xf0]  ;;  %v6738_v46 = vld [vmem:[#allocation4 + $0x624] sm:$0xf]  ;;  %v4901_v53 = vor.u32 %v6674_v39, %v4898_v41 }
  0xcd   :  { %3483 = vmatpush.bf16.msrb.mxu1 %v5061_v10  ;;  %v5154_v47 = vld [vmem:[#allocation4 + $0x630] sm:$0xf0]  ;;  %v6770_v49 = vld [vmem:[#allocation4 + $0x724] sm:$0xf]  ;;  %v5029_v57 = vor.u32 %v6706_v42, %v5026_v45 }
  0xce   :  { %3496 = vmatpush.bf16.msrb.mxu2 %v5189_v11  ;;  %v5282_v50 = vld [vmem:[#allocation4 + $0x730] sm:$0xf0]  ;;  %v6670_v54 = vld [vmem:[#allocation4 + $0x404] sm:$0xf]  ;;  %v5157_v58 = vor.u32 %v6738_v46, %v5154_v47 }
  0xcf   :  { %3509 = vmatpush.bf16.msrb.mxu3 %v5317_v21  ;;  %v4882_v55 = vld [vmem:[#allocation4 + $0x410] sm:$0xf0]  ;;  %v6702_v59 = vld [vmem:[#allocation4 + $0x504] sm:$0xf]  ;;  %v5285_v63 = vor.u32 %v6770_v49, %v5282_v50 }
  0xd0   :  { %3471 = vmatpush.bf16.msrb.mxu0 %v4917_v32  ;;  %v5010_v60 = vld [vmem:[#allocation4 + $0x510] sm:$0xf0]  ;;  %v6734_v61 = vld [vmem:[#allocation4 + $0x604] sm:$0xf]  ;;  %v4885_v6 = vor.u32 %v6670_v54, %v4882_v55  ;;  %v3243_v29 = vpop.f32.mrf.mxu2 }
  0xd1   :  { %3484 = vmatpush.bf16.msrb.mxu1 %v5045_v35  ;;  %v5138_v0 = vld [vmem:[#allocation4 + $0x610] sm:$0xf0]  ;;  %v6766_v1 = vld [vmem:[#allocation4 + $0x704] sm:$0xf]  ;;  %v5013_v14 = vor.u32 %v6702_v59, %v5010_v60 }
  0xd2   :  { %3497 = vmatpush.bf16.msrb.mxu2 %v5173_v36  ;;  %v5266_v2 = vld [vmem:[#allocation4 + $0x710] sm:$0xf0]  ;;  %v6826_v3 = vld [vmem:[#allocation4 + $0x8e4] sm:$0xf]  ;;  %v5141_v16 = vor.u32 %v6734_v61, %v5138_v0  ;;  %v3256_v36 = vpop.f32.mrf.mxu3 }
  0xd3   :  { %3510 = vmatpush.bf16.msrb.mxu3 %v5301_v44  ;;  %v5506_v4 = vld [vmem:[#allocation4 + $0x8f0] sm:$0xf0]  ;;  %v6858_v5 = vld [vmem:[#allocation4 + $0x9e4] sm:$0xf]  ;;  %v5269_v24 = vor.u32 %v6766_v1, %v5266_v2 }
  0xd4   :  { %3472 = vmatpush.bf16.msrb.mxu0 %v4901_v53  ;;  %v5634_v7 = vld [vmem:[#allocation4 + $0x9f0] sm:$0xf0]  ;;  %v6890_v10 = vld [vmem:[#allocation4 + $0xae4] sm:$0xf]  ;;  %v5509_v28 = vor.u32 %v6826_v3, %v5506_v4 }
  0xd5   :  { %v5762_v11 = vld [vmem:[#allocation4 + $0xaf0] sm:$0xf0]  ;;  %3485 = vmatpush.bf16.msrb.mxu1 %v5029_v57  ;;  %v6922_v17 = vld [vmem:[#allocation4 + $0xbe4] sm:$0xf]  ;;  %v5637_v30 = vor.u32 %v6858_v5, %v5634_v7 }
  0xd6   :  { %3498 = vmatpush.bf16.msrb.mxu2 %v5157_v58  ;;  %v5890_v21 = vld [vmem:[#allocation4 + $0xbf0] sm:$0xf0]  ;;  %v5765_v31 = vor.u32 %v6890_v10, %v5762_v11  ;;  %v6822_v32 = vld [vmem:[#allocation4 + $0x8c4] sm:$0xf] }
  0xd7   :  { %3511 = vmatpush.bf16.msrb.mxu3 %v5285_v63  ;;  %v5490_v33 = vld [vmem:[#allocation4 + $0x8d0] sm:$0xf0]  ;;  %v6854_v35 = vld [vmem:[#allocation4 + $0x9c4] sm:$0xf]  ;;  %v5893_v39 = vor.u32 %v6922_v17, %v5890_v21 }
  0xd8   :  { %3473 = vmatpush.bf16.msrb.mxu0 %v4885_v6  ;;  %v5618_v41 = vld [vmem:[#allocation4 + $0x9d0] sm:$0xf0]  ;;  %v6886_v42 = vld [vmem:[#allocation4 + $0xac4] sm:$0xf]  ;;  %v5493_v46 = vor.u32 %v6822_v32, %v5490_v33 }
  0xd9   :  { %v5746_v43 = vld [vmem:[#allocation4 + $0xad0] sm:$0xf0]  ;;  %3486 = vmatpush.bf16.msrb.mxu1 %v5013_v14  ;;  %v6918_v44 = vld [vmem:[#allocation4 + $0xbc4] sm:$0xf]  ;;  %v5621_v47 = vor.u32 %v6854_v35, %v5618_v41 }
  0xda   :  { %3499 = vmatpush.bf16.msrb.mxu2 %v5141_v16  ;;  %v5874_v45 = vld [vmem:[#allocation4 + $0xbd0] sm:$0xf0]  ;;  %v5749_v48 = vor.u32 %v6886_v42, %v5746_v43  ;;  %v6818_v49 = vld [vmem:[#allocation4 + $0x8a4] sm:$0xf] }
  0xdb   :  { %3512 = vmatpush.bf16.msrb.mxu3 %v5269_v24  ;;  %v5474_v50 = vld [vmem:[#allocation4 + $0x8b0] sm:$0xf0]  ;;  %v6850_v51 = vld [vmem:[#allocation4 + $0x9a4] sm:$0xf]  ;;  %v5877_v52 = vor.u32 %v6918_v44, %v5874_v45  ;;  %3474 = vmatmul.bf16.vlgmr.msrb.gmra.mxu0 %v7292_v37  ;;  %v3280_v24 = vpop.f32.mrf.mxu1 }
  0xdc   :  { %3518 = vmatpush.bf16.msra.mxu0 %v5509_v28  ;;  %v5602_v53 = vld [vmem:[#allocation4 + $0x9b0] sm:$0xf0]  ;;  %v6882_v54 = vld [vmem:[#allocation4 + $0xaa4] sm:$0xf]  ;;  %v5477_v58 = vor.u32 %v6818_v49, %v5474_v50  ;;  %3487 = vmatmul.bf16.vlgmr.msrb.gmra.mxu1 %v7296_v40  ;;  %v3267_v10 = vpop.f32.mrf.mxu0 }
  0xdd   :  { %3531 = vmatpush.bf16.msra.mxu1 %v5637_v30  ;;  %3500 = vmatmul.bf16.vlgmr.msrb.gmra.mxu2 %v7290_v34  ;;  %v5730_v55 = vld [vmem:[#allocation4 + $0xab0] sm:$0xf0]  ;;  %v6914_v56 = vld [vmem:[#allocation4 + $0xba4] sm:$0xf]  ;;  %v5605_v59 = vor.u32 %v6850_v51, %v5602_v53  ;;  %v3268_v21 = vadd.f32 %v3267_v10, %v7330_v62 }
  0xde   :  { %3544 = vmatpush.bf16.msra.mxu2 %v5765_v31  ;;  %v5858_v57 = vld [vmem:[#allocation4 + $0xbb0] sm:$0xf0]  ;;  %3513 = vmatmul.bf16.vlgmr.msrb.gmra.mxu3 %v7294_v38  ;;  %v5733_v60 = vor.u32 %v6882_v54, %v5730_v55  ;;  %v6814_v61 = vld [vmem:[#allocation4 + $0x884] sm:$0xf] }
  0xdf   :  { %3557 = vmatpush.bf16.msra.mxu3 %v5893_v39  ;;  %v5458_v63 = vld [vmem:[#allocation4 + $0x890] sm:$0xf0]  ;;  %v6846_v0 = vld [vmem:[#allocation4 + $0x984] sm:$0xf]  ;;  %v5861_v1 = vor.u32 %v6914_v56, %v5858_v57  ;;  %v3281_v35 = vadd.f32 %v3280_v24, %v3268_v21  ;;  %v3306_v50 = vpop.f32.mrf.mxu3 }
  0xe0   :  { %3519 = vmatpush.bf16.msra.mxu0 %v5493_v46  ;;  %v5586_v2 = vld [vmem:[#allocation4 + $0x990] sm:$0xf0]  ;;  %v6878_v3 = vld [vmem:[#allocation4 + $0xa84] sm:$0xf]  ;;  %v5461_v7 = vor.u32 %v6814_v61, %v5458_v63 }
  0xe1   :  { %3532 = vmatpush.bf16.msra.mxu1 %v5621_v47  ;;  %v5714_v4 = vld [vmem:[#allocation4 + $0xa90] sm:$0xf0]  ;;  %v6910_v5 = vld [vmem:[#allocation4 + $0xb84] sm:$0xf]  ;;  %v5589_v11 = vor.u32 %v6846_v0, %v5586_v2  ;;  %v3293_v45 = vpop.f32.mrf.mxu2 }
  0xe2   :  { %3545 = vmatpush.bf16.msra.mxu2 %v5749_v48  ;;  %v5842_v6 = vld [vmem:[#allocation4 + $0xb90] sm:$0xf0]  ;;  %v5717_v12 = vor.u32 %v6878_v3, %v5714_v4  ;;  %v6810_v14 = vld [vmem:[#allocation4 + $0x864] sm:$0xf]  ;;  %v3294_v49 = vadd.f32 %v3293_v45, %v3281_v35 }
  0xe3   :  { %3558 = vmatpush.bf16.msra.mxu3 %v5877_v52  ;;  %v5442_v16 = vld [vmem:[#allocation4 + $0x870] sm:$0xf0]  ;;  %v6842_v17 = vld [vmem:[#allocation4 + $0x964] sm:$0xf]  ;;  %v5845_v28 = vor.u32 %v6910_v5, %v5842_v6  ;;  %v3282_v61 = vpop.f32.mrf.mxu1 }
  0xe4   :  { %3520 = vmatpush.bf16.msra.mxu0 %v5477_v58  ;;  %v5570_v29 = vld [vmem:[#allocation4 + $0x970] sm:$0xf0]  ;;  %v6874_v30 = vld [vmem:[#allocation4 + $0xa64] sm:$0xf]  ;;  %v5445_v36 = vor.u32 %v6810_v14, %v5442_v16  ;;  %v7337_v54 = vadd.f32 %v3306_v50, %v3294_v49  ;;  %v3269_v55 = vpop.f32.mrf.mxu0 }
  0xe5   :  { %3533 = vmatpush.bf16.msra.mxu1 %v5605_v59  ;;  %v5698_v31 = vld [vmem:[#allocation4 + $0xa70] sm:$0xf0]  ;;  %v6906_v32 = vld [vmem:[#allocation4 + $0xb64] sm:$0xf]  ;;  %v5573_v39 = vor.u32 %v6842_v17, %v5570_v29 }
  0xe6   :  { %3546 = vmatpush.bf16.msra.mxu2 %v5733_v60  ;;  %v5826_v33 = vld [vmem:[#allocation4 + $0xb70] sm:$0xf0]  ;;  %v5701_v41 = vor.u32 %v6874_v30, %v5698_v31  ;;  %v6806_v42 = vld [vmem:[#allocation4 + $0x844] sm:$0xf] }
  0xe7   :  { %3559 = vmatpush.bf16.msra.mxu3 %v5861_v1  ;;  %v5426_v43 = vld [vmem:[#allocation4 + $0x850] sm:$0xf0]  ;;  %v6838_v44 = vld [vmem:[#allocation4 + $0x944] sm:$0xf]  ;;  %v5829_v62 = vor.u32 %v6906_v32, %v5826_v33  ;;  %v3308_v30 = vpop.f32.mrf.mxu3 }
  0xe8   :  { %3521 = vmatpush.bf16.msra.mxu0 %v5461_v7  ;;  %v5554_v46 = vld [vmem:[#allocation4 + $0x950] sm:$0xf0]  ;;  %v6870_v47 = vld [vmem:[#allocation4 + $0xa44] sm:$0xf]  ;;  %v5429_v53 = vor.u32 %v6806_v42, %v5426_v43 }
  0xe9   :  { %3534 = vmatpush.bf16.msra.mxu1 %v5589_v11  ;;  %v5682_v48 = vld [vmem:[#allocation4 + $0xa50] sm:$0xf0]  ;;  %v6902_v51 = vld [vmem:[#allocation4 + $0xb44] sm:$0xf]  ;;  %v5557_v56 = vor.u32 %v6838_v44, %v5554_v46  ;;  %v3295_v17 = vpop.f32.mrf.mxu2 }
  0xea   :  { %3547 = vmatpush.bf16.msra.mxu2 %v5717_v12  ;;  %v5810_v52 = vld [vmem:[#allocation4 + $0xb50] sm:$0xf0]  ;;  %v5685_v57 = vor.u32 %v6870_v47, %v5682_v48  ;;  %v6802_v58 = vld [vmem:[#allocation4 + $0x824] sm:$0xf] }
  0xeb   :  { %3560 = vmatpush.bf16.msra.mxu3 %v5845_v28  ;;  %v5410_v59 = vld [vmem:[#allocation4 + $0x830] sm:$0xf0]  ;;  %v6834_v60 = vld [vmem:[#allocation4 + $0x924] sm:$0xf]  ;;  %v5813_v63 = vor.u32 %v6902_v51, %v5810_v52 }
  0xec   :  { %3522 = vmatpush.bf16.msra.mxu0 %v5445_v36  ;;  %v5538_v0 = vld [vmem:[#allocation4 + $0x930] sm:$0xf0]  ;;  %v6866_v1 = vld [vmem:[#allocation4 + $0xa24] sm:$0xf]  ;;  %v5413_v5 = vor.u32 %v6802_v58, %v5410_v59 }
  0xed   :  { %3535 = vmatpush.bf16.msra.mxu1 %v5573_v39  ;;  %v5666_v2 = vld [vmem:[#allocation4 + $0xa30] sm:$0xf0]  ;;  %v6898_v3 = vld [vmem:[#allocation4 + $0xb24] sm:$0xf]  ;;  %v5541_v10 = vor.u32 %v6834_v60, %v5538_v0 }
  0xee   :  { %3548 = vmatpush.bf16.msra.mxu2 %v5701_v41  ;;  %v5794_v4 = vld [vmem:[#allocation4 + $0xb30] sm:$0xf0]  ;;  %v6798_v6 = vld [vmem:[#allocation4 + $0x804] sm:$0xf]  ;;  %v5669_v11 = vor.u32 %v6866_v1, %v5666_v2 }
  0xef   :  { %3561 = vmatpush.bf16.msra.mxu3 %v5829_v62  ;;  %v5394_v7 = vld [vmem:[#allocation4 + $0x810] sm:$0xf0]  ;;  %v6830_v12 = vld [vmem:[#allocation4 + $0x904] sm:$0xf]  ;;  %v5797_v21 = vor.u32 %v6898_v3, %v5794_v4 }
  0xf0   :  { %3523 = vmatpush.bf16.msra.mxu0 %v5429_v53  ;;  %v5522_v14 = vld [vmem:[#allocation4 + $0x910] sm:$0xf0]  ;;  %v6862_v16 = vld [vmem:[#allocation4 + $0xa04] sm:$0xf]  ;;  %v5397_v35 = vor.u32 %v6798_v6, %v5394_v7 }
  0xf1   :  { %3536 = vmatpush.bf16.msra.mxu1 %v5557_v56  ;;  %v5650_v24 = vld [vmem:[#allocation4 + $0xa10] sm:$0xf0]  ;;  %v6894_v28 = vld [vmem:[#allocation4 + $0xb04] sm:$0xf]  ;;  %v5525_v42 = vor.u32 %v6830_v12, %v5522_v14 }
  0xf2   :  { %3549 = vmatpush.bf16.msra.mxu2 %v5685_v57  ;;  %v5778_v29 = vld [vmem:[#allocation4 + $0xb10] sm:$0xf0]  ;;  %v6954_v31 = vld [vmem:[#allocation4 + $0xce4] sm:$0xf]  ;;  %v5653_v43 = vor.u32 %v6862_v16, %v5650_v24 }
  0xf3   :  { %3562 = vmatpush.bf16.msra.mxu3 %v5813_v63  ;;  %v6018_v32 = vld [vmem:[#allocation4 + $0xcf0] sm:$0xf0]  ;;  %v6986_v33 = vld [vmem:[#allocation4 + $0xde4] sm:$0xf]  ;;  %v5781_v62 = vor.u32 %v6894_v28, %v5778_v29 }
  0xf4   :  { %3524 = vmatpush.bf16.msra.mxu0 %v5413_v5  ;;  %v6146_v36 = vld [vmem:[#allocation4 + $0xdf0] sm:$0xf0]  ;;  %v7018_v39 = vld [vmem:[#allocation4 + $0xee4] sm:$0xf]  ;;  %v6021_v46 = vor.u32 %v6954_v31, %v6018_v32 }
  0xf5   :  { %v6274_v41 = vld [vmem:[#allocation4 + $0xef0] sm:$0xf0]  ;;  %3537 = vmatpush.bf16.msra.mxu1 %v5541_v10  ;;  %v7050_v44 = vld [vmem:[#allocation4 + $0xfe4] sm:$0xf]  ;;  %v6149_v47 = vor.u32 %v6986_v33, %v6146_v36 }
  0xf6   :  { %3550 = vmatpush.bf16.msra.mxu2 %v5669_v11  ;;  %v6402_v45 = vld [vmem:[#allocation4 + $0xff0] sm:$0xf0]  ;;  %v6277_v48 = vor.u32 %v7018_v39, %v6274_v41  ;;  %v6950_v49 = vld [vmem:[#allocation4 + $0xcc4] sm:$0xf] }
  0xf7   :  { %3563 = vmatpush.bf16.msra.mxu3 %v5797_v21  ;;  %v6002_v50 = vld [vmem:[#allocation4 + $0xcd0] sm:$0xf0]  ;;  %v6982_v51 = vld [vmem:[#allocation4 + $0xdc4] sm:$0xf]  ;;  %v6405_v52 = vor.u32 %v7050_v44, %v6402_v45 }
  0xf8   :  { %3525 = vmatpush.bf16.msra.mxu0 %v5397_v35  ;;  %v6130_v53 = vld [vmem:[#allocation4 + $0xdd0] sm:$0xf0]  ;;  %v7014_v55 = vld [vmem:[#allocation4 + $0xec4] sm:$0xf]  ;;  %v6005_v59 = vor.u32 %v6950_v49, %v6002_v50  ;;  %v3332_v36 = vpop.f32.mrf.mxu1 }
  0xf9   :  { %v6258_v56 = vld [vmem:[#allocation4 + $0xed0] sm:$0xf0]  ;;  %3538 = vmatpush.bf16.msra.mxu1 %v5525_v42  ;;  %v7046_v57 = vld [vmem:[#allocation4 + $0xfc4] sm:$0xf]  ;;  %v6133_v60 = vor.u32 %v6982_v51, %v6130_v53 }
  0xfa   :  { %3551 = vmatpush.bf16.msra.mxu2 %v5653_v43  ;;  %v6386_v58 = vld [vmem:[#allocation4 + $0xfd0] sm:$0xf0]  ;;  %v6261_v61 = vor.u32 %v7014_v55, %v6258_v56  ;;  %v6946_v63 = vld [vmem:[#allocation4 + $0xca4] sm:$0xf] }
  0xfb   :  { %3564 = vmatpush.bf16.msra.mxu3 %v5781_v62  ;;  %v5986_v0 = vld [vmem:[#allocation4 + $0xcb0] sm:$0xf0]  ;;  %v6978_v1 = vld [vmem:[#allocation4 + $0xda4] sm:$0xf]  ;;  %3526 = vmatmul.bf16.vlgmr.msra.gmra.mxu0 %v7302_v18  ;;  %v6389_v2 = vor.u32 %v7046_v57, %v6386_v58 }
  0xfc   :  { %3570 = vmatpush.bf16.msrb.mxu0 %v6021_v46  ;;  %v6114_v3 = vld [vmem:[#allocation4 + $0xdb0] sm:$0xf0]  ;;  %v7010_v4 = vld [vmem:[#allocation4 + $0xea4] sm:$0xf]  ;;  %3539 = vmatmul.bf16.vlgmr.msra.gmra.mxu1 %v7306_v23  ;;  %v5989_v10 = vor.u32 %v6946_v63, %v5986_v0  ;;  %v3319_v30 = vpop.f32.mrf.mxu0 }
  0xfd   :  { %3583 = vmatpush.bf16.msrb.mxu1 %v6149_v47  ;;  %v6242_v5 = vld [vmem:[#allocation4 + $0xeb0] sm:$0xf0]  ;;  %3552 = vmatmul.bf16.vlgmr.msra.gmra.mxu2 %v7304_v22  ;;  %v7042_v6 = vld [vmem:[#allocation4 + $0xfa4] sm:$0xf]  ;;  %v6117_v11 = vor.u32 %v6978_v1, %v6114_v3  ;;  %v3320_v33 = vadd.f32 %v3319_v30, %v7337_v54 }
  0xfe   :  { %3596 = vmatpush.bf16.msrb.mxu2 %v6277_v48  ;;  %v6370_v7 = vld [vmem:[#allocation4 + $0xfb0] sm:$0xf0]  ;;  %3565 = vmatmul.bf16.vlgmr.msra.gmra.mxu3 %v7308_v27  ;;  %v6245_v12 = vor.u32 %v7010_v4, %v6242_v5  ;;  %v6942_v14 = vld [vmem:[#allocation4 + $0xc84] sm:$0xf] }
  0xff   :  { %3609 = vmatpush.bf16.msrb.mxu3 %v6405_v52  ;;  %v5970_v16 = vld [vmem:[#allocation4 + $0xc90] sm:$0xf0]  ;;  %v6974_v17 = vld [vmem:[#allocation4 + $0xd84] sm:$0xf]  ;;  %v6373_v21 = vor.u32 %v7042_v6, %v6370_v7  ;;  %v3333_v62 = vadd.f32 %v3332_v36, %v3320_v33 }
 0x100   :  { %3571 = vmatpush.bf16.msrb.mxu0 %v6005_v59  ;;  %v6098_v24 = vld [vmem:[#allocation4 + $0xd90] sm:$0xf0]  ;;  %v7006_v28 = vld [vmem:[#allocation4 + $0xe84] sm:$0xf]  ;;  %v5973_v35 = vor.u32 %v6942_v14, %v5970_v16  ;;  %v3358_v0 = vpop.f32.mrf.mxu3  ;;  %v3334_v5 = vpop.f32.mrf.mxu1 }
 0x101   :  { %3584 = vmatpush.bf16.msrb.mxu1 %v6133_v60  ;;  %v6226_v29 = vld [vmem:[#allocation4 + $0xe90] sm:$0xf0]  ;;  %v7038_v31 = vld [vmem:[#allocation4 + $0xf84] sm:$0xf]  ;;  %v6101_v39 = vor.u32 %v6974_v17, %v6098_v24  ;;  %v6633_v5 = vld [vmem:[#allocation4 + $0x2d4] sm:$0xf0] }
 0x102   :  { %3597 = vmatpush.bf16.msrb.mxu2 %v6261_v61  ;;  %v6354_v32 = vld [vmem:[#allocation4 + $0xf90] sm:$0xf0]  ;;  %v6229_v41 = vor.u32 %v7006_v28, %v6226_v29  ;;  %v6938_v42 = vld [vmem:[#allocation4 + $0xc64] sm:$0xf]  ;;  %v3345_v58 = vpop.f32.mrf.mxu2 }
 0x103   :  { %3610 = vmatpush.bf16.msrb.mxu3 %v6389_v2  ;;  %v5954_v43 = vld [vmem:[#allocation4 + $0xc70] sm:$0xf0]  ;;  %v6970_v44 = vld [vmem:[#allocation4 + $0xd64] sm:$0xf]  ;;  %v6357_v45 = vor.u32 %v7038_v31, %v6354_v32  ;;  %v3346_v63 = vadd.f32 %v3345_v58, %v3333_v62 }
 0x104   :  { %3572 = vmatpush.bf16.msrb.mxu0 %v5989_v10  ;;  %v6082_v46 = vld [vmem:[#allocation4 + $0xd70] sm:$0xf0]  ;;  %v7002_v47 = vld [vmem:[#allocation4 + $0xe64] sm:$0xf]  ;;  %v5957_v51 = vor.u32 %v6938_v42, %v5954_v43  ;;  %v3321_v3 = vpop.f32.mrf.mxu0 }
 0x105   :  { %3585 = vmatpush.bf16.msrb.mxu1 %v6117_v11  ;;  %v6210_v48 = vld [vmem:[#allocation4 + $0xe70] sm:$0xf0]  ;;  %v7034_v49 = vld [vmem:[#allocation4 + $0xf64] sm:$0xf]  ;;  %v6085_v54 = vor.u32 %v6970_v44, %v6082_v46  ;;  %v7344_v6 = vadd.f32 %v3358_v0, %v3346_v63  ;;  %v4488_v46 = vld [vmem:[#allocation4 + $0xe8] sm:$0xf] }
 0x106   :  { %3598 = vmatpush.bf16.msrb.mxu2 %v6245_v12  ;;  %v6338_v50 = vld [vmem:[#allocation4 + $0xf70] sm:$0xf0]  ;;  %v6213_v52 = vor.u32 %v7002_v47, %v6210_v48  ;;  %v6934_v53 = vld [vmem:[#allocation4 + $0xc44] sm:$0xf]  ;;  %v6573_v47 = vld [vmem:[#allocation4 + $0xf4] sm:$0xf0] }
 0x107   :  { %3611 = vmatpush.bf16.msrb.mxu3 %v6373_v21  ;;  %v5938_v55 = vld [vmem:[#allocation4 + $0xc50] sm:$0xf0]  ;;  %v6966_v56 = vld [vmem:[#allocation4 + $0xd44] sm:$0xf]  ;;  %v6341_v57 = vor.u32 %v7034_v49, %v6338_v50  ;;  %v4616_v48 = vld [vmem:[#allocation4 + $0x1e8] sm:$0xf] }
 0x108   :  { %3573 = vmatpush.bf16.msrb.mxu0 %v5973_v35  ;;  %v6066_v59 = vld [vmem:[#allocation4 + $0xd50] sm:$0xf0]  ;;  %v6998_v60 = vld [vmem:[#allocation4 + $0xe44] sm:$0xf]  ;;  %v5941_v4 = vor.u32 %v6934_v53, %v5938_v55  ;;  %v3360_v49 = vpop.f32.mrf.mxu3  ;;  %v4472_v63 = vld [vmem:[#allocation4 + $0xc8] sm:$0xf] }
 0x109   :  { %3586 = vmatpush.bf16.msrb.mxu1 %v6101_v39  ;;  %v6194_v61 = vld [vmem:[#allocation4 + $0xe50] sm:$0xf0]  ;;  %v7030_v1 = vld [vmem:[#allocation4 + $0xf44] sm:$0xf]  ;;  %v6069_v7 = vor.u32 %v6966_v56, %v6066_v59  ;;  %v4872_v56 = vld [vmem:[#allocation4 + $0x3e8] sm:$0xf]  ;;  %v4489_v59 = vor.u32 %v6573_v47, %v4488_v46 }
 0x10a   :  { %3599 = vmatpush.bf16.msrb.mxu2 %v6229_v41  ;;  %v6322_v2 = vld [vmem:[#allocation4 + $0xf50] sm:$0xf0]  ;;  %v6197_v10 = vor.u32 %v6998_v60, %v6194_v61  ;;  %v6930_v11 = vld [vmem:[#allocation4 + $0xc24] sm:$0xf]  ;;  %v3347_v62 = vpop.f32.mrf.mxu2  ;;  %v6569_v0 = vld [vmem:[#allocation4 + $0xd4] sm:$0xf0] }
 0x10b   :  { %3612 = vmatpush.bf16.msrb.mxu3 %v6357_v45  ;;  %v5922_v12 = vld [vmem:[#allocation4 + $0xc30] sm:$0xf0]  ;;  %v6962_v14 = vld [vmem:[#allocation4 + $0xd24] sm:$0xf]  ;;  %v6325_v16 = vor.u32 %v7030_v1, %v6322_v2  ;;  %v4600_v1 = vld [vmem:[#allocation4 + $0x1c8] sm:$0xf] }
 0x10c   :  { %3574 = vmatpush.bf16.msrb.mxu0 %v5957_v51  ;;  %v6050_v17 = vld [vmem:[#allocation4 + $0xd30] sm:$0xf0]  ;;  %v6994_v21 = vld [vmem:[#allocation4 + $0xe24] sm:$0xf]  ;;  %v5925_v30 = vor.u32 %v6930_v11, %v5922_v12  ;;  %v6605_v51 = vld [vmem:[#allocation4 + $0x1f4] sm:$0xf0]  ;;  %v4473_v11 = vor.u32 %v6569_v0, %v4472_v63 }
 0x10d   :  { %3587 = vmatpush.bf16.msrb.mxu1 %v6085_v54  ;;  %v6178_v24 = vld [vmem:[#allocation4 + $0xe30] sm:$0xf0]  ;;  %v7026_v28 = vld [vmem:[#allocation4 + $0xf24] sm:$0xf]  ;;  %v6053_v33 = vor.u32 %v6962_v14, %v6050_v17  ;;  %v4744_v54 = vld [vmem:[#allocation4 + $0x2e8] sm:$0xf]  ;;  %v4617_v60 = vor.u32 %v6605_v51, %v4616_v48 }
 0x10e   :  { %3600 = vmatpush.bf16.msrb.mxu2 %v6213_v52  ;;  %v6306_v29 = vld [vmem:[#allocation4 + $0xf30] sm:$0xf0]  ;;  %v6926_v31 = vld [vmem:[#allocation4 + $0xc04] sm:$0xf]  ;;  %v6181_v35 = vor.u32 %v6994_v21, %v6178_v24  ;;  %v6637_v52 = vld [vmem:[#allocation4 + $0x2f4] sm:$0xf0] }
 0x10f   :  { %3613 = vmatpush.bf16.msrb.mxu3 %v6341_v57  ;;  %v5906_v32 = vld [vmem:[#allocation4 + $0xc10] sm:$0xf0]  ;;  %v6958_v36 = vld [vmem:[#allocation4 + $0xd04] sm:$0xf]  ;;  %v6309_v42 = vor.u32 %v7026_v28, %v6306_v29  ;;  %v6669_v57 = vld [vmem:[#allocation4 + $0x3f4] sm:$0xf0]  ;;  %v4745_v61 = vor.u32 %v6637_v52, %v4744_v54 }
 0x110   :  { %3575 = vmatpush.bf16.msrb.mxu0 %v5941_v4  ;;  %v6034_v39 = vld [vmem:[#allocation4 + $0xd10] sm:$0xf0]  ;;  %v6990_v41 = vld [vmem:[#allocation4 + $0xe04] sm:$0xf]  ;;  %v5909_v50 = vor.u32 %v6926_v31, %v5906_v32  ;;  %v4873_v2 = vor.u32 %v6669_v57, %v4872_v56  ;;  %v6601_v3 = vld [vmem:[#allocation4 + $0x1d4] sm:$0xf0] }
 0x111   :  { %3588 = vmatpush.bf16.msrb.mxu1 %v6069_v7  ;;  %v6162_v43 = vld [vmem:[#allocation4 + $0xe10] sm:$0xf0]  ;;  %v7022_v44 = vld [vmem:[#allocation4 + $0xf04] sm:$0xf]  ;;  %v6037_v53 = vor.u32 %v6958_v36, %v6034_v39  ;;  %v4728_v4 = vld [vmem:[#allocation4 + $0x2c8] sm:$0xf]  ;;  %v4601_v12 = vor.u32 %v6601_v3, %v4600_v1 }
 0x112   :  { %3601 = vmatpush.bf16.msrb.mxu2 %v6197_v10  ;;  %v6290_v45 = vld [vmem:[#allocation4 + $0xf10] sm:$0xf0]  ;;  %v6165_v55 = vor.u32 %v6990_v41, %v6162_v43  ;;  %v4856_v7 = vld [vmem:[#allocation4 + $0x3c8] sm:$0xf]  ;;  %v6665_v10 = vld [vmem:[#allocation4 + $0x3d4] sm:$0xf0]  ;;  %v4729_v14 = vor.u32 %v6633_v5, %v4728_v4 }
 0x113   :  { %3614 = vmatpush.bf16.msrb.mxu3 %v6325_v16  ;;  %v6293_v58 = vor.u32 %v7022_v44, %v6290_v45  ;;  %v4456_v16 = vld [vmem:[#allocation4 + $0xa8] sm:$0xf]  ;;  %v6565_v17 = vld [vmem:[#allocation4 + $0xb4] sm:$0xf0]  ;;  %v4857_v24 = vor.u32 %v6665_v10, %v4856_v7 }
 0x114   :  { %3576 = vmatpush.bf16.msrb.mxu0 %v5925_v30  ;;  %v4584_v21 = vld [vmem:[#allocation4 + $0x1a8] sm:$0xf]  ;;  %v6597_v28 = vld [vmem:[#allocation4 + $0x1b4] sm:$0xf0] }
 0x115   :  { %3589 = vmatpush.bf16.msrb.mxu1 %v6053_v33  ;;  %v4712_v29 = vld [vmem:[#allocation4 + $0x2a8] sm:$0xf]  ;;  %v6629_v30 = vld [vmem:[#allocation4 + $0x2b4] sm:$0xf0]  ;;  %v4457_v33 = vor.u32 %v6565_v17, %v4456_v16 }
 0x116   :  { %3602 = vmatpush.bf16.msrb.mxu2 %v6181_v35  ;;  %v4840_v31 = vld [vmem:[#allocation4 + $0x3a8] sm:$0xf]  ;;  %v6661_v32 = vld [vmem:[#allocation4 + $0x3b4] sm:$0xf0]  ;;  %v4585_v35 = vor.u32 %v6597_v28, %v4584_v21  ;;  %v4713_v36 = vor.u32 %v6629_v30, %v4712_v29 }
 0x117   :  { %3615 = vmatpush.bf16.msrb.mxu3 %v6309_v42  ;;  %v4440_v39 = vld [vmem:[#allocation4 + $0x88] sm:$0xf]  ;;  %v6561_v41 = vld [vmem:[#allocation4 + $0x94] sm:$0xf0]  ;;  %v4841_v43 = vor.u32 %v6661_v32, %v4840_v31 }
 0x118   :  { %3577 = vmatpush.bf16.msrb.mxu0 %v5909_v50  ;;  %v4568_v42 = vld [vmem:[#allocation4 + $0x188] sm:$0xf]  ;;  %v6593_v44 = vld [vmem:[#allocation4 + $0x194] sm:$0xf0]  ;;  %v4441_v50 = vor.u32 %v6561_v41, %v4440_v39 }
 0x119   :  { %3590 = vmatpush.bf16.msrb.mxu1 %v6037_v53  ;;  %v4696_v45 = vld [vmem:[#allocation4 + $0x288] sm:$0xf]  ;;  %v6625_v62 = vld [vmem:[#allocation4 + $0x294] sm:$0xf0]  ;;  %v3384_v51 = vpop.f32.mrf.mxu1  ;;  %v4569_v54 = vor.u32 %v6593_v44, %v4568_v42 }
 0x11a   :  { %3603 = vmatpush.bf16.msrb.mxu2 %v6165_v55  ;;  %v3371_v46 = vpop.f32.mrf.mxu0  ;;  %v4824_v47 = vld [vmem:[#allocation4 + $0x388] sm:$0xf]  ;;  %v6657_v48 = vld [vmem:[#allocation4 + $0x394] sm:$0xf0]  ;;  %v4697_v52 = vor.u32 %v6625_v62, %v4696_v45 }
 0x11b   :  { %3616 = vmatpush.bf16.msrb.mxu3 %v6293_v58  ;;  %3578 = vmatmul.bf16.vlgmr.msrb.gmra.mxu0 %v7314_v13  ;;  %v3372_v49 = vadd.f32 %v3371_v46, %v7344_v6  ;;  %v4424_v53 = vld [vmem:[#allocation4 + $0x68] sm:$0xf]  ;;  %v6557_v55 = vld [vmem:[#allocation4 + $0x74] sm:$0xf0]  ;;  %v4825_v57 = vor.u32 %v6657_v48, %v4824_v47 }
 0x11c   :  { %3622 = vmatpush.bf16.msra.mxu0 %v4489_v59  ;;  %3591 = vmatmul.bf16.vlgmr.msrb.gmra.mxu1 %v7318_v20  ;;  %v4552_v56 = vld [vmem:[#allocation4 + $0x168] sm:$0xf]  ;;  %v6589_v59 = vld [vmem:[#allocation4 + $0x174] sm:$0xf0]  ;;  %v4425_v1 = vor.u32 %v6557_v55, %v4424_v53 }
 0x11d   :  { %3635 = vmatpush.bf16.msra.mxu1 %v4617_v60  ;;  %3604 = vmatmul.bf16.vlgmr.msrb.gmra.mxu2 %v7316_v19  ;;  %v3385_v58 = vadd.f32 %v3384_v51, %v3372_v49  ;;  %v4680_v60 = vld [vmem:[#allocation4 + $0x268] sm:$0xf]  ;;  %v6653_v0 = vld [vmem:[#allocation4 + $0x374] sm:$0xf0]  ;;  %v4553_v6 = vor.u32 %v6589_v59, %v4552_v56 }
 0x11e   :  { %3648 = vmatpush.bf16.msra.mxu2 %v4745_v61  ;;  %3617 = vmatmul.bf16.vlgmr.msrb.gmra.mxu3 %v7320_v26  ;;  %v6621_v61 = vld [vmem:[#allocation4 + $0x274] sm:$0xf0]  ;;  %v4808_v63 = vld [vmem:[#allocation4 + $0x368] sm:$0xf] }
 0x11f   :  { %3661 = vmatpush.bf16.msra.mxu3 %v4873_v2  ;;  %v4681_v2 = vor.u32 %v6621_v61, %v4680_v60  ;;  %v4408_v3 = vld [vmem:[#allocation4 + $0x48] sm:$0xf]  ;;  %v6553_v4 = vld [vmem:[#allocation4 + $0x54] sm:$0xf0]  ;;  %v4809_v7 = vor.u32 %v6653_v0, %v4808_v63 }
 0x120   :  { %3623 = vmatpush.bf16.msra.mxu0 %v4473_v11  ;;  %v4536_v5 = vld [vmem:[#allocation4 + $0x148] sm:$0xf]  ;;  %v6585_v11 = vld [vmem:[#allocation4 + $0x154] sm:$0xf0]  ;;  %v4409_v29 = vor.u32 %v6553_v4, %v4408_v3 }
 0x121   :  { %3636 = vmatpush.bf16.msra.mxu1 %v4601_v12  ;;  %v4664_v12 = vld [vmem:[#allocation4 + $0x248] sm:$0xf]  ;;  %v3410_v17 = vpop.f32.mrf.mxu3  ;;  %v3386_v30 = vpop.f32.mrf.mxu1  ;;  %v4537_v32 = vor.u32 %v6585_v11, %v4536_v5  ;;  %v6581_v42 = vld [vmem:[#allocation4 + $0x134] sm:$0xf0] }
 0x122   :  { %3649 = vmatpush.bf16.msra.mxu2 %v4729_v14  ;;  %v3397_v10 = vpop.f32.mrf.mxu2  ;;  %v6617_v14 = vld [vmem:[#allocation4 + $0x254] sm:$0xf0]  ;;  %v4792_v21 = vld [vmem:[#allocation4 + $0x348] sm:$0xf]  ;;  %v3373_v28 = vpop.f32.mrf.mxu0 }
 0x123   :  { %3662 = vmatpush.bf16.msra.mxu3 %v4857_v24  ;;  %v3398_v16 = vadd.f32 %v3397_v10, %v3385_v58  ;;  %v6649_v24 = vld [vmem:[#allocation4 + $0x354] sm:$0xf0]  ;;  %v4520_v39 = vld [vmem:[#allocation4 + $0x128] sm:$0xf] }
 0x124   :  { %3624 = vmatpush.bf16.msra.mxu0 %v4457_v33  ;;  %v4665_v33 = vor.u32 %v6617_v14, %v4664_v12  ;;  %v4793_v41 = vor.u32 %v6649_v24, %v4792_v21  ;;  %v6613_v44 = vld [vmem:[#allocation4 + $0x234] sm:$0xf0]  ;;  %v4776_v45 = vld [vmem:[#allocation4 + $0x328] sm:$0xf]  ;;  %v4521_v49 = vor.u32 %v6581_v42, %v4520_v39 }
 0x125   :  { %3637 = vmatpush.bf16.msra.mxu1 %v4585_v35  ;;  %v7351_v31 = vadd.f32 %v3410_v17, %v3398_v16  ;;  %v4392_v35 = vld [vmem:[#allocation4 + $0x28] sm:$0xf]  ;;  %v6645_v62 = vld [vmem:[#allocation4 + $0x334] sm:$0xf0] }
 0x126   :  { %3650 = vmatpush.bf16.msra.mxu2 %v4713_v36  ;;  %v6549_v36 = vld [vmem:[#allocation4 + $0x34] sm:$0xf0]  ;;  %v4376_v47 = vld [vmem:[#allocation4 + $0x8] sm:$0xf]  ;;  %v4777_v53 = vor.u32 %v6645_v62, %v4776_v45 }
 0x127   :  { %3663 = vmatpush.bf16.msra.mxu3 %v4841_v43  ;;  %v4648_v43 = vld [vmem:[#allocation4 + $0x228] sm:$0xf]  ;;  %v4393_v46 = vor.u32 %v6549_v36, %v4392_v35  ;;  %v6545_v48 = vld [vmem:[#allocation4 + $0x14] sm:$0xf0] }
 0x128   :  { %3625 = vmatpush.bf16.msra.mxu0 %v4441_v50  ;;  %v4649_v50 = vor.u32 %v6613_v44, %v4648_v43  ;;  %v4504_v51 = vld [vmem:[#allocation4 + $0x108] sm:$0xf]  ;;  %v6609_v55 = vld [vmem:[#allocation4 + $0x214] sm:$0xf0]  ;;  %v4377_v0 = vor.u32 %v6545_v48, %v4376_v47 }
 0x129   :  { %3638 = vmatpush.bf16.msra.mxu1 %v4569_v54  ;;  %v6577_v54 = vld [vmem:[#allocation4 + $0x114] sm:$0xf0]  ;;  %v4760_v56 = vld [vmem:[#allocation4 + $0x308] sm:$0xf]  ;;  %v3412_v63 = vpop.f32.mrf.mxu3 }
 0x12a   :  { %3651 = vmatpush.bf16.msra.mxu2 %v4697_v52  ;;  %v4632_v52 = vld [vmem:[#allocation4 + $0x208] sm:$0xf]  ;;  %v3399_v58 = vpop.f32.mrf.mxu2  ;;  %v6701_v60 = vld [vmem:[#allocation4 + $0x4f4] sm:$0xf0]  ;;  %v4505_v3 = vor.u32 %v6577_v54, %v4504_v51 }
 0x12b   :  { %3664 = vmatpush.bf16.msra.mxu3 %v4825_v57  ;;  %v6641_v57 = vld [vmem:[#allocation4 + $0x314] sm:$0xf0]  ;;  %v5000_v59 = vld [vmem:[#allocation4 + $0x4e8] sm:$0xf]  ;;  %v4633_v4 = vor.u32 %v6609_v55, %v4632_v52  ;;  %v7096_v55 = vld [vmem:[#allocation6] sm:$0xf] }
 0x12c   :  { %3626 = vmatpush.bf16.msra.mxu0 %v4425_v1  ;;  %v5128_v61 = vld [vmem:[#allocation4 + $0x5e8] sm:$0xf]  ;;  %v6733_v1 = vld [vmem:[#allocation4 + $0x5f4] sm:$0xf0]  ;;  %v4761_v10 = vor.u32 %v6641_v57, %v4760_v56  ;;  %v5001_v11 = vor.u32 %v6701_v60, %v5000_v59  ;;  %v639_v56 = vperm.slane %v7096_v55, 1 }
 0x12d   :  { %3639 = vmatpush.bf16.msra.mxu1 %v4553_v6  ;;  %v5256_v6 = vld [vmem:[#allocation4 + $0x6e8] sm:$0xf]  ;;  %v5129_v12 = vor.u32 %v6733_v1, %v5128_v61  ;;  %v6697_v17 = vld [vmem:[#allocation4 + $0x4d4] sm:$0xf0] }
 0x12e   :  { %3652 = vmatpush.bf16.msra.mxu2 %v4681_v2  ;;  %v6765_v2 = vld [vmem:[#allocation4 + $0x6f4] sm:$0xf0]  ;;  %v5384_v5 = vld [vmem:[#allocation4 + $0x7e8] sm:$0xf] }
 0x12f   :  { %3665 = vmatpush.bf16.msra.mxu3 %v4809_v7  ;;  %v6797_v7 = vld [vmem:[#allocation4 + $0x7f4] sm:$0xf0]  ;;  %v5257_v14 = vor.u32 %v6765_v2, %v5256_v6  ;;  %v4984_v16 = vld [vmem:[#allocation4 + $0x4c8] sm:$0xf] }
 0x130   :  { %3627 = vmatpush.bf16.msra.mxu0 %v4409_v29  ;;  %v5112_v21 = vld [vmem:[#allocation4 + $0x5c8] sm:$0xf]  ;;  %v5385_v24 = vor.u32 %v6797_v7, %v5384_v5  ;;  %v6729_v28 = vld [vmem:[#allocation4 + $0x5d4] sm:$0xf0]  ;;  %v4985_v35 = vor.u32 %v6697_v17, %v4984_v16 }
 0x131   :  { %3640 = vmatpush.bf16.msra.mxu1 %v4537_v32  ;;  %v5240_v29 = vld [vmem:[#allocation4 + $0x6c8] sm:$0xf]  ;;  %v6761_v30 = vld [vmem:[#allocation4 + $0x6d4] sm:$0xf0]  ;;  %v5113_v36 = vor.u32 %v6729_v28, %v5112_v21 }
 0x132   :  { %3653 = vmatpush.bf16.msra.mxu2 %v4665_v33  ;;  %v5368_v32 = vld [vmem:[#allocation4 + $0x7c8] sm:$0xf]  ;;  %v6793_v33 = vld [vmem:[#allocation4 + $0x7d4] sm:$0xf0]  ;;  %v5241_v39 = vor.u32 %v6761_v30, %v5240_v29 }
 0x133   :  { %3666 = vmatpush.bf16.msra.mxu3 %v4793_v41  ;;  %v4968_v41 = vld [vmem:[#allocation4 + $0x4a8] sm:$0xf]  ;;  %v6693_v42 = vld [vmem:[#allocation4 + $0x4b4] sm:$0xf0]  ;;  %v5369_v44 = vor.u32 %v6793_v33, %v5368_v32 }
 0x134   :  { %3628 = vmatpush.bf16.msra.mxu0 %v4393_v46  ;;  %v5096_v43 = vld [vmem:[#allocation4 + $0x5a8] sm:$0xf]  ;;  %v6725_v45 = vld [vmem:[#allocation4 + $0x5b4] sm:$0xf0] }
 0x135   :  { %3641 = vmatpush.bf16.msra.mxu1 %v4521_v49  ;;  %v5224_v62 = vld [vmem:[#allocation4 + $0x6a8] sm:$0xf]  ;;  %v6757_v46 = vld [vmem:[#allocation4 + $0x6b4] sm:$0xf0]  ;;  %v4969_v49 = vor.u32 %v6693_v42, %v4968_v41  ;;  %v5097_v51 = vor.u32 %v6725_v45, %v5096_v43 }
 0x136   :  { %3654 = vmatpush.bf16.msra.mxu2 %v4649_v50  ;;  %v5352_v47 = vld [vmem:[#allocation4 + $0x7a8] sm:$0xf]  ;;  %v6789_v48 = vld [vmem:[#allocation4 + $0x7b4] sm:$0xf0]  ;;  %v5225_v54 = vor.u32 %v6757_v46, %v5224_v62 }
 0x137   :  { %3667 = vmatpush.bf16.msra.mxu3 %v4777_v53  ;;  %v4952_v50 = vld [vmem:[#allocation4 + $0x488] sm:$0xf]  ;;  %v6689_v52 = vld [vmem:[#allocation4 + $0x494] sm:$0xf0]  ;;  %v5353_v57 = vor.u32 %v6789_v48, %v5352_v47 }
 0x138   :  { %3629 = vmatpush.bf16.msra.mxu0 %v4377_v0  ;;  %v5080_v53 = vld [vmem:[#allocation4 + $0x588] sm:$0xf]  ;;  %v6721_v58 = vld [vmem:[#allocation4 + $0x594] sm:$0xf0]  ;;  %v4953_v0 = vor.u32 %v6689_v52, %v4952_v50  ;;  %v3423_v1 = vpop.f32.mrf.mxu0 }
 0x139   :  { %3642 = vmatpush.bf16.msra.mxu1 %v4505_v3  ;;  %v5208_v59 = vld [vmem:[#allocation4 + $0x688] sm:$0xf]  ;;  %v6753_v60 = vld [vmem:[#allocation4 + $0x694] sm:$0xf0]  ;;  %v5081_v6 = vor.u32 %v6721_v58, %v5080_v53  ;;  %v3424_v7 = vadd.f32 %v3423_v1, %v639_v56 }
 0x13a   :  { %3655 = vmatpush.bf16.msra.mxu2 %v4633_v4  ;;  %v5336_v61 = vld [vmem:[#allocation4 + $0x788] sm:$0xf]  ;;  %v6785_v63 = vld [vmem:[#allocation4 + $0x794] sm:$0xf0]  ;;  %v5209_v2 = vor.u32 %v6753_v60, %v5208_v59 }
 0x13b   :  { %3668 = vmatpush.bf16.msra.mxu3 %v4761_v10  ;;  %3630 = vmatmul.bf16.vlgmr.msra.gmra.mxu0 %v7280_v9  ;;  %v4936_v3 = vld [vmem:[#allocation4 + $0x468] sm:$0xf]  ;;  %v6685_v4 = vld [vmem:[#allocation4 + $0x474] sm:$0xf0]  ;;  %v3436_v10 = vpop.f32.mrf.mxu1 }
 0x13c   :  { %3674 = vmatpush.bf16.msrb.mxu0 %v5001_v11  ;;  %3643 = vmatmul.bf16.vlgmr.msra.gmra.mxu1 %v7287_v25  ;;  %v5064_v5 = vld [vmem:[#allocation4 + $0x568] sm:$0xf]  ;;  %v5337_v11 = vor.u32 %v6785_v63, %v5336_v61  ;;  %v6749_v16 = vld [vmem:[#allocation4 + $0x674] sm:$0xf0]  ;;  %v4937_v28 = vor.u32 %v6685_v4, %v4936_v3 }
 0x13d   :  { %3687 = vmatpush.bf16.msrb.mxu1 %v5129_v12  ;;  %3656 = vmatmul.bf16.vlgmr.msra.gmra.mxu2 %v7278_v8  ;;  %v6717_v12 = vld [vmem:[#allocation4 + $0x574] sm:$0xf0]  ;;  %v5320_v17 = vld [vmem:[#allocation4 + $0x768] sm:$0xf] }
 0x13e   :  { %3700 = vmatpush.bf16.msrb.mxu2 %v5257_v14  ;;  %3669 = vmatmul.bf16.vlgmr.msra.gmra.mxu3 %v7282_v15  ;;  %v5192_v14 = vld [vmem:[#allocation4 + $0x668] sm:$0xf]  ;;  %v6781_v21 = vld [vmem:[#allocation4 + $0x774] sm:$0xf0]  ;;  %v5065_v29 = vor.u32 %v6717_v12, %v5064_v5 }
 0x13f   :  { %3713 = vmatpush.bf16.msrb.mxu3 %v5385_v24  ;;  %v3437_v24 = vadd.f32 %v3436_v10, %v3424_v7  ;;  %v5193_v30 = vor.u32 %v6749_v16, %v5192_v14  ;;  %v4920_v32 = vld [vmem:[#allocation4 + $0x448] sm:$0xf]  ;;  %v6681_v33 = vld [vmem:[#allocation4 + $0x454] sm:$0xf0] }
 0x140   :  { %3675 = vmatpush.bf16.msrb.mxu0 %v4985_v35  ;;  %v5048_v35 = vld [vmem:[#allocation4 + $0x548] sm:$0xf]  ;;  %v6713_v41 = vld [vmem:[#allocation4 + $0x554] sm:$0xf0]  ;;  %v4921_v47 = vor.u32 %v6681_v33, %v4920_v32 }
 0x141   :  { %3688 = vmatpush.bf16.msrb.mxu1 %v5113_v36  ;;  %v3449_v36 = vpop.f32.mrf.mxu2  ;;  %v5176_v42 = vld [vmem:[#allocation4 + $0x648] sm:$0xf]  ;;  %v6745_v43 = vld [vmem:[#allocation4 + $0x654] sm:$0xf0]  ;;  %v3462_v45 = vpop.f32.mrf.mxu3  ;;  %v5049_v50 = vor.u32 %v6713_v41, %v5048_v35 }
 0x142   :  { %3701 = vmatpush.bf16.msrb.mxu2 %v5241_v39  ;;  %v5321_v39 = vor.u32 %v6781_v21, %v5320_v17  ;;  %v5304_v62 = vld [vmem:[#allocation4 + $0x748] sm:$0xf]  ;;  %v6777_v46 = vld [vmem:[#allocation4 + $0x754] sm:$0xf0] }
 0x143   :  { %3714 = vmatpush.bf16.msrb.mxu3 %v5369_v44  ;;  %v3450_v44 = vadd.f32 %v3449_v36, %v3437_v24  ;;  %v6677_v52 = vld [vmem:[#allocation4 + $0x434] sm:$0xf0]  ;;  %v5032_v53 = vld [vmem:[#allocation4 + $0x528] sm:$0xf]  ;;  %v3438_v55 = vpop.f32.mrf.mxu1  ;;  %v5305_v56 = vor.u32 %v6777_v46, %v5304_v62 }
 0x144   :  { %3676 = vmatpush.bf16.msrb.mxu0 %v4969_v49  ;;  %v3425_v49 = vpop.f32.mrf.mxu0  ;;  %v5160_v58 = vld [vmem:[#allocation4 + $0x628] sm:$0xf]  ;;  %v6741_v59 = vld [vmem:[#allocation4 + $0x634] sm:$0xf0] }
 0x145   :  { %3689 = vmatpush.bf16.msrb.mxu1 %v5097_v51  ;;  %v7357_v48 = vadd.f32 %v3462_v45, %v3450_v44  ;;  %v5177_v51 = vor.u32 %v6745_v43, %v5176_v42  ;;  %v5288_v60 = vld [vmem:[#allocation4 + $0x728] sm:$0xf]  ;;  %v6773_v61 = vld [vmem:[#allocation4 + $0x734] sm:$0xf0] }
 0x146   :  { %3702 = vmatpush.bf16.msrb.mxu2 %v5225_v54  ;;  %v4904_v54 = vld [vmem:[#allocation4 + $0x428] sm:$0xf]  ;;  %v6673_v1 = vld [vmem:[#allocation4 + $0x414] sm:$0xf0]  ;;  %v5289_v10 = vor.u32 %v6773_v61, %v5288_v60 }
 0x147   :  { %3715 = vmatpush.bf16.msrb.mxu3 %v5353_v57  ;;  %v6709_v57 = vld [vmem:[#allocation4 + $0x534] sm:$0xf0]  ;;  %v4905_v63 = vor.u32 %v6677_v52, %v4904_v54  ;;  %v5016_v3 = vld [vmem:[#allocation4 + $0x508] sm:$0xf] }
 0x148   :  { %3677 = vmatpush.bf16.msrb.mxu0 %v4953_v0  ;;  %v4888_v0 = vld [vmem:[#allocation4 + $0x408] sm:$0xf]  ;;  %v6705_v4 = vld [vmem:[#allocation4 + $0x514] sm:$0xf0] }
 0x149   :  { %3690 = vmatpush.bf16.msrb.mxu1 %v5081_v6  ;;  %v5033_v6 = vor.u32 %v6709_v57, %v5032_v53  ;;  %v5144_v5 = vld [vmem:[#allocation4 + $0x608] sm:$0xf]  ;;  %v3451_v7 = vpop.f32.mrf.mxu2  ;;  %v6769_v14 = vld [vmem:[#allocation4 + $0x714] sm:$0xf0]  ;;  %v3464_v16 = vpop.f32.mrf.mxu3  ;;  %v5017_v33 = vor.u32 %v6705_v4, %v5016_v3 }
 0x14a   :  { %3703 = vmatpush.bf16.msrb.mxu2 %v5209_v2  ;;  %v5161_v2 = vor.u32 %v6741_v59, %v5160_v58  ;;  %v5272_v12 = vld [vmem:[#allocation4 + $0x708] sm:$0xf]  ;;  %v6829_v21 = vld [vmem:[#allocation4 + $0x8f4] sm:$0xf0] }
 0x14b   :  { %3716 = vmatpush.bf16.msrb.mxu3 %v5337_v11  ;;  %v6737_v11 = vld [vmem:[#allocation4 + $0x614] sm:$0xf0]  ;;  %v5512_v17 = vld [vmem:[#allocation4 + $0x8e8] sm:$0xf]  ;;  %v5273_v41 = vor.u32 %v6769_v14, %v5272_v12 }
 0x14c   :  { %3678 = vmatpush.bf16.msrb.mxu0 %v4937_v28  ;;  %v5640_v24 = vld [vmem:[#allocation4 + $0x9e8] sm:$0xf]  ;;  %v4889_v28 = vor.u32 %v6673_v1, %v4888_v0  ;;  %v6893_v32 = vld [vmem:[#allocation4 + $0xaf4] sm:$0xf0]  ;;  %v5145_v35 = vor.u32 %v6737_v11, %v5144_v5  ;;  %v5513_v42 = vor.u32 %v6829_v21, %v5512_v17 }
 0x14d   :  { %3691 = vmatpush.bf16.msrb.mxu1 %v5065_v29  ;;  %v6861_v29 = vld [vmem:[#allocation4 + $0x9f4] sm:$0xf0]  ;;  %v5896_v36 = vld [vmem:[#allocation4 + $0xbe8] sm:$0xf] }
 0x14e   :  { %3704 = vmatpush.bf16.msrb.mxu2 %v5193_v30  ;;  %v5768_v30 = vld [vmem:[#allocation4 + $0xae8] sm:$0xf]  ;;  %v5641_v43 = vor.u32 %v6861_v29, %v5640_v24  ;;  %v6825_v62 = vld [vmem:[#allocation4 + $0x8d4] sm:$0xf0] }
 0x14f   :  { %3717 = vmatpush.bf16.msrb.mxu3 %v5321_v39  ;;  %v6925_v39 = vld [vmem:[#allocation4 + $0xbf4] sm:$0xf0]  ;;  %v5769_v44 = vor.u32 %v6893_v32, %v5768_v30  ;;  %v5496_v45 = vld [vmem:[#allocation4 + $0x8c8] sm:$0xf] }
 0x150   :  { %3679 = vmatpush.bf16.msrb.mxu0 %v4921_v47  ;;  %v5624_v46 = vld [vmem:[#allocation4 + $0x9c8] sm:$0xf]  ;;  %v5897_v47 = vor.u32 %v6925_v39, %v5896_v36  ;;  %v6857_v49 = vld [vmem:[#allocation4 + $0x9d4] sm:$0xf0]  ;;  %v5497_v53 = vor.u32 %v6825_v62, %v5496_v45 }
 0x151   :  { %3692 = vmatpush.bf16.msrb.mxu1 %v5049_v50  ;;  %v5752_v50 = vld [vmem:[#allocation4 + $0xac8] sm:$0xf]  ;;  %v6921_v52 = vld [vmem:[#allocation4 + $0xbd4] sm:$0xf0]  ;;  %v5625_v55 = vor.u32 %v6857_v49, %v5624_v46 }
 0x152   :  { %3705 = vmatpush.bf16.msrb.mxu2 %v5177_v51  ;;  %v6889_v51 = vld [vmem:[#allocation4 + $0xad4] sm:$0xf0]  ;;  %v5880_v54 = vld [vmem:[#allocation4 + $0xbc8] sm:$0xf] }
 0x153   :  { %3718 = vmatpush.bf16.msrb.mxu3 %v5305_v56  ;;  %v5753_v56 = vor.u32 %v6889_v51, %v5752_v50  ;;  %v5480_v57 = vld [vmem:[#allocation4 + $0x8a8] sm:$0xf]  ;;  %v6821_v58 = vld [vmem:[#allocation4 + $0x8b4] sm:$0xf0]  ;;  %v5881_v60 = vor.u32 %v6921_v52, %v5880_v54 }
 0x154   :  { %3680 = vmatpush.bf16.msrb.mxu0 %v4905_v63  ;;  %v5608_v59 = vld [vmem:[#allocation4 + $0x9a8] sm:$0xf]  ;;  %v6853_v61 = vld [vmem:[#allocation4 + $0x9b4] sm:$0xf0] }
 0x155   :  { %3693 = vmatpush.bf16.msrb.mxu1 %v5033_v6  ;;  %v5736_v63 = vld [vmem:[#allocation4 + $0xaa8] sm:$0xf]  ;;  %v6885_v0 = vld [vmem:[#allocation4 + $0xab4] sm:$0xf0]  ;;  %v5609_v3 = vor.u32 %v6853_v61, %v5608_v59 }
 0x156   :  { %3706 = vmatpush.bf16.msrb.mxu2 %v5161_v2  ;;  %v5864_v1 = vld [vmem:[#allocation4 + $0xba8] sm:$0xf]  ;;  %v6917_v6 = vld [vmem:[#allocation4 + $0xbb4] sm:$0xf0]  ;;  %v5481_v2 = vor.u32 %v6821_v58, %v5480_v57  ;;  %v5737_v4 = vor.u32 %v6885_v0, %v5736_v63 }
 0x157   :  { %3719 = vmatpush.bf16.msrb.mxu3 %v5289_v10  ;;  %v5464_v5 = vld [vmem:[#allocation4 + $0x888] sm:$0xf]  ;;  %v6817_v7 = vld [vmem:[#allocation4 + $0x894] sm:$0xf0]  ;;  %v5865_v11 = vor.u32 %v6917_v6, %v5864_v1 }
 0x158   :  { %3681 = vmatpush.bf16.msrb.mxu0 %v4889_v28  ;;  %v5592_v10 = vld [vmem:[#allocation4 + $0x988] sm:$0xf]  ;;  %v6849_v12 = vld [vmem:[#allocation4 + $0x994] sm:$0xf0]  ;;  %v5465_v24 = vor.u32 %v6817_v7, %v5464_v5  ;;  %v3475_v28 = vpop.f32.mrf.mxu0 }
 0x159   :  { %3694 = vmatpush.bf16.msrb.mxu1 %v5017_v33  ;;  %v5720_v14 = vld [vmem:[#allocation4 + $0xa88] sm:$0xf]  ;;  %v6881_v16 = vld [vmem:[#allocation4 + $0xa94] sm:$0xf0]  ;;  %v5593_v29 = vor.u32 %v6849_v12, %v5592_v10  ;;  %v3476_v36 = vadd.f32 %v3475_v28, %v7357_v48  ;;  %v3488_v39 = vpop.f32.mrf.mxu1 }
 0x15a   :  { %3707 = vmatpush.bf16.msrb.mxu2 %v5145_v35  ;;  %v5848_v17 = vld [vmem:[#allocation4 + $0xb88] sm:$0xf]  ;;  %v6913_v21 = vld [vmem:[#allocation4 + $0xb94] sm:$0xf0]  ;;  %v5721_v30 = vor.u32 %v6881_v16, %v5720_v14 }
 0x15b   :  { %3720 = vmatpush.bf16.msrb.mxu3 %v5273_v41  ;;  %3682 = vmatmul.bf16.vlgmr.msrb.gmra.mxu0 %v7292_v37  ;;  %v5448_v32 = vld [vmem:[#allocation4 + $0x868] sm:$0xf]  ;;  %v6813_v33 = vld [vmem:[#allocation4 + $0x874] sm:$0xf0]  ;;  %v5849_v41 = vor.u32 %v6913_v21, %v5848_v17  ;;  %v3489_v46 = vadd.f32 %v3488_v39, %v3476_v36 }
 0x15c   :  { %3726 = vmatpush.bf16.msra.mxu0 %v5513_v42  ;;  %3695 = vmatmul.bf16.vlgmr.msrb.gmra.mxu1 %v7296_v40  ;;  %v5576_v35 = vld [vmem:[#allocation4 + $0x968] sm:$0xf]  ;;  %v6845_v42 = vld [vmem:[#allocation4 + $0x974] sm:$0xf0] }
 0x15d   :  { %3739 = vmatpush.bf16.msra.mxu1 %v5641_v43  ;;  %3708 = vmatmul.bf16.vlgmr.msrb.gmra.mxu2 %v7290_v34  ;;  %v5704_v43 = vld [vmem:[#allocation4 + $0xa68] sm:$0xf]  ;;  %v6909_v62 = vld [vmem:[#allocation4 + $0xb74] sm:$0xf0]  ;;  %v5577_v49 = vor.u32 %v6845_v42, %v5576_v35 }
 0x15e   :  { %3752 = vmatpush.bf16.msra.mxu2 %v5769_v44  ;;  %3721 = vmatmul.bf16.vlgmr.msrb.gmra.mxu3 %v7294_v38  ;;  %v6877_v44 = vld [vmem:[#allocation4 + $0xa74] sm:$0xf0]  ;;  %v5832_v45 = vld [vmem:[#allocation4 + $0xb68] sm:$0xf] }
 0x15f   :  { %3765 = vmatpush.bf16.msra.mxu3 %v5897_v47  ;;  %v5449_v47 = vor.u32 %v6813_v33, %v5448_v32  ;;  %v5705_v50 = vor.u32 %v6877_v44, %v5704_v43  ;;  %v5432_v51 = vld [vmem:[#allocation4 + $0x848] sm:$0xf]  ;;  %v6809_v54 = vld [vmem:[#allocation4 + $0x854] sm:$0xf0]  ;;  %v5833_v48 = vor.u32 %v6909_v62, %v5832_v45 }
 0x160   :  { %3727 = vmatpush.bf16.msra.mxu0 %v5497_v53  ;;  %v5560_v52 = vld [vmem:[#allocation4 + $0x948] sm:$0xf]  ;;  %v3501_v53 = vpop.f32.mrf.mxu2  ;;  %v6873_v57 = vld [vmem:[#allocation4 + $0xa54] sm:$0xf0]  ;;  %v5433_v63 = vor.u32 %v6809_v54, %v5432_v51  ;;  %v3477_v1 = vpop.f32.mrf.mxu0 }
 0x161   :  { %3740 = vmatpush.bf16.msra.mxu1 %v5625_v55  ;;  %v6841_v55 = vld [vmem:[#allocation4 + $0x954] sm:$0xf0]  ;;  %v3502_v58 = vadd.f32 %v3501_v53, %v3489_v46  ;;  %v3514_v59 = vpop.f32.mrf.mxu3  ;;  %v5544_v5 = vld [vmem:[#allocation4 + $0x928] sm:$0xf]  ;;  %v3490_v7 = vpop.f32.mrf.mxu1 }
 0x162   :  { %3753 = vmatpush.bf16.msra.mxu2 %v5753_v56  ;;  %v5688_v56 = vld [vmem:[#allocation4 + $0xa48] sm:$0xf]  ;;  %v6905_v61 = vld [vmem:[#allocation4 + $0xb54] sm:$0xf0]  ;;  %v5561_v6 = vor.u32 %v6841_v55, %v5560_v52 }
 0x163   :  { %3766 = vmatpush.bf16.msra.mxu3 %v5881_v60  ;;  %v5816_v60 = vld [vmem:[#allocation4 + $0xb48] sm:$0xf]  ;;  %v7364_v0 = vadd.f32 %v3514_v59, %v3502_v58  ;;  %v6869_v14 = vld [vmem:[#allocation4 + $0xa34] sm:$0xf0] }
 0x164   :  { %3728 = vmatpush.bf16.msra.mxu0 %v5481_v2  ;;  %v5689_v2 = vor.u32 %v6873_v57, %v5688_v56  ;;  %v5817_v10 = vor.u32 %v6905_v61, %v5816_v60  ;;  %v5672_v12 = vld [vmem:[#allocation4 + $0xa28] sm:$0xf]  ;;  %v6901_v17 = vld [vmem:[#allocation4 + $0xb34] sm:$0xf0] }
 0x165   :  { %3741 = vmatpush.bf16.msra.mxu1 %v5609_v3  ;;  %v5416_v3 = vld [vmem:[#allocation4 + $0x828] sm:$0xf]  ;;  %v6801_v28 = vld [vmem:[#allocation4 + $0x814] sm:$0xf0] }
 0x166   :  { %3754 = vmatpush.bf16.msra.mxu2 %v5737_v4  ;;  %v6805_v4 = vld [vmem:[#allocation4 + $0x834] sm:$0xf0]  ;;  %v5800_v16 = vld [vmem:[#allocation4 + $0xb28] sm:$0xf] }
 0x167   :  { %3767 = vmatpush.bf16.msra.mxu3 %v5865_v11  ;;  %v6837_v11 = vld [vmem:[#allocation4 + $0x934] sm:$0xf0]  ;;  %v5417_v21 = vor.u32 %v6805_v4, %v5416_v3  ;;  %v5528_v32 = vld [vmem:[#allocation4 + $0x908] sm:$0xf]  ;;  %v5801_v39 = vor.u32 %v6901_v17, %v5800_v16 }
 0x168   :  { %3729 = vmatpush.bf16.msra.mxu0 %v5465_v24  ;;  %v5400_v24 = vld [vmem:[#allocation4 + $0x808] sm:$0xf]  ;;  %v6833_v33 = vld [vmem:[#allocation4 + $0x914] sm:$0xf0]  ;;  %v3503_v36 = vpop.f32.mrf.mxu2 }
 0x169   :  { %3742 = vmatpush.bf16.msra.mxu1 %v5593_v29  ;;  %v5545_v29 = vor.u32 %v6837_v11, %v5544_v5  ;;  %v5656_v35 = vld [vmem:[#allocation4 + $0xa08] sm:$0xf]  ;;  %v6897_v43 = vld [vmem:[#allocation4 + $0xb14] sm:$0xf0]  ;;  %v3516_v44 = vpop.f32.mrf.mxu3  ;;  %v5529_v54 = vor.u32 %v6833_v33, %v5528_v32 }
 0x16a   :  { %3755 = vmatpush.bf16.msra.mxu2 %v5721_v30  ;;  %v5673_v30 = vor.u32 %v6869_v14, %v5672_v12  ;;  %v5784_v42 = vld [vmem:[#allocation4 + $0xb08] sm:$0xf]  ;;  %v6957_v62 = vld [vmem:[#allocation4 + $0xcf4] sm:$0xf0] }
 0x16b   :  { %3768 = vmatpush.bf16.msra.mxu3 %v5849_v41  ;;  %v6865_v41 = vld [vmem:[#allocation4 + $0xa14] sm:$0xf0]  ;;  %v6024_v45 = vld [vmem:[#allocation4 + $0xce8] sm:$0xf]  ;;  %v5785_v55 = vor.u32 %v6897_v43, %v5784_v42 }
 0x16c   :  { %3730 = vmatpush.bf16.msra.mxu0 %v5449_v47  ;;  %v6152_v46 = vld [vmem:[#allocation4 + $0xde8] sm:$0xf]  ;;  %v5401_v47 = vor.u32 %v6801_v28, %v5400_v24  ;;  %v7021_v51 = vld [vmem:[#allocation4 + $0xef4] sm:$0xf0]  ;;  %v5657_v52 = vor.u32 %v6865_v41, %v5656_v35  ;;  %v6025_v56 = vor.u32 %v6957_v62, %v6024_v45 }
 0x16d   :  { %3743 = vmatpush.bf16.msra.mxu1 %v5577_v49  ;;  %v6989_v49 = vld [vmem:[#allocation4 + $0xdf4] sm:$0xf0]  ;;  %v6408_v53 = vld [vmem:[#allocation4 + $0xfe8] sm:$0xf] }
 0x16e   :  { %3756 = vmatpush.bf16.msra.mxu2 %v5705_v50  ;;  %v6280_v50 = vld [vmem:[#allocation4 + $0xee8] sm:$0xf]  ;;  %v6153_v57 = vor.u32 %v6989_v49, %v6152_v46  ;;  %v6953_v60 = vld [vmem:[#allocation4 + $0xcd4] sm:$0xf0] }
 0x16f   :  { %3769 = vmatpush.bf16.msra.mxu3 %v5833_v48  ;;  %v7053_v48 = vld [vmem:[#allocation4 + $0xff4] sm:$0xf0]  ;;  %v6281_v58 = vor.u32 %v7021_v51, %v6280_v50  ;;  %v6008_v59 = vld [vmem:[#allocation4 + $0xcc8] sm:$0xf] }
 0x170   :  { %3731 = vmatpush.bf16.msra.mxu0 %v5433_v63  ;;  %v6136_v61 = vld [vmem:[#allocation4 + $0xdc8] sm:$0xf]  ;;  %v6409_v63 = vor.u32 %v7053_v48, %v6408_v53  ;;  %v6985_v1 = vld [vmem:[#allocation4 + $0xdd4] sm:$0xf0]  ;;  %v6009_v5 = vor.u32 %v6953_v60, %v6008_v59 }
 0x171   :  { %3744 = vmatpush.bf16.msra.mxu1 %v5561_v6  ;;  %v6264_v6 = vld [vmem:[#allocation4 + $0xec8] sm:$0xf]  ;;  %v7049_v4 = vld [vmem:[#allocation4 + $0xfd4] sm:$0xf0]  ;;  %v6137_v7 = vor.u32 %v6985_v1, %v6136_v61 }
 0x172   :  { %3757 = vmatpush.bf16.msra.mxu2 %v5689_v2  ;;  %v7017_v2 = vld [vmem:[#allocation4 + $0xed4] sm:$0xf0]  ;;  %v6392_v3 = vld [vmem:[#allocation4 + $0xfc8] sm:$0xf] }
 0x173   :  { %3770 = vmatpush.bf16.msra.mxu3 %v5817_v10  ;;  %v6265_v10 = vor.u32 %v7017_v2, %v6264_v6  ;;  %v5992_v11 = vld [vmem:[#allocation4 + $0xca8] sm:$0xf]  ;;  %v6949_v12 = vld [vmem:[#allocation4 + $0xcb4] sm:$0xf0]  ;;  %v6393_v16 = vor.u32 %v7049_v4, %v6392_v3 }
 0x174   :  { %3732 = vmatpush.bf16.msra.mxu0 %v5417_v21  ;;  %v6120_v14 = vld [vmem:[#allocation4 + $0xda8] sm:$0xf]  ;;  %v6981_v17 = vld [vmem:[#allocation4 + $0xdb4] sm:$0xf0] }
 0x175   :  { %3745 = vmatpush.bf16.msra.mxu1 %v5545_v29  ;;  %v6248_v21 = vld [vmem:[#allocation4 + $0xea8] sm:$0xf]  ;;  %v7013_v24 = vld [vmem:[#allocation4 + $0xeb4] sm:$0xf0]  ;;  %v6121_v32 = vor.u32 %v6981_v17, %v6120_v14 }
 0x176   :  { %3758 = vmatpush.bf16.msra.mxu2 %v5673_v30  ;;  %v6376_v28 = vld [vmem:[#allocation4 + $0xfa8] sm:$0xf]  ;;  %v7045_v29 = vld [vmem:[#allocation4 + $0xfb4] sm:$0xf0]  ;;  %v5993_v30 = vor.u32 %v6949_v12, %v5992_v11  ;;  %v6249_v33 = vor.u32 %v7013_v24, %v6248_v21 }
 0x177   :  { %3771 = vmatpush.bf16.msra.mxu3 %v5801_v39  ;;  %v5976_v35 = vld [vmem:[#allocation4 + $0xc88] sm:$0xf]  ;;  %v6945_v36 = vld [vmem:[#allocation4 + $0xc94] sm:$0xf0]  ;;  %v6377_v41 = vor.u32 %v7045_v29, %v6376_v28 }
 0x178   :  { %3733 = vmatpush.bf16.msra.mxu0 %v5401_v47  ;;  %v6104_v39 = vld [vmem:[#allocation4 + $0xd88] sm:$0xf]  ;;  %v6977_v42 = vld [vmem:[#allocation4 + $0xd94] sm:$0xf0]  ;;  %v3527_v45 = vpop.f32.mrf.mxu0  ;;  %v5977_v49 = vor.u32 %v6945_v36, %v5976_v35 }
 0x179   :  { %3746 = vmatpush.bf16.msra.mxu1 %v5529_v54  ;;  %v6232_v43 = vld [vmem:[#allocation4 + $0xe88] sm:$0xf]  ;;  %v7009_v44 = vld [vmem:[#allocation4 + $0xe94] sm:$0xf0]  ;;  %v3528_v47 = vadd.f32 %v3527_v45, %v7364_v0  ;;  %v3540_v50 = vpop.f32.mrf.mxu1  ;;  %v6105_v51 = vor.u32 %v6977_v42, %v6104_v39 }
 0x17a   :  { %3759 = vmatpush.bf16.msra.mxu2 %v5657_v52  ;;  %v6360_v62 = vld [vmem:[#allocation4 + $0xf88] sm:$0xf]  ;;  %v7041_v46 = vld [vmem:[#allocation4 + $0xf94] sm:$0xf0]  ;;  %v6233_v54 = vor.u32 %v7009_v44, %v6232_v43 }
 0x17b   :  { %3772 = vmatpush.bf16.msra.mxu3 %v5785_v55  ;;  %3734 = vmatmul.bf16.vlgmr.msra.gmra.mxu0 %v7302_v18  ;;  %v5960_v52 = vld [vmem:[#allocation4 + $0xc68] sm:$0xf]  ;;  %v6941_v53 = vld [vmem:[#allocation4 + $0xc74] sm:$0xf0]  ;;  %v6361_v55 = vor.u32 %v7041_v46, %v6360_v62 }
 0x17c   :  { %3778 = vmatpush.bf16.msrb.mxu0 %v6025_v56  ;;  %3747 = vmatmul.bf16.vlgmr.msra.gmra.mxu1 %v7306_v23  ;;  %v6088_v48 = vld [vmem:[#allocation4 + $0xd68] sm:$0xf]  ;;  %v3541_v56 = vadd.f32 %v3540_v50, %v3528_v47  ;;  %v7005_v59 = vld [vmem:[#allocation4 + $0xe74] sm:$0xf0] }
 0x17d   :  { %3791 = vmatpush.bf16.msrb.mxu1 %v6153_v57  ;;  %3760 = vmatmul.bf16.vlgmr.msra.gmra.mxu2 %v7304_v22  ;;  %v6973_v57 = vld [vmem:[#allocation4 + $0xd74] sm:$0xf0]  ;;  %v6344_v60 = vld [vmem:[#allocation4 + $0xf68] sm:$0xf] }
 0x17e   :  { %3804 = vmatpush.bf16.msrb.mxu2 %v6281_v58  ;;  %3773 = vmatmul.bf16.vlgmr.msra.gmra.mxu3 %v7308_v27  ;;  %v6216_v58 = vld [vmem:[#allocation4 + $0xe68] sm:$0xf]  ;;  %v7037_v61 = vld [vmem:[#allocation4 + $0xf74] sm:$0xf0]  ;;  %v6089_v0 = vor.u32 %v6973_v57, %v6088_v48 }
 0x17f   :  { %3817 = vmatpush.bf16.msrb.mxu3 %v6409_v63  ;;  %v5961_v63 = vor.u32 %v6941_v53, %v5960_v52  ;;  %v6217_v1 = vor.u32 %v7005_v59, %v6216_v58  ;;  %v5944_v6 = vld [vmem:[#allocation4 + $0xc48] sm:$0xf]  ;;  %v6937_v2 = vld [vmem:[#allocation4 + $0xc54] sm:$0xf0]  ;;  %v6345_v4 = vor.u32 %v7037_v61, %v6344_v60  ;;  %v6571_v58 = vld [vmem:[#allocation4 + $0xec] sm:$0xf] }
 0x180   :  { %3779 = vmatpush.bf16.msrb.mxu0 %v6009_v5  ;;  %v6072_v3 = vld [vmem:[#allocation4 + $0xd48] sm:$0xf]  ;;  %v3553_v5 = vpop.f32.mrf.mxu2  ;;  %v7001_v11 = vld [vmem:[#allocation4 + $0xe54] sm:$0xf0]  ;;  %v3529_v21 = vpop.f32.mrf.mxu0  ;;  %v5945_v24 = vor.u32 %v6937_v2, %v5944_v6  ;;  %v4490_v59 = vld [vmem:[#allocation4 + $0xf8] sm:$0xf0] }
 0x181   :  { %3792 = vmatpush.bf16.msrb.mxu1 %v6137_v7  ;;  %v6969_v7 = vld [vmem:[#allocation4 + $0xd54] sm:$0xf0]  ;;  %v3554_v12 = vadd.f32 %v3553_v5, %v3541_v56  ;;  %v3566_v14 = vpop.f32.mrf.mxu3  ;;  %v3542_v28 = vpop.f32.mrf.mxu1  ;;  %v6056_v36 = vld [vmem:[#allocation4 + $0xd28] sm:$0xf]  ;;  %v6603_v60 = vld [vmem:[#allocation4 + $0x1ec] sm:$0xf] }
 0x182   :  { %3805 = vmatpush.bf16.msrb.mxu2 %v6265_v10  ;;  %v6200_v10 = vld [vmem:[#allocation4 + $0xe48] sm:$0xf]  ;;  %v7033_v17 = vld [vmem:[#allocation4 + $0xf54] sm:$0xf0]  ;;  %v4746_v6 = vld [vmem:[#allocation4 + $0x2f8] sm:$0xf0] }
 0x183   :  { %3818 = vmatpush.bf16.msrb.mxu3 %v6393_v16  ;;  %v6328_v16 = vld [vmem:[#allocation4 + $0xf48] sm:$0xf]  ;;  %v7371_v29 = vadd.f32 %v3566_v14, %v3554_v12  ;;  %v6933_v35 = vld [vmem:[#allocation4 + $0xc34] sm:$0xf0]  ;;  %v4874_v5 = vld [vmem:[#allocation4 + $0x3f8] sm:$0xf0] }
 0x184   :  { %3780 = vmatpush.bf16.msrb.mxu0 %v5993_v30  ;;  %v6073_v30 = vor.u32 %v6969_v7, %v6072_v3  ;;  %v6329_v39 = vor.u32 %v7033_v17, %v6328_v16  ;;  %v6184_v42 = vld [vmem:[#allocation4 + $0xe28] sm:$0xf]  ;;  %v6997_v43 = vld [vmem:[#allocation4 + $0xe34] sm:$0xf0]  ;;  %v6567_v14 = vld [vmem:[#allocation4 + $0xcc] sm:$0xf] }
 0x185   :  { %3793 = vmatpush.bf16.msrb.mxu1 %v6121_v32  ;;  %v6201_v32 = vor.u32 %v7001_v11, %v6200_v10  ;;  %v6312_v44 = vld [vmem:[#allocation4 + $0xf28] sm:$0xf]  ;;  %v7029_v45 = vld [vmem:[#allocation4 + $0xf34] sm:$0xf0]  ;;  %v6185_v50 = vor.u32 %v6997_v43, %v6184_v42  ;;  %v4493_v10 = vor.u32 %v6571_v58, %v4490_v59  ;;  %v4474_v16 = vld [vmem:[#allocation4 + $0xd8] sm:$0xf0] }
 0x186   :  { %3806 = vmatpush.bf16.msrb.mxu2 %v6249_v33  ;;  %v5928_v33 = vld [vmem:[#allocation4 + $0xc28] sm:$0xf]  ;;  %v6929_v47 = vld [vmem:[#allocation4 + $0xc14] sm:$0xf0]  ;;  %v6313_v53 = vor.u32 %v7029_v45, %v6312_v44  ;;  %v6599_v17 = vld [vmem:[#allocation4 + $0x1cc] sm:$0xf] }
 0x187   :  { %3819 = vmatpush.bf16.msrb.mxu3 %v6377_v41  ;;  %v6965_v41 = vld [vmem:[#allocation4 + $0xd34] sm:$0xf0]  ;;  %v5929_v62 = vor.u32 %v6933_v35, %v5928_v33  ;;  %v5912_v46 = vld [vmem:[#allocation4 + $0xc08] sm:$0xf]  ;;  %v6631_v28 = vld [vmem:[#allocation4 + $0x2cc] sm:$0xf]  ;;  %v4477_v35 = vor.u32 %v6567_v14, %v4474_v16 }
 0x188   :  { %3781 = vmatpush.bf16.msrb.mxu0 %v5977_v49  ;;  %v6057_v49 = vor.u32 %v6965_v41, %v6056_v36  ;;  %v6168_v52 = vld [vmem:[#allocation4 + $0xe08] sm:$0xf]  ;;  %v6993_v48 = vld [vmem:[#allocation4 + $0xe14] sm:$0xf0]  ;;  %v3555_v57 = vpop.f32.mrf.mxu2  ;;  %v4858_v33 = vld [vmem:[#allocation4 + $0x3d8] sm:$0xf0] }
 0x189   :  { %3794 = vmatpush.bf16.msrb.mxu1 %v6105_v51  ;;  %v6040_v51 = vld [vmem:[#allocation4 + $0xd08] sm:$0xf]  ;;  %v7025_v56 = vld [vmem:[#allocation4 + $0xf14] sm:$0xf0]  ;;  %v3568_v61 = vpop.f32.mrf.mxu3  ;;  %v6169_v3 = vor.u32 %v6993_v48, %v6168_v52  ;;  %v6563_v41 = vld [vmem:[#allocation4 + $0xac] sm:$0xf] }
 0x18a   :  { %3807 = vmatpush.bf16.msrb.mxu2 %v6233_v54  ;;  %v6961_v54 = vld [vmem:[#allocation4 + $0xd14] sm:$0xf0]  ;;  %v4458_v42 = vld [vmem:[#allocation4 + $0xb8] sm:$0xf0]  ;;  %v6595_v43 = vld [vmem:[#allocation4 + $0x1ac] sm:$0xf] }
 0x18b   :  { %3820 = vmatpush.bf16.msrb.mxu3 %v6361_v55  ;;  %v6296_v55 = vld [vmem:[#allocation4 + $0xf08] sm:$0xf]  ;;  %v6041_v2 = vor.u32 %v6961_v54, %v6040_v51  ;;  %v4586_v45 = vld [vmem:[#allocation4 + $0x1b8] sm:$0xf0]  ;;  %v6559_v52 = vld [vmem:[#allocation4 + $0x8c] sm:$0xf] }
 0x18c   :  { %3782 = vmatpush.bf16.msrb.mxu0 %v5961_v63  ;;  %v5913_v63 = vor.u32 %v6929_v47, %v5912_v46  ;;  %v6297_v7 = vor.u32 %v7025_v56, %v6296_v55  ;;  %v4714_v46 = vld [vmem:[#allocation4 + $0x2b8] sm:$0xf0]  ;;  %v6659_v47 = vld [vmem:[#allocation4 + $0x3ac] sm:$0xf]  ;;  %v4589_v51 = vor.u32 %v6595_v43, %v4586_v45 }
 0x18d   :  { %3795 = vmatpush.bf16.msrb.mxu1 %v6089_v0  ;;  %v4618_v0 = vld [vmem:[#allocation4 + $0x1f8] sm:$0xf0]  ;;  %v6591_v48 = vld [vmem:[#allocation4 + $0x18c] sm:$0xf] }
 0x18e   :  { %3808 = vmatpush.bf16.msrb.mxu2 %v6217_v1  ;;  %v6635_v1 = vld [vmem:[#allocation4 + $0x2ec] sm:$0xf]  ;;  %v4621_v11 = vor.u32 %v6603_v60, %v4618_v0  ;;  %v4570_v56 = vld [vmem:[#allocation4 + $0x198] sm:$0xf0] }
 0x18f   :  { %3821 = vmatpush.bf16.msrb.mxu3 %v6345_v4  ;;  %v6667_v4 = vld [vmem:[#allocation4 + $0x3ec] sm:$0xf]  ;;  %v4749_v12 = vor.u32 %v6635_v1, %v4746_v6  ;;  %v4698_v58 = vld [vmem:[#allocation4 + $0x298] sm:$0xf0]  ;;  %v4573_v6 = vor.u32 %v6591_v48, %v4570_v56 }
 0x190   :  { %3783 = vmatpush.bf16.msrb.mxu0 %v5945_v24  ;;  %v4877_v21 = vor.u32 %v6667_v4, %v4874_v5  ;;  %v4602_v24 = vld [vmem:[#allocation4 + $0x1d8] sm:$0xf0]  ;;  %v6623_v57 = vld [vmem:[#allocation4 + $0x28c] sm:$0xf] }
 0x191   :  { %3796 = vmatpush.bf16.msrb.mxu1 %v6073_v30  ;;  %v4730_v30 = vld [vmem:[#allocation4 + $0x2d8] sm:$0xf0]  ;;  %v4605_v36 = vor.u32 %v6599_v17, %v4602_v24  ;;  %v6655_v60 = vld [vmem:[#allocation4 + $0x38c] sm:$0xf] }
 0x192   :  { %3809 = vmatpush.bf16.msrb.mxu2 %v6201_v32  ;;  %v6663_v32 = vld [vmem:[#allocation4 + $0x3cc] sm:$0xf]  ;;  %v4826_v61 = vld [vmem:[#allocation4 + $0x398] sm:$0xf0] }
 0x193   :  { %3822 = vmatpush.bf16.msrb.mxu3 %v6329_v39  ;;  %v4733_v39 = vor.u32 %v6631_v28, %v4730_v30  ;;  %v4861_v44 = vor.u32 %v6663_v32, %v4858_v33  ;;  %v4426_v4 = vld [vmem:[#allocation4 + $0x78] sm:$0xf0]  ;;  %v6587_v5 = vld [vmem:[#allocation4 + $0x16c] sm:$0xf] }
 0x194   :  { %3784 = vmatpush.bf16.msrb.mxu0 %v5929_v62  ;;  %v6627_v62 = vld [vmem:[#allocation4 + $0x2ac] sm:$0xf]  ;;  %v4682_v14 = vld [vmem:[#allocation4 + $0x278] sm:$0xf0] }
 0x195   :  { %3797 = vmatpush.bf16.msrb.mxu1 %v6057_v49  ;;  %v4842_v49 = vld [vmem:[#allocation4 + $0x3b8] sm:$0xf0]  ;;  %v4717_v54 = vor.u32 %v6627_v62, %v4714_v46  ;;  %v6651_v16 = vld [vmem:[#allocation4 + $0x36c] sm:$0xf] }
 0x196   :  { %3810 = vmatpush.bf16.msrb.mxu2 %v6185_v50  ;;  %v4461_v50 = vor.u32 %v6563_v41, %v4458_v42  ;;  %v4845_v55 = vor.u32 %v6659_v47, %v4842_v49  ;;  %v4810_v17 = vld [vmem:[#allocation4 + $0x378] sm:$0xf0]  ;;  %v6551_v28 = vld [vmem:[#allocation4 + $0x4c] sm:$0xf] }
 0x197   :  { %3823 = vmatpush.bf16.msrb.mxu3 %v6313_v53  ;;  %v4442_v53 = vld [vmem:[#allocation4 + $0x98] sm:$0xf0]  ;;  %v6583_v32 = vld [vmem:[#allocation4 + $0x14c] sm:$0xf]  ;;  %v4813_v33 = vor.u32 %v6651_v16, %v4810_v17 }
 0x198   :  { %3785 = vmatpush.bf16.msrb.mxu0 %v5913_v63  ;;  %v3579_v59 = vpop.f32.mrf.mxu0  ;;  %v4445_v0 = vor.u32 %v6559_v52, %v4442_v53  ;;  %v4410_v30 = vld [vmem:[#allocation4 + $0x58] sm:$0xf0]  ;;  %v6579_v53 = vld [vmem:[#allocation4 + $0x12c] sm:$0xf] }
 0x199   :  { %3798 = vmatpush.bf16.msrb.mxu1 %v6041_v2  ;;  %v3580_v63 = vadd.f32 %v3579_v59, %v7371_v29  ;;  %v3592_v1 = vpop.f32.mrf.mxu1  ;;  %v4701_v2 = vor.u32 %v6623_v57, %v4698_v58  ;;  %v4666_v41 = vld [vmem:[#allocation4 + $0x258] sm:$0xf0]  ;;  %v4413_v46 = vor.u32 %v6551_v28, %v4410_v30  ;;  %v6611_v56 = vld [vmem:[#allocation4 + $0x22c] sm:$0xf] }
 0x19a   :  { %3811 = vmatpush.bf16.msrb.mxu2 %v6169_v3  ;;  %v6555_v3 = vld [vmem:[#allocation4 + $0x6c] sm:$0xf]  ;;  %v4794_v45 = vld [vmem:[#allocation4 + $0x358] sm:$0xf0] }
 0x19b   :  { %3824 = vmatpush.bf16.msrb.mxu3 %v6297_v7  ;;  %3786 = vmatmul.bf16.vlgmr.msrb.gmra.mxu0 %v7314_v13  ;;  %v4829_v7 = vor.u32 %v6655_v60, %v4826_v61  ;;  %v4394_v52 = vld [vmem:[#allocation4 + $0x38] sm:$0xf0]  ;;  %v6643_v58 = vld [vmem:[#allocation4 + $0x32c] sm:$0xf] }
 0x19c   :  { %3830 = vmatpush.bf16.msra.mxu0 %v4493_v10  ;;  %3799 = vmatmul.bf16.vlgmr.msrb.gmra.mxu1 %v7318_v20  ;;  %v3593_v10 = vadd.f32 %v3592_v1, %v3580_v63  ;;  %v4650_v57 = vld [vmem:[#allocation4 + $0x238] sm:$0xf0]  ;;  %v6543_v61 = vld [vmem:[#allocation4 + $0xc] sm:$0xf] }
 0x19d   :  { %3843 = vmatpush.bf16.msra.mxu1 %v4621_v11  ;;  %3812 = vmatmul.bf16.vlgmr.msrb.gmra.mxu2 %v7316_v19  ;;  %v4554_v11 = vld [vmem:[#allocation4 + $0x178] sm:$0xf0]  ;;  %v4653_v1 = vor.u32 %v6611_v56, %v4650_v57  ;;  %v6731_v16 = vld [vmem:[#allocation4 + $0x5ec] sm:$0xf] }
 0x19e   :  { %3856 = vmatpush.bf16.msra.mxu2 %v4749_v12  ;;  %3825 = vmatmul.bf16.vlgmr.msrb.gmra.mxu3 %v7320_v26  ;;  %v6619_v12 = vld [vmem:[#allocation4 + $0x26c] sm:$0xf]  ;;  %v4557_v29 = vor.u32 %v6587_v5, %v4554_v11  ;;  %v4778_v59 = vld [vmem:[#allocation4 + $0x338] sm:$0xf0] }
 0x19f   :  { %3869 = vmatpush.bf16.msra.mxu3 %v4877_v21  ;;  %v4429_v21 = vor.u32 %v6555_v3, %v4426_v4  ;;  %v4685_v24 = vor.u32 %v6619_v12, %v4682_v14  ;;  %v4378_v63 = vld [vmem:[#allocation4 + $0x18] sm:$0xf0]  ;;  %v6607_v3 = vld [vmem:[#allocation4 + $0x20c] sm:$0xf]  ;;  %v4781_v4 = vor.u32 %v6643_v58, %v4778_v59 }
 0x1a0   :  { %3831 = vmatpush.bf16.msra.mxu0 %v4477_v35  ;;  %v3605_v35 = vpop.f32.mrf.mxu2  ;;  %v3581_v62 = vpop.f32.mrf.mxu0  ;;  %v4634_v5 = vld [vmem:[#allocation4 + $0x218] sm:$0xf0]  ;;  %v6699_v12 = vld [vmem:[#allocation4 + $0x4ec] sm:$0xf] }
 0x1a1   :  { %3844 = vmatpush.bf16.msra.mxu1 %v4605_v36  ;;  %v4538_v36 = vld [vmem:[#allocation4 + $0x158] sm:$0xf0]  ;;  %v3606_v42 = vadd.f32 %v3605_v35, %v3593_v10  ;;  %v3618_v43 = vpop.f32.mrf.mxu3  ;;  %v3594_v47 = vpop.f32.mrf.mxu1  ;;  %v6723_v57 = vld [vmem:[#allocation4 + $0x5ac] sm:$0xf] }
 0x1a2   :  { %3857 = vmatpush.bf16.msra.mxu2 %v4733_v39  ;;  %v6615_v39 = vld [vmem:[#allocation4 + $0x24c] sm:$0xf]  ;;  %v4762_v10 = vld [vmem:[#allocation4 + $0x318] sm:$0xf0] }
 0x1a3   :  { %3870 = vmatpush.bf16.msra.mxu3 %v4861_v44  ;;  %v6647_v44 = vld [vmem:[#allocation4 + $0x34c] sm:$0xf]  ;;  %v7378_v49 = vadd.f32 %v3618_v43, %v3606_v42  ;;  %v5002_v14 = vld [vmem:[#allocation4 + $0x4f8] sm:$0xf0] }
 0x1a4   :  { %3832 = vmatpush.bf16.msra.mxu0 %v4461_v50  ;;  %v4541_v50 = vor.u32 %v6583_v32, %v4538_v36  ;;  %v4797_v48 = vor.u32 %v6647_v44, %v4794_v45  ;;  %v5258_v28 = vld [vmem:[#allocation4 + $0x6f8] sm:$0xf0]  ;;  %v4637_v32 = vor.u32 %v6607_v3, %v4634_v5  ;;  %v6695_v43 = vld [vmem:[#allocation4 + $0x4cc] sm:$0xf] }
 0x1a5   :  { %3845 = vmatpush.bf16.msra.mxu1 %v4589_v51  ;;  %v4669_v51 = vor.u32 %v6615_v39, %v4666_v41  ;;  %v5386_v35 = vld [vmem:[#allocation4 + $0x7f8] sm:$0xf0]  ;;  %v5005_v39 = vor.u32 %v6699_v12, %v5002_v14  ;;  %v6727_v45 = vld [vmem:[#allocation4 + $0x5cc] sm:$0xf] }
 0x1a6   :  { %3858 = vmatpush.bf16.msra.mxu2 %v4717_v54  ;;  %v6547_v54 = vld [vmem:[#allocation4 + $0x2c] sm:$0xf]  ;;  %v4986_v44 = vld [vmem:[#allocation4 + $0x4d8] sm:$0xf0] }
 0x1a7   :  { %3871 = vmatpush.bf16.msra.mxu3 %v4845_v55  ;;  %v4522_v55 = vld [vmem:[#allocation4 + $0x138] sm:$0xf0]  ;;  %v4397_v60 = vor.u32 %v6547_v54, %v4394_v52  ;;  %v6759_v47 = vld [vmem:[#allocation4 + $0x6cc] sm:$0xf]  ;;  %v4989_v52 = vor.u32 %v6695_v43, %v4986_v44 }
 0x1a8   :  { %3833 = vmatpush.bf16.msra.mxu0 %v4445_v0  ;;  %v4525_v0 = vor.u32 %v6579_v53, %v4522_v55  ;;  %v3607_v11 = vpop.f32.mrf.mxu2  ;;  %v5370_v54 = vld [vmem:[#allocation4 + $0x7d8] sm:$0xf0]  ;;  %v6691_v55 = vld [vmem:[#allocation4 + $0x4ac] sm:$0xf] }
 0x1a9   :  { %3846 = vmatpush.bf16.msra.mxu1 %v4573_v6  ;;  %v6575_v6 = vld [vmem:[#allocation4 + $0x10c] sm:$0xf]  ;;  %v3620_v17 = vpop.f32.mrf.mxu3  ;;  %v4970_v56 = vld [vmem:[#allocation4 + $0x4b8] sm:$0xf0] }
 0x1aa   :  { %3859 = vmatpush.bf16.msra.mxu2 %v4701_v2  ;;  %v4506_v2 = vld [vmem:[#allocation4 + $0x118] sm:$0xf0]  ;;  %v6719_v5 = vld [vmem:[#allocation4 + $0x58c] sm:$0xf] }
 0x1ab   :  { %3872 = vmatpush.bf16.msra.mxu3 %v4829_v7  ;;  %v6639_v7 = vld [vmem:[#allocation4 + $0x30c] sm:$0xf]  ;;  %v4509_v30 = vor.u32 %v6575_v6, %v4506_v2  ;;  %v5098_v59 = vld [vmem:[#allocation4 + $0x5b8] sm:$0xf0] }
 0x1ac   :  { %3834 = vmatpush.bf16.msra.mxu0 %v4429_v21  ;;  %v4381_v21 = vor.u32 %v6543_v61, %v4378_v63  ;;  %v4765_v36 = vor.u32 %v6639_v7, %v4762_v10  ;;  %v5226_v61 = vld [vmem:[#allocation4 + $0x6b8] sm:$0xf0]  ;;  %v6787_v63 = vld [vmem:[#allocation4 + $0x7ac] sm:$0xf]  ;;  %v5101_v2 = vor.u32 %v6723_v57, %v5098_v59  ;;  %v7384_v7 = vld [vmem:[#allocation6] sm:$0xf] }
 0x1ad   :  { %3847 = vmatpush.bf16.msra.mxu1 %v4557_v29  ;;  %v5130_v29 = vld [vmem:[#allocation4 + $0x5f8] sm:$0xf0]  ;;  %v6687_v6 = vld [vmem:[#allocation4 + $0x48c] sm:$0xf] }
 0x1ae   :  { %3860 = vmatpush.bf16.msra.mxu2 %v4685_v24  ;;  %v6763_v24 = vld [vmem:[#allocation4 + $0x6ec] sm:$0xf]  ;;  %v5133_v41 = vor.u32 %v6731_v16, %v5130_v29  ;;  %v5338_v14 = vld [vmem:[#allocation4 + $0x798] sm:$0xf0] }
 0x1af   :  { %3873 = vmatpush.bf16.msra.mxu3 %v4813_v33  ;;  %v6795_v33 = vld [vmem:[#allocation4 + $0x7ec] sm:$0xf]  ;;  %v5261_v42 = vor.u32 %v6763_v24, %v5258_v28  ;;  %v4938_v24 = vld [vmem:[#allocation4 + $0x478] sm:$0xf0] }
 0x1b0   :  { %3835 = vmatpush.bf16.msra.mxu0 %v4413_v46  ;;  %v5389_v62 = vor.u32 %v6795_v33, %v5386_v35  ;;  %v5114_v46 = vld [vmem:[#allocation4 + $0x5d8] sm:$0xf0]  ;;  %v6751_v11 = vld [vmem:[#allocation4 + $0x68c] sm:$0xf] }
 0x1b1   :  { %3848 = vmatpush.bf16.msra.mxu1 %v4541_v50  ;;  %v5242_v50 = vld [vmem:[#allocation4 + $0x6d8] sm:$0xf0]  ;;  %v5117_v53 = vor.u32 %v6727_v45, %v5114_v46  ;;  %v6783_v12 = vld [vmem:[#allocation4 + $0x78c] sm:$0xf] }
 0x1b2   :  { %3861 = vmatpush.bf16.msra.mxu2 %v4669_v51  ;;  %v6791_v51 = vld [vmem:[#allocation4 + $0x7cc] sm:$0xf]  ;;  %v5341_v33 = vor.u32 %v6783_v12, %v5338_v14  ;;  %v5066_v35 = vld [vmem:[#allocation4 + $0x578] sm:$0xf0] }
 0x1b3   :  { %3874 = vmatpush.bf16.msra.mxu3 %v4797_v48  ;;  %v5245_v48 = vor.u32 %v6759_v47, %v5242_v50  ;;  %v5373_v58 = vor.u32 %v6791_v51, %v5370_v54  ;;  %v6683_v29 = vld [vmem:[#allocation4 + $0x46c] sm:$0xf]  ;;  %v4922_v47 = vld [vmem:[#allocation4 + $0x458] sm:$0xf0] }
 0x1b4   :  { %3836 = vmatpush.bf16.msra.mxu0 %v4397_v60  ;;  %v6755_v60 = vld [vmem:[#allocation4 + $0x6ac] sm:$0xf]  ;;  %v4941_v44 = vor.u32 %v6683_v29, %v4938_v24  ;;  %v4890_v14 = vld [vmem:[#allocation4 + $0x418] sm:$0xf0] }
 0x1b5   :  { %3849 = vmatpush.bf16.msra.mxu1 %v4525_v0  ;;  %v5354_v0 = vld [vmem:[#allocation4 + $0x7b8] sm:$0xf0]  ;;  %v5229_v3 = vor.u32 %v6755_v60, %v5226_v61  ;;  %v6715_v28 = vld [vmem:[#allocation4 + $0x56c] sm:$0xf] }
 0x1b6   :  { %3862 = vmatpush.bf16.msra.mxu2 %v4653_v1  ;;  %v4973_v1 = vor.u32 %v6691_v55, %v4970_v56  ;;  %v5357_v10 = vor.u32 %v6787_v63, %v5354_v0  ;;  %v5069_v45 = vor.u32 %v6715_v28, %v5066_v35  ;;  %v6679_v46 = vld [vmem:[#allocation4 + $0x44c] sm:$0xf] }
 0x1b7   :  { %3875 = vmatpush.bf16.msra.mxu3 %v4781_v4  ;;  %v4954_v4 = vld [vmem:[#allocation4 + $0x498] sm:$0xf0]  ;;  %v6711_v50 = vld [vmem:[#allocation4 + $0x54c] sm:$0xf]  ;;  %v4925_v59 = vor.u32 %v6679_v46, %v4922_v47 }
 0x1b8   :  { %3837 = vmatpush.bf16.msra.mxu0 %v4381_v21  ;;  %v4957_v16 = vor.u32 %v6687_v6, %v4954_v4  ;;  %v6775_v57 = vld [vmem:[#allocation4 + $0x74c] sm:$0xf]  ;;  %v4906_v6 = vld [vmem:[#allocation4 + $0x438] sm:$0xf0] }
 0x1b9   :  { %3850 = vmatpush.bf16.msra.mxu1 %v4509_v30  ;;  %v6671_v12 = vld [vmem:[#allocation4 + $0x40c] sm:$0xf] }
 0x1ba   :  { %3863 = vmatpush.bf16.msra.mxu2 %v4637_v32  ;;  %v3644_v32 = vpop.f32.mrf.mxu1  ;;  %v6735_v29 = vld [vmem:[#allocation4 + $0x60c] sm:$0xf] }
 0x1bb   :  { %3876 = vmatpush.bf16.msra.mxu3 %v4765_v36  ;;  %3838 = vmatmul.bf16.vlgmr.msra.gmra.mxu0 %v7280_v9  ;;  %v5082_v9 = vld [vmem:[#allocation4 + $0x598] sm:$0xf0]  ;;  %v6747_v36 = vld [vmem:[#allocation4 + $0x66c] sm:$0xf] }
 0x1bc   :  { %3882 = vmatpush.bf16.msrb.mxu0 %v5005_v39  ;;  %3851 = vmatmul.bf16.vlgmr.msra.gmra.mxu1 %v7287_v25  ;;  %v3631_v25 = vpop.f32.mrf.mxu0  ;;  %v5085_v17 = vor.u32 %v6719_v5, %v5082_v9  ;;  %v5194_v39 = vld [vmem:[#allocation4 + $0x678] sm:$0xf0]  ;;  %v6771_v9 = vld [vmem:[#allocation4 + $0x72c] sm:$0xf] }
 0x1bd   :  { %3895 = vmatpush.bf16.msrb.mxu1 %v5133_v41  ;;  %3864 = vmatmul.bf16.vlgmr.msra.gmra.mxu2 %v7278_v8  ;;  %v640_v8 = vperm.slane %v7384_v7, 2  ;;  %v6779_v41 = vld [vmem:[#allocation4 + $0x76c] sm:$0xf]  ;;  %v5034_v5 = vld [vmem:[#allocation4 + $0x538] sm:$0xf0] }
 0x1be   :  { %3908 = vmatpush.bf16.msrb.mxu2 %v5261_v42  ;;  %3877 = vmatmul.bf16.vlgmr.msra.gmra.mxu3 %v7282_v15  ;;  %v5210_v15 = vld [vmem:[#allocation4 + $0x698] sm:$0xf0]  ;;  %v6923_v47 = vld [vmem:[#allocation4 + $0xbec] sm:$0xf] }
 0x1bf   :  { %3921 = vmatpush.bf16.msrb.mxu3 %v5389_v62  ;;  %v5213_v21 = vor.u32 %v6751_v11, %v5210_v15  ;;  %v3632_v30 = vadd.f32 %v3631_v25, %v640_v8  ;;  %v5322_v42 = vld [vmem:[#allocation4 + $0x778] sm:$0xf0]  ;;  %v5197_v62 = vor.u32 %v6747_v36, %v5194_v39  ;;  %v6739_v8 = vld [vmem:[#allocation4 + $0x62c] sm:$0xf] }
 0x1c0   :  { %3883 = vmatpush.bf16.msrb.mxu0 %v4989_v52  ;;  %v3657_v51 = vpop.f32.mrf.mxu2  ;;  %v5325_v54 = vor.u32 %v6779_v41, %v5322_v42  ;;  %v5050_v52 = vld [vmem:[#allocation4 + $0x558] sm:$0xf0]  ;;  %v6827_v36 = vld [vmem:[#allocation4 + $0x8ec] sm:$0xf]  ;;  %v4893_v42 = vor.u32 %v6671_v12, %v4890_v14 }
 0x1c1   :  { %3896 = vmatpush.bf16.msrb.mxu1 %v5117_v53  ;;  %v3645_v43 = vadd.f32 %v3644_v32, %v3632_v30  ;;  %v6743_v53 = vld [vmem:[#allocation4 + $0x64c] sm:$0xf]  ;;  %v3670_v56 = vpop.f32.mrf.mxu3  ;;  %v5053_v63 = vor.u32 %v6711_v50, %v5050_v52  ;;  %v5290_v11 = vld [vmem:[#allocation4 + $0x738] sm:$0xf0] }
 0x1c2   :  { %3909 = vmatpush.bf16.msrb.mxu2 %v5245_v48  ;;  %v5178_v48 = vld [vmem:[#allocation4 + $0x658] sm:$0xf0]  ;;  %v5293_v28 = vor.u32 %v6771_v9, %v5290_v11  ;;  %v6767_v32 = vld [vmem:[#allocation4 + $0x70c] sm:$0xf] }
 0x1c3   :  { %3922 = vmatpush.bf16.msrb.mxu3 %v5373_v58  ;;  %v3658_v55 = vadd.f32 %v3657_v51, %v3645_v43  ;;  %v5306_v58 = vld [vmem:[#allocation4 + $0x758] sm:$0xf0]  ;;  %v5181_v0 = vor.u32 %v6743_v53, %v5178_v48  ;;  %v6859_v41 = vld [vmem:[#allocation4 + $0x9ec] sm:$0xf] }
 0x1c4   :  { %3884 = vmatpush.bf16.msrb.mxu0 %v4973_v1  ;;  %v3633_v61 = vpop.f32.mrf.mxu0  ;;  %v6675_v1 = vld [vmem:[#allocation4 + $0x42c] sm:$0xf]  ;;  %v5309_v4 = vor.u32 %v6775_v57, %v5306_v58  ;;  %v5146_v30 = vld [vmem:[#allocation4 + $0x618] sm:$0xf0] }
 0x1c5   :  { %3897 = vmatpush.bf16.msrb.mxu1 %v5101_v2  ;;  %v7387_v60 = vadd.f32 %v3670_v56, %v3658_v55  ;;  %v6707_v2 = vld [vmem:[#allocation4 + $0x52c] sm:$0xf]  ;;  %v4909_v15 = vor.u32 %v6675_v1, %v4906_v6  ;;  %v5514_v39 = vld [vmem:[#allocation4 + $0x8f8] sm:$0xf0]  ;;  %v5149_v46 = vor.u32 %v6735_v29, %v5146_v30 }
 0x1c6   :  { %3910 = vmatpush.bf16.msrb.mxu2 %v5229_v3  ;;  %v3646_v3 = vpop.f32.mrf.mxu1  ;;  %v5642_v43 = vld [vmem:[#allocation4 + $0x9f8] sm:$0xf0]  ;;  %v6823_v48 = vld [vmem:[#allocation4 + $0x8cc] sm:$0xf] }
 0x1c7   :  { %3923 = vmatpush.bf16.msrb.mxu3 %v5357_v10  ;;  %v5162_v10 = vld [vmem:[#allocation4 + $0x638] sm:$0xf0]  ;;  %v5645_v52 = vor.u32 %v6859_v41, %v5642_v43  ;;  %v6855_v56 = vld [vmem:[#allocation4 + $0x9cc] sm:$0xf] }
 0x1c8   :  { %3885 = vmatpush.bf16.msrb.mxu0 %v4957_v16  ;;  %v5037_v16 = vor.u32 %v6707_v2, %v5034_v5  ;;  %v5165_v25 = vor.u32 %v6739_v8, %v5162_v10  ;;  %v3659_v24 = vpop.f32.mrf.mxu2  ;;  %v5898_v50 = vld [vmem:[#allocation4 + $0xbf8] sm:$0xf0]  ;;  %v6819_v3 = vld [vmem:[#allocation4 + $0x8ac] sm:$0xf] }
 0x1c9   :  { %3898 = vmatpush.bf16.msrb.mxu1 %v5085_v17  ;;  %v6703_v17 = vld [vmem:[#allocation4 + $0x50c] sm:$0xf]  ;;  %v3672_v35 = vpop.f32.mrf.mxu3  ;;  %v5498_v55 = vld [vmem:[#allocation4 + $0x8d8] sm:$0xf0]  ;;  %v5901_v57 = vor.u32 %v6923_v47, %v5898_v50 }
 0x1ca   :  { %3911 = vmatpush.bf16.msrb.mxu2 %v5213_v21  ;;  %v5018_v21 = vld [vmem:[#allocation4 + $0x518] sm:$0xf0]  ;;  %v5501_v1 = vor.u32 %v6823_v48, %v5498_v55  ;;  %v6851_v5 = vld [vmem:[#allocation4 + $0x9ac] sm:$0xf] }
 0x1cb   :  { %3924 = vmatpush.bf16.msrb.mxu3 %v5341_v33  ;;  %v5274_v33 = vld [vmem:[#allocation4 + $0x718] sm:$0xf0]  ;;  %v6883_v9 = vld [vmem:[#allocation4 + $0xaac] sm:$0xf] }
 0x1cc   :  { %3886 = vmatpush.bf16.msrb.mxu0 %v4941_v44  ;;  %v6891_v44 = vld [vmem:[#allocation4 + $0xaec] sm:$0xf]  ;;  %v5277_v51 = vor.u32 %v6767_v32, %v5274_v33  ;;  %v5626_v58 = vld [vmem:[#allocation4 + $0x9d8] sm:$0xf0] }
 0x1cd   :  { %3899 = vmatpush.bf16.msrb.mxu1 %v5069_v45  ;;  %v5770_v45 = vld [vmem:[#allocation4 + $0xaf8] sm:$0xf0]  ;;  %v5629_v6 = vor.u32 %v6855_v56, %v5626_v58  ;;  %v6911_v32 = vld [vmem:[#allocation4 + $0xb8c] sm:$0xf] }
 0x1ce   :  { %3912 = vmatpush.bf16.msrb.mxu2 %v5197_v62  ;;  %v5021_v62 = vor.u32 %v6703_v17, %v5018_v21  ;;  %v5773_v53 = vor.u32 %v6891_v44, %v5770_v45  ;;  %v5754_v61 = vld [vmem:[#allocation4 + $0xad8] sm:$0xf0]  ;;  %v6815_v17 = vld [vmem:[#allocation4 + $0x88c] sm:$0xf] }
 0x1cf   :  { %3925 = vmatpush.bf16.msrb.mxu3 %v5325_v54  ;;  %v5517_v54 = vor.u32 %v6827_v36, %v5514_v39  ;;  %v5610_v10 = vld [vmem:[#allocation4 + $0x9b8] sm:$0xf0]  ;;  %v6811_v36 = vld [vmem:[#allocation4 + $0x86c] sm:$0xf] }
 0x1d0   :  { %3887 = vmatpush.bf16.msrb.mxu0 %v4925_v59  ;;  %v6887_v59 = vld [vmem:[#allocation4 + $0xacc] sm:$0xf]  ;;  %v5738_v11 = vld [vmem:[#allocation4 + $0xab8] sm:$0xf0] }
 0x1d1   :  { %3900 = vmatpush.bf16.msrb.mxu1 %v5053_v63  ;;  %v6919_v63 = vld [vmem:[#allocation4 + $0xbcc] sm:$0xf]  ;;  %v5757_v2 = vor.u32 %v6887_v59, %v5754_v61  ;;  %v5866_v12 = vld [vmem:[#allocation4 + $0xbb8] sm:$0xf0] }
 0x1d2   :  { %3913 = vmatpush.bf16.msrb.mxu2 %v5181_v0  ;;  %v5882_v0 = vld [vmem:[#allocation4 + $0xbd8] sm:$0xf0]  ;;  %v6843_v41 = vld [vmem:[#allocation4 + $0x96c] sm:$0xf] }
 0x1d3   :  { %3926 = vmatpush.bf16.msrb.mxu3 %v5309_v4  ;;  %v5482_v4 = vld [vmem:[#allocation4 + $0x8b8] sm:$0xf0]  ;;  %v5885_v8 = vor.u32 %v6919_v63, %v5882_v0  ;;  %v6875_v45 = vld [vmem:[#allocation4 + $0xa6c] sm:$0xf] }
 0x1d4   :  { %3888 = vmatpush.bf16.msrb.mxu0 %v4909_v15  ;;  %v6915_v15 = vld [vmem:[#allocation4 + $0xbac] sm:$0xf]  ;;  %v5485_v14 = vor.u32 %v6819_v3, %v5482_v4  ;;  %v5466_v21 = vld [vmem:[#allocation4 + $0x898] sm:$0xf0] }
 0x1d5   :  { %3901 = vmatpush.bf16.msrb.mxu1 %v5037_v16  ;;  %v5613_v16 = vor.u32 %v6851_v5, %v5610_v10  ;;  %v5869_v29 = vor.u32 %v6915_v15, %v5866_v12  ;;  %v5594_v24 = vld [vmem:[#allocation4 + $0x998] sm:$0xf0]  ;;  %v6839_v48 = vld [vmem:[#allocation4 + $0x94c] sm:$0xf] }
 0x1d6   :  { %3914 = vmatpush.bf16.msrb.mxu2 %v5165_v25  ;;  %v5741_v25 = vor.u32 %v6883_v9, %v5738_v11  ;;  %v5722_v30 = vld [vmem:[#allocation4 + $0xa98] sm:$0xf0]  ;;  %v6871_v58 = vld [vmem:[#allocation4 + $0xa4c] sm:$0xf] }
 0x1d7   :  { %3927 = vmatpush.bf16.msrb.mxu3 %v5293_v28  ;;  %v6879_v28 = vld [vmem:[#allocation4 + $0xa8c] sm:$0xf]  ;;  %v5450_v39 = vld [vmem:[#allocation4 + $0x878] sm:$0xf0] }
 0x1d8   :  { %3889 = vmatpush.bf16.msrb.mxu0 %v4893_v42  ;;  %v7393_v33 = vpop.f32.mrf.mxu0  ;;  %v5725_v35 = vor.u32 %v6879_v28, %v5722_v30  ;;  %v5578_v44 = vld [vmem:[#allocation4 + $0x978] sm:$0xf0]  ;;  %v5453_v50 = vor.u32 %v6811_v36, %v5450_v39  ;;  %v6903_v63 = vld [vmem:[#allocation4 + $0xb4c] sm:$0xf] }
 0x1d9   :  { %3902 = vmatpush.bf16.msrb.mxu1 %v5021_v62  ;;  %v7395_v42 = vpop.f32.mrf.mxu1  ;;  %v5706_v62 = vld [vmem:[#allocation4 + $0xa78] sm:$0xf0]  ;;  %v6803_v4 = vld [vmem:[#allocation4 + $0x82c] sm:$0xf] }
 0x1da   :  { %3915 = vmatpush.bf16.msrb.mxu2 %v5149_v46  ;;  %v6907_v46 = vld [vmem:[#allocation4 + $0xb6c] sm:$0xf]  ;;  %v5834_v47 = vld [vmem:[#allocation4 + $0xb78] sm:$0xf0] }
 0x1db   :  { %3928 = vmatpush.bf16.msrb.mxu3 %v5277_v51  ;;  %3890 = vmatmul.bf16.vlgmr.msrb.gmra.mxu0 %v7292_v37  ;;  %v5850_v37 = vld [vmem:[#allocation4 + $0xb98] sm:$0xf0]  ;;  %v5581_v51 = vor.u32 %v6843_v41, %v5578_v44  ;;  %v5837_v56 = vor.u32 %v6907_v46, %v5834_v47  ;;  %v6867_v15 = vld [vmem:[#allocation4 + $0xa2c] sm:$0xf] }
 0x1dc   :  { %3934 = vmatpush.bf16.msra.mxu0 %v5517_v54  ;;  %3903 = vmatmul.bf16.vlgmr.msrb.gmra.mxu1 %v7296_v40  ;;  %v5853_v43 = vor.u32 %v6911_v32, %v5850_v37  ;;  %v5709_v54 = vor.u32 %v6875_v45, %v5706_v62  ;;  %v5690_v59 = vld [vmem:[#allocation4 + $0xa58] sm:$0xf0]  ;;  %v6863_v30 = vld [vmem:[#allocation4 + $0xa0c] sm:$0xf] }
 0x1dd   :  { %3947 = vmatpush.bf16.msra.mxu1 %v5645_v52  ;;  %3916 = vmatmul.bf16.vlgmr.msrb.gmra.mxu2 %v7290_v34  ;;  %v6847_v34 = vld [vmem:[#allocation4 + $0x98c] sm:$0xf]  ;;  %v5818_v0 = vld [vmem:[#allocation4 + $0xb58] sm:$0xf0]  ;;  %v5693_v3 = vor.u32 %v6871_v58, %v5690_v59 }
 0x1de   :  { %3960 = vmatpush.bf16.msra.mxu2 %v5773_v53  ;;  %3929 = vmatmul.bf16.vlgmr.msrb.gmra.mxu3 %v7294_v38  ;;  %v5469_v38 = vor.u32 %v6815_v17, %v5466_v21  ;;  %v5597_v40 = vor.u32 %v6847_v34, %v5594_v24  ;;  %v6807_v52 = vld [vmem:[#allocation4 + $0x84c] sm:$0xf]  ;;  %v5434_v53 = vld [vmem:[#allocation4 + $0x858] sm:$0xf0]  ;;  %v5821_v9 = vor.u32 %v6903_v63, %v5818_v0 }
 0x1df   :  { %3973 = vmatpush.bf16.msra.mxu3 %v5901_v57  ;;  %v5562_v57 = vld [vmem:[#allocation4 + $0x958] sm:$0xf0]  ;;  %v6799_v17 = vld [vmem:[#allocation4 + $0x80c] sm:$0xf] }
 0x1e0   :  { %3935 = vmatpush.bf16.msra.mxu0 %v5501_v1  ;;  %v7397_v55 = vpop.f32.mrf.mxu2  ;;  %v5437_v1 = vor.u32 %v6807_v52, %v5434_v53  ;;  %v5418_v5 = vld [vmem:[#allocation4 + $0x838] sm:$0xf0]  ;;  %v6831_v24 = vld [vmem:[#allocation4 + $0x90c] sm:$0xf] }
 0x1e1   :  { %3948 = vmatpush.bf16.msra.mxu1 %v5629_v6  ;;  %v7399_v61 = vpop.f32.mrf.mxu3  ;;  %v3685_v6 = vpop.f32.mrf.mxu0  ;;  %v5546_v11 = vld [vmem:[#allocation4 + $0x938] sm:$0xf0]  ;;  %v6955_v39 = vld [vmem:[#allocation4 + $0xcec] sm:$0xf] }
 0x1e2   :  { %3961 = vmatpush.bf16.msra.mxu2 %v5757_v2  ;;  %v5565_v2 = vor.u32 %v6839_v48, %v5562_v57  ;;  %v3698_v10 = vpop.f32.mrf.mxu1  ;;  %v5674_v12 = vld [vmem:[#allocation4 + $0xa38] sm:$0xf0]  ;;  %v7019_v62 = vld [vmem:[#allocation4 + $0xeec] sm:$0xf] }
 0x1e3   :  { %3974 = vmatpush.bf16.msra.mxu3 %v5885_v8  ;;  %v6835_v8 = vld [vmem:[#allocation4 + $0x92c] sm:$0xf]  ;;  %v5402_v21 = vld [vmem:[#allocation4 + $0x818] sm:$0xf0] }
 0x1e4   :  { %3936 = vmatpush.bf16.msra.mxu0 %v5485_v14  ;;  %v6899_v14 = vld [vmem:[#allocation4 + $0xb2c] sm:$0xf]  ;;  %v5549_v34 = vor.u32 %v6835_v8, %v5546_v11  ;;  %v5530_v28 = vld [vmem:[#allocation4 + $0x918] sm:$0xf0]  ;;  %v5405_v44 = vor.u32 %v6799_v17, %v5402_v21 }
 0x1e5   :  { %3949 = vmatpush.bf16.msra.mxu1 %v5613_v16  ;;  %v5802_v16 = vld [vmem:[#allocation4 + $0xb38] sm:$0xf0]  ;;  %v5533_v47 = vor.u32 %v6831_v24, %v5530_v28  ;;  %v6951_v57 = vld [vmem:[#allocation4 + $0xccc] sm:$0xf] }
 0x1e6   :  { %3962 = vmatpush.bf16.msra.mxu2 %v5741_v25  ;;  %v5421_v25 = vor.u32 %v6803_v4, %v5418_v5  ;;  %v5805_v37 = vor.u32 %v6899_v14, %v5802_v16  ;;  %v6026_v41 = vld [vmem:[#allocation4 + $0xcf8] sm:$0xf0]  ;;  %v6983_v59 = vld [vmem:[#allocation4 + $0xdcc] sm:$0xf] }
 0x1e7   :  { %3975 = vmatpush.bf16.msra.mxu3 %v5869_v29  ;;  %v5677_v29 = vor.u32 %v6867_v15, %v5674_v12  ;;  %v6154_v45 = vld [vmem:[#allocation4 + $0xdf8] sm:$0xf0]  ;;  %v6029_v53 = vor.u32 %v6955_v39, %v6026_v41  ;;  %v6947_v10 = vld [vmem:[#allocation4 + $0xcac] sm:$0xf] }
 0x1e8   :  { %3937 = vmatpush.bf16.msra.mxu0 %v5469_v38  ;;  %v3711_v32 = vpop.f32.mrf.mxu2  ;;  %v5658_v38 = vld [vmem:[#allocation4 + $0xa18] sm:$0xf0]  ;;  %v6979_v11 = vld [vmem:[#allocation4 + $0xdac] sm:$0xf] }
 0x1e9   :  { %3950 = vmatpush.bf16.msra.mxu1 %v5597_v40  ;;  %v6895_v40 = vld [vmem:[#allocation4 + $0xb0c] sm:$0xf]  ;;  %v3724_v36 = vpop.f32.mrf.mxu3  ;;  %v6282_v46 = vld [vmem:[#allocation4 + $0xef8] sm:$0xf0] }
 0x1ea   :  { %3963 = vmatpush.bf16.msra.mxu2 %v5725_v35  ;;  %v5786_v35 = vld [vmem:[#allocation4 + $0xb18] sm:$0xf0]  ;;  %v7011_v14 = vld [vmem:[#allocation4 + $0xeac] sm:$0xf] }
 0x1eb   :  { %3976 = vmatpush.bf16.msra.mxu3 %v5853_v43  ;;  %v6987_v43 = vld [vmem:[#allocation4 + $0xdec] sm:$0xf]  ;;  %v5789_v52 = vor.u32 %v6895_v40, %v5786_v35  ;;  %v6010_v58 = vld [vmem:[#allocation4 + $0xcd8] sm:$0xf0] }
 0x1ec   :  { %3938 = vmatpush.bf16.msra.mxu0 %v5453_v50  ;;  %v5661_v50 = vor.u32 %v6863_v30, %v5658_v38  ;;  %v6157_v48 = vor.u32 %v6987_v43, %v6154_v45  ;;  %v6138_v0 = vld [vmem:[#allocation4 + $0xdd8] sm:$0xf0]  ;;  %v6013_v4 = vor.u32 %v6951_v57, %v6010_v58  ;;  %v6943_v24 = vld [vmem:[#allocation4 + $0xc8c] sm:$0xf] }
 0x1ed   :  { %3951 = vmatpush.bf16.msra.mxu1 %v5581_v51  ;;  %v7051_v51 = vld [vmem:[#allocation4 + $0xfec] sm:$0xf]  ;;  %v6266_v6 = vld [vmem:[#allocation4 + $0xed8] sm:$0xf0]  ;;  %v6141_v5 = vor.u32 %v6983_v59, %v6138_v0 }
 0x1ee   :  { %3964 = vmatpush.bf16.msra.mxu2 %v5709_v54  ;;  %v6410_v54 = vld [vmem:[#allocation4 + $0xff8] sm:$0xf0]  ;;  %v6975_v28 = vld [vmem:[#allocation4 + $0xd8c] sm:$0xf] }
 0x1ef   :  { %3977 = vmatpush.bf16.msra.mxu3 %v5837_v56  ;;  %v6285_v56 = vor.u32 %v7019_v62, %v6282_v46  ;;  %v6413_v63 = vor.u32 %v7051_v51, %v6410_v54  ;;  %v6122_v12 = vld [vmem:[#allocation4 + $0xdb8] sm:$0xf0]  ;;  %v6939_v41 = vld [vmem:[#allocation4 + $0xc6c] sm:$0xf] }
 0x1f0   :  { %3939 = vmatpush.bf16.msra.mxu0 %v5437_v1  ;;  %v7015_v1 = vld [vmem:[#allocation4 + $0xecc] sm:$0xf]  ;;  %v6250_v16 = vld [vmem:[#allocation4 + $0xeb8] sm:$0xf0] }
 0x1f1   :  { %3952 = vmatpush.bf16.msra.mxu1 %v5565_v2  ;;  %v7047_v2 = vld [vmem:[#allocation4 + $0xfcc] sm:$0xf]  ;;  %v6269_v8 = vor.u32 %v7015_v1, %v6266_v6  ;;  %v6378_v17 = vld [vmem:[#allocation4 + $0xfb8] sm:$0xf0] }
 0x1f2   :  { %3965 = vmatpush.bf16.msra.mxu2 %v5693_v3  ;;  %v6394_v3 = vld [vmem:[#allocation4 + $0xfd8] sm:$0xf0]  ;;  %v7003_v46 = vld [vmem:[#allocation4 + $0xe6c] sm:$0xf] }
 0x1f3   :  { %3978 = vmatpush.bf16.msra.mxu3 %v5821_v9  ;;  %v5994_v9 = vld [vmem:[#allocation4 + $0xcb8] sm:$0xf0]  ;;  %v6397_v15 = vor.u32 %v7047_v2, %v6394_v3  ;;  %v6967_v57 = vld [vmem:[#allocation4 + $0xd4c] sm:$0xf] }
 0x1f4   :  { %3940 = vmatpush.bf16.msra.mxu0 %v5421_v25  ;;  %v7043_v25 = vld [vmem:[#allocation4 + $0xfac] sm:$0xf]  ;;  %v5997_v21 = vor.u32 %v6947_v10, %v5994_v9  ;;  %v6106_v32 = vld [vmem:[#allocation4 + $0xd98] sm:$0xf0] }
 0x1f5   :  { %3953 = vmatpush.bf16.msra.mxu1 %v5549_v34  ;;  %v6125_v34 = vor.u32 %v6979_v11, %v6122_v12  ;;  %v6381_v30 = vor.u32 %v7043_v25, %v6378_v17  ;;  %v6362_v40 = vld [vmem:[#allocation4 + $0xf98] sm:$0xf0]  ;;  %v6109_v36 = vor.u32 %v6975_v28, %v6106_v32  ;;  %v6999_v0 = vld [vmem:[#allocation4 + $0xe4c] sm:$0xf] }
 0x1f6   :  { %3966 = vmatpush.bf16.msra.mxu2 %v5677_v29  ;;  %v6253_v29 = vor.u32 %v7011_v14, %v6250_v16  ;;  %v5962_v43 = vld [vmem:[#allocation4 + $0xc78] sm:$0xf0]  ;;  %v7031_v2 = vld [vmem:[#allocation4 + $0xf4c] sm:$0xf] }
 0x1f7   :  { %3979 = vmatpush.bf16.msra.mxu3 %v5805_v37  ;;  %v7007_v37 = vld [vmem:[#allocation4 + $0xe8c] sm:$0xf]  ;;  %v6090_v62 = vld [vmem:[#allocation4 + $0xd78] sm:$0xf0]  ;;  %v5965_v54 = vor.u32 %v6939_v41, %v5962_v43 }
 0x1f8   :  { %3941 = vmatpush.bf16.msra.mxu0 %v5405_v44  ;;  %v7405_v38 = vpop.f32.mrf.mxu0  ;;  %v6971_v44 = vld [vmem:[#allocation4 + $0xd6c] sm:$0xf]  ;;  %v6346_v51 = vld [vmem:[#allocation4 + $0xf78] sm:$0xf0] }
 0x1f9   :  { %3954 = vmatpush.bf16.msra.mxu1 %v5533_v47  ;;  %v7407_v35 = vpop.f32.mrf.mxu1  ;;  %v6218_v47 = vld [vmem:[#allocation4 + $0xe78] sm:$0xf0]  ;;  %v6963_v14 = vld [vmem:[#allocation4 + $0xd2c] sm:$0xf] }
 0x1fa   :  { %3967 = vmatpush.bf16.msra.mxu2 %v5661_v50  ;;  %v7035_v50 = vld [vmem:[#allocation4 + $0xf6c] sm:$0xf]  ;;  %v6202_v1 = vld [vmem:[#allocation4 + $0xe58] sm:$0xf0] }
 0x1fb   :  { %3980 = vmatpush.bf16.msra.mxu3 %v5789_v52  ;;  %3942 = vmatmul.bf16.vlgmr.msra.gmra.mxu0 %v7302_v18  ;;  %v5978_v18 = vld [vmem:[#allocation4 + $0xc98] sm:$0xf0]  ;;  %v6093_v52 = vor.u32 %v6971_v44, %v6090_v62  ;;  %v6349_v58 = vor.u32 %v7035_v50, %v6346_v51  ;;  %v6205_v11 = vor.u32 %v6999_v0, %v6202_v1  ;;  %v6995_v17 = vld [vmem:[#allocation4 + $0xe2c] sm:$0xf] }
 0x1fc   :  { %3986 = vmatpush.bf16.msrb.mxu0 %v6029_v53  ;;  %3955 = vmatmul.bf16.vlgmr.msra.gmra.mxu1 %v7306_v23  ;;  %v7039_v23 = vld [vmem:[#allocation4 + $0xf8c] sm:$0xf]  ;;  %v6221_v53 = vor.u32 %v7003_v46, %v6218_v47  ;;  %v6330_v3 = vld [vmem:[#allocation4 + $0xf58] sm:$0xf0] }
 0x1fd   :  { %3999 = vmatpush.bf16.msrb.mxu1 %v6157_v48  ;;  %3968 = vmatmul.bf16.vlgmr.msra.gmra.mxu2 %v7304_v22  ;;  %v6234_v22 = vld [vmem:[#allocation4 + $0xe98] sm:$0xf0]  ;;  %v6365_v45 = vor.u32 %v7039_v23, %v6362_v40  ;;  %v6935_v48 = vld [vmem:[#allocation4 + $0xc4c] sm:$0xf]  ;;  %v6333_v16 = vor.u32 %v7031_v2, %v6330_v3 }
 0x1fe   :  { %4012 = vmatpush.bf16.msrb.mxu2 %v6285_v56  ;;  %3981 = vmatmul.bf16.vlgmr.msra.gmra.mxu3 %v7308_v27  ;;  %v5981_v27 = vor.u32 %v6943_v24, %v5978_v18  ;;  %v6237_v39 = vor.u32 %v7007_v37, %v6234_v22  ;;  %v5946_v56 = vld [vmem:[#allocation4 + $0xc58] sm:$0xf0]  ;;  %v6927_v28 = vld [vmem:[#allocation4 + $0xc0c] sm:$0xf] }
 0x1ff   :  { %4025 = vmatpush.bf16.msrb.mxu3 %v6413_v63  ;;  %v6074_v63 = vld [vmem:[#allocation4 + $0xd58] sm:$0xf0]  ;;  %v6959_v32 = vld [vmem:[#allocation4 + $0xd0c] sm:$0xf] }
 0x200   :  { %3987 = vmatpush.bf16.msrb.mxu0 %v6013_v4  ;;  %v7409_v59 = vpop.f32.mrf.mxu2  ;;  %v3737_v4 = vpop.f32.mrf.mxu0  ;;  %v6077_v9 = vor.u32 %v6967_v57, %v6074_v63  ;;  %v5930_v12 = vld [vmem:[#allocation4 + $0xc38] sm:$0xf0]  ;;  %v6991_v23 = vld [vmem:[#allocation4 + $0xe0c] sm:$0xf]  ;;  %v7058_v63 = vld [vmem:[#allocation7 + $0x20] sm:$0xff] }
 0x201   :  { %4000 = vmatpush.bf16.msrb.mxu1 %v6141_v5  ;;  %v7411_v6 = vpop.f32.mrf.mxu3  ;;  %v3684_v5 = vadd.f32 %v7393_v33, %v7387_v60  ;;  %v3750_v10 = vpop.f32.mrf.mxu1  ;;  %v6058_v25 = vld [vmem:[#allocation4 + $0xd38] sm:$0xf0] }
 0x202   :  { %4013 = vmatpush.bf16.msrb.mxu2 %v6269_v8  ;;  %v5949_v8 = vor.u32 %v6935_v48, %v5946_v56  ;;  %v6061_v33 = vor.u32 %v6963_v14, %v6058_v25  ;;  %v6042_v22 = vld [vmem:[#allocation4 + $0xd18] sm:$0xf0]  ;;  %v7059_v48 = vld [vmem:[#allocation7 + $0x28] sm:$0xff] }
 0x203   :  { %4026 = vmatpush.bf16.msrb.mxu3 %v6397_v15  ;;  %v6931_v15 = vld [vmem:[#allocation4 + $0xc2c] sm:$0xf]  ;;  %v3697_v24 = vadd.f32 %v7395_v42, %v3684_v5  ;;  %v6170_v40 = vld [vmem:[#allocation4 + $0xe18] sm:$0xf0]  ;;  %v6045_v44 = vor.u32 %v6959_v32, %v6042_v22  ;;  %v641_v32 = vperm.slane %v7384_v7, 3  ;;  %v7084_v7 = vld [vmem:[#allocation7 + $0xf0] sm:$0xff] }
 0x204   :  { %3988 = vmatpush.bf16.msrb.mxu0 %v5997_v21  ;;  %v6186_v21 = vld [vmem:[#allocation4 + $0xe38] sm:$0xf0]  ;;  %v5933_v60 = vor.u32 %v6931_v15, %v5930_v12  ;;  %v7075_v56 = vld [vmem:[#allocation7 + $0xa8] sm:$0xff] }
 0x205   :  { %4001 = vmatpush.bf16.msrb.mxu1 %v6125_v34  ;;  %v7027_v34 = vld [vmem:[#allocation4 + $0xf2c] sm:$0xf]  ;;  %v6189_v18 = vor.u32 %v6995_v17, %v6186_v21  ;;  %v3710_v42 = vadd.f32 %v7397_v55, %v3697_v24  ;;  %v7061_v46 = vld [vmem:[#allocation7 + $0x38] sm:$0xff]  ;;  %v7060_v55 = vld [vmem:[#allocation7 + $0x30] sm:$0xff] }
 0x206   :  { %4014 = vmatpush.bf16.msrb.mxu2 %v6253_v29  ;;  %v6314_v29 = vld [vmem:[#allocation4 + $0xf38] sm:$0xf0]  ;;  %v7063_v12 = vld [vmem:[#allocation7 + $0x48] sm:$0xff]  ;;  %v7054_v21 = vld [vmem:[#allocation7] sm:$0xff] }
 0x207   :  { %4027 = vmatpush.bf16.msrb.mxu3 %v6381_v30  ;;  %v5914_v30 = vld [vmem:[#allocation4 + $0xc18] sm:$0xf0]  ;;  %v6317_v37 = vor.u32 %v7027_v34, %v6314_v29  ;;  %v3723_v51 = vadd.f32 %v7399_v61, %v3710_v42  ;;  %v7071_v14 = vld [vmem:[#allocation7 + $0x88] sm:$0xff]  ;;  %v4038_v34 = vmax.f32 %v7351_v31, 0.0  ;;  %v7062_v29 = vld [vmem:[#allocation7 + $0x40] sm:$0xff] }
 0x208   :  { %3989 = vmatpush.bf16.msrb.mxu0 %v5981_v27  ;;  %v3763_v27 = vpop.f32.mrf.mxu2  ;;  %v5917_v43 = vor.u32 %v6927_v28, %v5914_v30  ;;  %v7069_v47 = vld [vmem:[#allocation7 + $0x78] sm:$0xff]  ;;  %v7070_v24 = vld [vmem:[#allocation7 + $0x80] sm:$0xff] }
 0x209   :  { %4002 = vmatpush.bf16.msrb.mxu1 %v6109_v36  ;;  %v7023_v36 = vld [vmem:[#allocation4 + $0xf0c] sm:$0xf]  ;;  %v3776_v41 = vpop.f32.mrf.mxu3  ;;  %v7077_v50 = vld [vmem:[#allocation7 + $0xb8] sm:$0xff] }
 0x20a   :  { %4015 = vmatpush.bf16.msrb.mxu2 %v6237_v39  ;;  %v6298_v39 = vld [vmem:[#allocation4 + $0xf18] sm:$0xf0] }
 0x20b   :  { %4028 = vmatpush.bf16.msrb.mxu3 %v6365_v45  ;;  %v6173_v45 = vor.u32 %v6991_v23, %v6170_v40  ;;  %v6301_v62 = vor.u32 %v7023_v36, %v6298_v39  ;;  %v7065_v1 = vld [vmem:[#allocation7 + $0x58] sm:$0xff] }
 0x20c   :  { %3990 = vmatpush.bf16.msrb.mxu0 %v5965_v54  ;;  %v3736_v54 = vadd.f32 %v7405_v38, %v3723_v51  ;;  %v7067_v38 = vld [vmem:[#allocation7 + $0x68] sm:$0xff]  ;;  %v7073_v2 = vld [vmem:[#allocation7 + $0x98] sm:$0xff] }
 0x20d   :  { %4003 = vmatpush.bf16.msrb.mxu1 %v6093_v52  ;;  %v7068_v52 = vld [vmem:[#allocation7 + $0x70] sm:$0xff] }
 0x20e   :  { %4016 = vmatpush.bf16.msrb.mxu2 %v6221_v53  ;;  %v7076_v53 = vld [vmem:[#allocation7 + $0xb0] sm:$0xff]  ;;  %v3749_v61 = vadd.f32 %v7407_v35, %v3736_v54  ;;  %v7057_v35 = vld [vmem:[#allocation7 + $0x18] sm:$0xff] }
 0x20f   :  { %4029 = vmatpush.bf16.msrb.mxu3 %v6349_v58 }
 0x210   :  { %3991 = vmatpush.bf16.msrb.mxu0 %v5949_v8  ;;  %v3762_v57 = vadd.f32 %v7409_v59, %v3749_v61  ;;  %v7056_v8 = vld [vmem:[#allocation7 + $0x10] sm:$0xff]  ;;  %v7081_v61 = vld [vmem:[#allocation7 + $0xd8] sm:$0xff] }
 0x211   :  { %4004 = vmatpush.bf16.msrb.mxu1 %v6077_v9  ;;  %v7064_v9 = vld [vmem:[#allocation7 + $0x50] sm:$0xff] }
 0x212   :  { %4017 = vmatpush.bf16.msrb.mxu2 %v6205_v11  ;;  %v7072_v11 = vld [vmem:[#allocation7 + $0x90] sm:$0xff] }
 0x213   :  { %4030 = vmatpush.bf16.msrb.mxu3 %v6333_v16 }
 0x214   :  { %3992 = vmatpush.bf16.msrb.mxu0 %v5933_v60  ;;  %v4039_v60 = vmax.f32 %v7378_v49, 0.0 }
 0x215   :  { %4005 = vmatpush.bf16.msrb.mxu1 %v6061_v33 }
 0x216   :  { %4018 = vmatpush.bf16.msrb.mxu2 %v6189_v18  ;;  %v4042_v18 = vpack.c.bf16 %v4038_v34, %v4038_v34  ;;  %v4043_v28 = vpack.c.bf16 %v4039_v60, %v4039_v60  ;;  %v7095_v60 = vld [vmem:[#allocation9] ss:$0 sm:$0xff] }
 0x217   :  { %4031 = vmatpush.bf16.msrb.mxu3 %v6317_v37 }
 0x218   :  { %3993 = vmatpush.bf16.msrb.mxu0 %v5917_v43  ;;  %v3787_v58 = vpop.f32.mrf.mxu0 }
 0x219   :  { %4006 = vmatpush.bf16.msrb.mxu1 %v6045_v44 }
 0x21a   :  { %4019 = vmatpush.bf16.msrb.mxu2 %v6173_v45 }
 0x21b   :  { %4032 = vmatpush.bf16.msrb.mxu3 %v6301_v62  ;;  %3994 = vmatmul.bf16.vlgmr.msrb.gmra.mxu0 %v7314_v13  ;;  %v3800_v13 = vpop.f32.mrf.mxu1 }
 0x21c   :  { %4306 = vmatpush.bf16.msra.mxu0 %v7061_v46  ;;  %4007 = vmatmul.bf16.vlgmr.msrb.gmra.mxu1 %v7318_v20  ;;  %v7066_v20 = vld [vmem:[#allocation7 + $0x60] sm:$0xff] }
 0x21d   :  { %4319 = vmatpush.bf16.msra.mxu1 %v7069_v47  ;;  %4020 = vmatmul.bf16.vlgmr.msrb.gmra.mxu2 %v7316_v19  ;;  %v7074_v19 = vld [vmem:[#allocation7 + $0xa0] sm:$0xff]  ;;  %v7085_v47 = vld [vmem:[#allocation7 + $0xf8] sm:$0xff] }
 0x21e   :  { %4332 = vmatpush.bf16.msra.mxu2 %v7077_v50  ;;  %4033 = vmatmul.bf16.vlgmr.msrb.gmra.mxu3 %v7320_v26  ;;  %v3775_v26 = vadd.f32 %v7411_v6, %v3762_v57  ;;  %v7055_v6 = vld [vmem:[#allocation7 + $0x8] sm:$0xff] }
 0x21f   :  { %4345 = vmatpush.bf16.msra.mxu3 %v7085_v47  ;;  %v7079_v57 = vld [vmem:[#allocation7 + $0xc8] sm:$0xff] }
 0x220   :  { %4307 = vmatpush.bf16.msra.mxu0 %v7060_v55  ;;  %v3788_v0 = vadd.f32 %v3787_v58, %v3775_v26  ;;  %v3813_v3 = vpop.f32.mrf.mxu2  ;;  %v3789_v59 = vpop.f32.mrf.mxu0  ;;  %v7083_v55 = vld [vmem:[#allocation7 + $0xe8] sm:$0xff]  ;;  %v7078_v26 = vld [vmem:[#allocation7 + $0xc0] sm:$0xff] }
 0x221   :  { %4320 = vmatpush.bf16.msra.mxu1 %v7068_v52  ;;  %v3826_v4 = vpop.f32.mrf.mxu3 }
 0x222   :  { %4333 = vmatpush.bf16.msra.mxu2 %v7076_v53  ;;  %v3801_v5 = vadd.f32 %v3800_v13, %v3788_v0  ;;  %v7082_v53 = vld [vmem:[#allocation7 + $0xe0] sm:$0xff] }
 0x223   :  { %v3802_v10 = vpop.f32.mrf.mxu1  ;;  %4346 = vmatpush.bf16.msra.mxu3 %v7084_v7 }
 0x224   :  { %4308 = vmatpush.bf16.msra.mxu0 %v7059_v48  ;;  %v3814_v15 = vadd.f32 %v3813_v3, %v3801_v5 }
 0x225   :  { %4321 = vmatpush.bf16.msra.mxu1 %v7067_v38 }
 0x226   :  { %4334 = vmatpush.bf16.msra.mxu2 %v7075_v56  ;;  %v3827_v16 = vadd.f32 %v3826_v4, %v3814_v15  ;;  %v7080_v56 = vld [vmem:[#allocation7 + $0xd0] sm:$0xff] }
 0x227   :  { %4347 = vmatpush.bf16.msra.mxu3 %v7083_v55 }
 0x228   :  { %4309 = vmatpush.bf16.msra.mxu0 %v7058_v63  ;;  %v3815_v25 = vpop.f32.mrf.mxu2  ;;  %v4040_v33 = vmax.f32 %v3827_v16, 0.0 }
 0x229   :  { %4322 = vmatpush.bf16.msra.mxu1 %v7066_v20  ;;  %v3828_v17 = vpop.f32.mrf.mxu3 }
 0x22a   :  { %4335 = vmatpush.bf16.msra.mxu2 %v7074_v19  ;;  %v4044_v30 = vpack.c.bf16 %v4040_v33, %v4040_v33 }
 0x22b   :  { %4348 = vmatpush.bf16.msra.mxu3 %v7082_v53 }
 0x22c   :  { %4310 = vmatpush.bf16.msra.mxu0 %v7057_v35 }
 0x22d   :  { %4323 = vmatpush.bf16.msra.mxu1 %v7065_v1 }
 0x22e   :  { %4336 = vmatpush.bf16.msra.mxu2 %v7073_v2 }
 0x22f   :  { %4349 = vmatpush.bf16.msra.mxu3 %v7081_v61 }
 0x230   :  { %4311 = vmatpush.bf16.msra.mxu0 %v7056_v8 }
 0x231   :  { %4324 = vmatpush.bf16.msra.mxu1 %v7064_v9 }
 0x232   :  { %4337 = vmatpush.bf16.msra.mxu2 %v7072_v11 }
 0x233   :  { %4350 = vmatpush.bf16.msra.mxu3 %v7080_v56 }
 0x234   :  { %4312 = vmatpush.bf16.msra.mxu0 %v7055_v6 }
 0x235   :  { %4325 = vmatpush.bf16.msra.mxu1 %v7063_v12 }
 0x236   :  { %4338 = vmatpush.bf16.msra.mxu2 %v7071_v14 }
 0x237   :  { %4351 = vmatpush.bf16.msra.mxu3 %v7079_v57 }
 0x238   :  { %4313 = vmatpush.bf16.msra.mxu0 %v7054_v21  ;;  %v3839_v37 = vpop.f32.mrf.mxu0 }
 0x239   :  { %4326 = vmatpush.bf16.msra.mxu1 %v7062_v29  ;;  %v3840_v31 = vadd.f32 %v3839_v37, %v641_v32  ;;  %v3852_v22 = vpop.f32.mrf.mxu1 }
 0x23a   :  { %4339 = vmatpush.bf16.msra.mxu2 %v7070_v24 }
 0x23b   :  { %4314 = vmatmul.bf16.vlgmr.msra.gmra.mxu0 %v4042_v18  ;;  %v3853_v23 = vadd.f32 %v3852_v22, %v3840_v31  ;;  %4352 = vmatpush.bf16.msra.mxu3 %v7078_v26 }
 0x23c   :  { %4327 = vmatmul.bf16.vlgmr.msra.gmra.mxu1 %v4043_v28 }
 0x23d   :  { %4340 = vmatmul.bf16.vlgmr.msra.gmra.mxu2 %v4044_v30 }
 0x240   :  { %v3865_v40 = vpop.f32.mrf.mxu2  ;;  %v3841_v39 = vpop.f32.mrf.mxu0 }
 0x241   :  { %v3866_v27 = vadd.f32 %v3865_v40, %v3853_v23  ;;  %v3878_v36 = vpop.f32.mrf.mxu3  ;;  %v3854_v41 = vpop.f32.mrf.mxu1 }
 0x243   :  { %v3879_v49 = vadd.f32 %v3878_v36, %v3866_v27 }
 0x248   :  { %v3867_v42 = vpop.f32.mrf.mxu2 }
 0x249   :  { %v3880_v43 = vpop.f32.mrf.mxu3 }
 0x258   :  { %v3891_v44 = vpop.f32.mrf.mxu0 }
 0x259   :  { %v3904_v45 = vpop.f32.mrf.mxu1  ;;  %v3892_v58 = vadd.f32 %v3891_v44, %v3879_v49 }
 0x25b   :  { %v3905_v0 = vadd.f32 %v3904_v45, %v3892_v58 }
 0x260   :  { %v3917_v62 = vpop.f32.mrf.mxu2  ;;  %v3893_v50 = vpop.f32.mrf.mxu0 }
 0x261   :  { %v3930_v46 = vpop.f32.mrf.mxu3  ;;  %v3906_v51 = vpop.f32.mrf.mxu1  ;;  %v3918_v35 = vadd.f32 %v3917_v62, %v3905_v0 }
 0x263   :  { %v3931_v3 = vadd.f32 %v3930_v46, %v3918_v35 }
 0x268   :  { %v3919_v54 = vpop.f32.mrf.mxu2 }
 0x269   :  { %v3932_v52 = vpop.f32.mrf.mxu3 }
 0x278   :  { %v3943_v48 = vpop.f32.mrf.mxu0 }
 0x279   :  { %v3956_v38 = vpop.f32.mrf.mxu1  ;;  %v3944_v4 = vadd.f32 %v3943_v48, %v3931_v3 }
 0x27b   :  { %v3957_v59 = vadd.f32 %v3956_v38, %v3944_v4 }
 0x280   :  { %v3969_v63 = vpop.f32.mrf.mxu2  ;;  %v3945_v20 = vpop.f32.mrf.mxu0 }
 0x281   :  { %v3982_v13 = vpop.f32.mrf.mxu3  ;;  %v3958_v19 = vpop.f32.mrf.mxu1  ;;  %v3970_v5 = vadd.f32 %v3969_v63, %v3957_v59 }
 0x283   :  { %v3983_v8 = vadd.f32 %v3982_v13, %v3970_v5 }
 0x288   :  { %v3971_v1 = vpop.f32.mrf.mxu2 }
 0x289   :  { %v3984_v2 = vpop.f32.mrf.mxu3 }
 0x298   :  { %v3995_v10 = vpop.f32.mrf.mxu0 }
 0x299   :  { %v4008_v9 = vpop.f32.mrf.mxu1  ;;  %v3996_v11 = vadd.f32 %v3995_v10, %v3983_v8 }
 0x29b   :  { %v4009_v15 = vadd.f32 %v4008_v9, %v3996_v11 }
 0x2a0   :  { %v4021_v6 = vpop.f32.mrf.mxu2  ;;  %v3997_v16 = vpop.f32.mrf.mxu0 }
 0x2a1   :  { %v4034_v12 = vpop.f32.mrf.mxu3  ;;  %v4022_v14 = vadd.f32 %v4021_v6, %v4009_v15  ;;  %v4010_v25 = vpop.f32.mrf.mxu1 }
 0x2a3   :  { %v4035_v17 = vadd.f32 %v4034_v12, %v4022_v14 }
 0x2a5   :  { %v4041_v21 = vmax.f32 %v4035_v17, 0.0 }
 0x2a7   :  { %v4045_v34 = vpack.c.bf16 %v4041_v21, %v4041_v21 }
 0x2a8   :  { %v4023_v29 = vpop.f32.mrf.mxu2 }
 0x2a9   :  { %v4036_v24 = vpop.f32.mrf.mxu3  ;;  %4353 = vmatmul.bf16.vlgmr.msra.gmra.mxu3 %v4045_v34 }
 0x2b8   :  { %v4315_v33 = vpop.f32.mrf.mxu0 }
 0x2b9   :  { %v4316_v18 = vadd.f32 %v7095_v60, %v4315_v33  ;;  %v4328_v28 = vpop.f32.mrf.mxu1 }
 0x2bb   :  { %v4329_v30 = vadd.f32 %v4328_v28, %v4316_v18 }
 0x2c0   :  { %v4341_v32 = vpop.f32.mrf.mxu2  ;;  %v4317_v31 = vpop.f32.mrf.mxu0 }
 0x2c1   :  { %v4342_v37 = vadd.f32 %v4341_v32, %v4329_v30  ;;  %v4330_v22 = vpop.f32.mrf.mxu1 }
 0x2c8   :  { %v4343_v23 = vpop.f32.mrf.mxu2 }
 0x32c   :  { %v4354_v40 = vpop.f32.mrf.mxu3 }
 0x32d   :  { %v4355_v27 = vadd.f32 %v4354_v40, %v4342_v37 }
 0x32f   :  { %4358 = vst [vmem:[%s7437_s5] sm:$0xff] %v4355_v27 }
 0x334   :  { %v4356_v36 = vpop.f32.mrf.mxu3 }
 0x335   :  { %4363 = vsyncpa [#allocation3], 1 }
 0x336   :  { %4364 = vsyncpa [#allocation5], 1 }
 0x337   :  { %4365 = vsyncpa [#allocation8], 1 }

</bundles_post_ra>
